<compile_context>
chip_gen: v7x
topology: tpu7x:2x2x1
jax: 0.10.0
libtpu: 0.0.40
codegen_flags: <defaults>
</compile_context>

<pallas_src>
import jax
import jax.numpy as jnp
from jax import lax
from jax.experimental import pallas as pl
from jax.experimental.pallas import tpu as pltpu

# ---- module hyper-parameters (synthetic args) -------------------------------
BS, T = 3, 50                # batch, episode length  -> B = 150 rows
B = BS * T
N_AGENTS = 4                 # args.n_agents
S_DIM = 48                   # prod(args.state_shape)  (original_state_dim)
SE_DIM = 32                  # args.state_embedding_dim
TE_DIM = 32                  # args.task_embedding_dim
D = SE_DIM + TE_DIM          # self.state_dim (use_task_encoder=True)
H = 64                       # args.hypernet_embed   (hypernet_layers == 2)
E = 32                       # args.mixing_embed_dim
CAT_DIM = 2 * H + 2 * E      # fused first-layer hypernet output width (192)
W2_COLS = N_AGENTS * E + E   # fused second-layer hypernet output width (160)
MAX_TB = 512                 # row-tile cap for large production batches


# ------------------------------- kernel --------------------------------------
def mixer_kernel(qs_ref, st_ref, te_ref, wse_ref, wcat_ref, w2_ref, sm_ref,
                 out_ref):
    f32 = jnp.float32
    st = st_ref[...].astype(f32)                       # (TB, S_DIM)
    te = te_ref[...].astype(f32)                       # (TB, TE_DIM)

    # state_embedding = relu(state_encoder(states))   (weights read via refs)
    se = jnp.maximum(
        jnp.dot(st, wse_ref[...], preferred_element_type=f32)
        + sm_ref[0:1, :SE_DIM], 0.0)                   # (TB, SE_DIM)

    # concat([se, te]) @ W_cat == se @ W_cat[:SE] + te @ W_cat[SE:]  (no concat)
    # W_cat packs the four D-input hypernet first layers: [w1a | wfa | wb1 | wv1]
    xcat = (jnp.dot(se, wcat_ref[:SE_DIM, :], preferred_element_type=f32)
            + jnp.dot(te, wcat_ref[SE_DIM:, :], preferred_element_type=f32)
            + sm_ref[1:2, :])                          # (TB, CAT_DIM)

    # Fused second-layer hypernets: relu the first 2H lanes (exactly one vreg)
    # and hit a block-diagonal (2H, N*E+E) slab -> [w1 | w_final] in one dot.
    h = jnp.maximum(xcat[:, :2 * H], 0.0)              # (TB, 128)
    w1wf = jnp.abs(jnp.dot(h, w2_ref[...], preferred_element_type=f32)
                   + sm_ref[2:3, :W2_COLS])            # (TB, N*E + E)

    b1 = xcat[:, 2 * H:2 * H + E]                      # hyper_b_1 out (no relu)
    hv = jnp.maximum(xcat[:, 2 * H + E:], 0.0)         # V hidden (relu)

    # hidden[b,e] = sum_a qs[b,a] * w1[b, a*E+e] + b1[b,e]   (balanced tree)
    qs = qs_ref[...].astype(f32)                       # (TB, N) -- loaded late
    terms = [b1] + [qs[:, a:a + 1] * w1wf[:, a * E:(a + 1) * E]
                    for a in range(N_AGENTS)]
    while len(terms) > 1:
        nxt = [terms[i] + terms[i + 1] for i in range(0, len(terms) - 1, 2)]
        if len(terms) % 2:
            nxt.append(terms[-1])
        terms = nxt
    hidden = terms[0]                                  # (TB, E)

    # ELU (alpha=1); exp argument clamped -> inf/NaN safe even on padded rows
    hidden = jnp.where(hidden > 0.0, hidden,
                       jnp.exp(jnp.minimum(hidden, 0.0)) - 1.0)

    # y[b] = sum_e hidden[b,e]*w_final[b,e] + sum_e hv[b,e]*wv2[e] + bv2
    wf = w1wf[:, N_AGENTS * E:]                        # (TB, E)
    m = hidden * wf + hv * sm_ref[4:5, :E]             # (TB, E)
    ones = jnp.ones((1, E), f32)
    yt = lax.dot_general(ones, m, (((1,), (1,)), ((), ())),
                         preferred_element_type=f32) + sm_ref[3:4, 0:1]
    out_ref[...] = yt[None].astype(out_ref.dtype)      # (1, 1, TB) lane-dense


# ------------------------------ wrapper ---------------------------------------
def _round_up(x, m):
    return ((x + m - 1) // m) * m


def _default_num_row_tiles():
    """2 parallel row tiles on v7x (2 TensorCores/chip), 1 otherwise."""
    try:
        kind = jax.devices()[0].device_kind.lower()
    except Exception:
        return 1
    return 2 if ("v7" in kind or "7x" in kind) else 1


def pack_params(p):
    """Fuse 16 weight/bias arrays into 4 VMEM slabs."""
    # first-layer hypernets (all take the D-dim concat state): one (D, 192) slab
    w_cat = jnp.concatenate([p["w1a"], p["wfa"], p["wb1"], p["wv1"]], axis=1)
    b_cat = jnp.concatenate([p["b1a"], p["bfa"], p["bb1"], p["bv1"]], axis=1)
    # second-layer hypernets: block-diagonal (2H, N*E + E) slab
    w_2 = jnp.zeros((2 * H, W2_COLS), jnp.float32)
    w_2 = w_2.at[:H, :N_AGENTS * E].set(p["w1b"])
    w_2 = w_2.at[H:, N_AGENTS * E:].set(p["wfb"])
    # small slab: every remaining bias + V[2]'s weight, one row each
    small = jnp.zeros((8, CAT_DIM), jnp.float32)
    small = small.at[0, :SE_DIM].set(p["bse"][0])                 # state enc bias
    small = small.at[1, :CAT_DIM].set(b_cat[0])                   # fused 1st biases
    small = small.at[2, :N_AGENTS * E].set(p["b1b"][0])           # [b1b | bfb]
    small = small.at[2, N_AGENTS * E:W2_COLS].set(p["bfb"][0])
    small = small.at[3, 0].set(p["bv2"][0, 0])                    # V[2] bias
    small = small.at[4, :E].set(p["wv2"][:, 0])                   # V[2] weight
    return p["wse"], w_cat, w_2, small


def task_encoder_qmix(agent_qs, states, task_embedding, params,
                      num_row_tiles=None, max_tb=MAX_TB):
    """agent_qs: (bs, T, n_agents); states: (bs, T, S_DIM);
    task_embedding: (bs*T, TE_DIM).  Returns q_tot: (bs, T, 1)."""
    bs, t, n = agent_qs.shape
    b_rows = bs * t
    if num_row_tiles is None:
        num_row_tiles = _default_num_row_tiles()

    # One lane-dense (128-multiple) row tile per requested TensorCore, capped;
    # inputs are NOT padded — the ragged tail is a partial block (all kernel
    # ops are row-local, padded output rows are sliced off below).
    tb = min(max_tb, _round_up(pl.cdiv(b_rows, num_row_tiles), 128))
    n_tiles = pl.cdiv(b_rows, tb)

    qs2 = agent_qs.reshape(b_rows, n)
    st2 = states.reshape(b_rows, -1)
    te2 = task_embedding.reshape(b_rows, -1)

    wse, wcat, w2, small = pack_params(params)

    def row_spec(d):
        return pl.BlockSpec((tb, d), lambda i: (i, 0))

    def full_spec(shape):
        return pl.BlockSpec(shape, lambda i: (0,) * len(shape))

    rows_done = n_tiles * tb
    cost = pl.CostEstimate(
        flops=2 * rows_done * (S_DIM * SE_DIM + D * CAT_DIM
                               + 2 * H * W2_COLS + E),
        transcendentals=rows_done * E,
        bytes_accessed=4 * (qs2.size + st2.size + te2.size + wse.size
                            + wcat.size + w2.size + small.size + rows_done),
    )

    out = pl.pallas_call(
        mixer_kernel,
        out_shape=jax.ShapeDtypeStruct((n_tiles, 1, tb), jnp.float32),
        grid=(n_tiles,),
        in_specs=[row_spec(n), row_spec(st2.shape[1]), row_spec(te2.shape[1]),
                  full_spec(wse.shape), full_spec(wcat.shape),
                  full_spec(w2.shape), full_spec(small.shape)],
        out_specs=pl.BlockSpec((1, 1, tb), lambda i: (i, 0, 0)),
        compiler_params=pltpu.CompilerParams(
            dimension_semantics=("parallel",)),
        cost_estimate=cost,
    )(qs2, st2, te2, wse, wcat, w2, small)
    return out.reshape(n_tiles * tb)[:b_rows].reshape(bs, t, 1)


# ----------------------------- params / reference ----------------------------
def init_params(key):
    ks = jax.random.split(key, 8)

    def lin(k, i, o):
        kw, kb = jax.random.split(k)
        return (jax.random.normal(kw, (i, o), jnp.float32) * 0.1,
                jax.random.normal(kb, (1, o), jnp.float32) * 0.1)

    p = {}
    p["wse"], p["bse"] = lin(ks[0], S_DIM, SE_DIM)          # state_encoder
    p["w1a"], p["b1a"] = lin(ks[1], D, H)                   # hyper_w_1[0]
    p["w1b"], p["b1b"] = lin(ks[2], H, E * N_AGENTS)        # hyper_w_1[2]
    p["wb1"], p["bb1"] = lin(ks[3], D, E)                   # hyper_b_1
    p["wfa"], p["bfa"] = lin(ks[4], D, H)                   # hyper_w_final[0]
    p["wfb"], p["bfb"] = lin(ks[5], H, E)                   # hyper_w_final[2]
    p["wv1"], p["bv1"] = lin(ks[6], D, E)                   # V[0]
    p["wv2"], p["bv2"] = lin(ks[7], E, 1)                   # V[2]
    return p


def reference(agent_qs, states, task_embedding, p):
    """Pure-JAX replica of the PyTorch forward, for verification."""
    bs, t, n = agent_qs.shape
    qs = agent_qs.reshape(-1, 1, n)
    st = states.reshape(-1, S_DIM)
    se = jax.nn.relu(st @ p["wse"] + p["bse"])
    x = jnp.concatenate([se, task_embedding.reshape(-1, TE_DIM)], axis=1)
    w1 = jnp.abs(jax.nn.relu(x @ p["w1a"] + p["b1a"]) @ p["w1b"] + p["b1b"])
    w1 = w1.reshape(-1, n, E)
    b1 = (x @ p["wb1"] + p["bb1"]).reshape(-1, 1, E)
    hidden = jax.nn.elu(jnp.einsum("bij,bjk->bik", qs, w1) + b1)
    wf = jnp.abs(jax.nn.relu(x @ p["wfa"] + p["bfa"]) @ p["wfb"] + p["bfb"])
    wf = wf.reshape(-1, E, 1)
    v = (jax.nn.relu(x @ p["wv1"] + p["bv1"]) @ p["wv2"] + p["bv2"]).reshape(-1, 1, 1)
    y = jnp.einsum("bij,bjk->bik", hidden, wf) + v
    return y.reshape(bs, -1, 1)


if __name__ == "__main__":
    key = jax.random.PRNGKey(0)
    kp, kq, ks, kt = jax.random.split(key, 4)
    params = init_params(kp)

    agent_qs = jax.random.normal(kq, (BS, T, N_AGENTS), jnp.float32)
    states = jax.random.normal(ks, (BS, T, S_DIM), jnp.float32)
    task_embedding = jax.random.normal(kt, (B, TE_DIM), jnp.float32)

    mix = jax.jit(task_encoder_qmix)          # fuses the (tiny) wrapper plumbing
    q_tot = jax.block_until_ready(mix(agent_qs, states, task_embedding, params))
    q_ref = reference(agent_qs, states, task_embedding, params)

    assert q_tot.shape == (BS, T, 1)
    max_err = float(jnp.max(jnp.abs(q_tot - q_ref)))
    assert jnp.allclose(q_tot, q_ref, atol=1e-3, rtol=1e-3), (
        f"mismatch vs reference: max abs err {max_err}")
    print("KERNEL_OK")
</pallas_src>

<mosaic_0001>
module attributes {stable_mosaic.version = 11 : i64} {
  func.func @mixer_kernel(%arg0: i32, %arg1: memref<256x4xf32, #tpu.memory_space<vmem>>, %arg2: memref<256x48xf32, #tpu.memory_space<vmem>>, %arg3: memref<256x32xf32, #tpu.memory_space<vmem>>, %arg4: memref<48x32xf32, #tpu.memory_space<vmem>>, %arg5: memref<64x192xf32, #tpu.memory_space<vmem>>, %arg6: memref<128x160xf32, #tpu.memory_space<vmem>>, %arg7: memref<8x192xf32, #tpu.memory_space<vmem>>, %arg8: memref<1x1x256xf32, #tpu.memory_space<vmem>>) attributes {dimension_semantics = [#tpu.dimension_semantics<parallel>], iteration_bounds = array<i64: 1>, scalar_prefetch = 0 : i64, scratch_operands = 0 : i64, tpu.core_type = #tpu.core_type<tc>, window_params = [{transform_indices = @transform_0, window_bounds = array<i64: 256, 4>}, {transform_indices = @transform_1, window_bounds = array<i64: 256, 48>}, {transform_indices = @transform_2, window_bounds = array<i64: 256, 32>}, {pipeline_mode = #tpu.pipeline_mode<synchronous>, transform_indices = @transform_3, window_bounds = array<i64: 48, 32>}, {pipeline_mode = #tpu.pipeline_mode<synchronous>, transform_indices = @transform_4, window_bounds = array<i64: 64, 192>}, {pipeline_mode = #tpu.pipeline_mode<synchronous>, transform_indices = @transform_5, window_bounds = array<i64: 128, 160>}, {pipeline_mode = #tpu.pipeline_mode<synchronous>, transform_indices = @transform_6, window_bounds = array<i64: 8, 192>}, {transform_indices = @transform_7, window_bounds = array<i64: 1, 1, 256>}]} {
    %c0 = arith.constant 0 : index
    %c0_0 = arith.constant 0 : index
    %0 = vector.load %arg2[%c0, %c0_0] : memref<256x48xf32, #tpu.memory_space<vmem>>, vector<256x48xf32>
    %c0_1 = arith.constant 0 : index
    %c0_2 = arith.constant 0 : index
    %1 = vector.load %arg3[%c0_1, %c0_2] : memref<256x32xf32, #tpu.memory_space<vmem>>, vector<256x32xf32>
    %c0_3 = arith.constant 0 : index
    %c0_4 = arith.constant 0 : index
    %2 = vector.load %arg4[%c0_3, %c0_4] : memref<48x32xf32, #tpu.memory_space<vmem>>, vector<48x32xf32>
    %cst = arith.constant dense<0.000000e+00> : vector<256x32xf32>
    %3 = tpu.matmul %0, %2, %cst {dimension_numbers = #tpu.dot_dimension_numbers<[1], [0], [0], [1], [0, 0, 1, 1], [], []>} : vector<256x48xf32>, vector<48x32xf32>, vector<256x32xf32> -> vector<256x32xf32>
    %c0_5 = arith.constant 0 : index
    %c0_6 = arith.constant 0 : index
    %4 = vector.load %arg7[%c0_5, %c0_6] : memref<8x192xf32, #tpu.memory_space<vmem>>, vector<1x32xf32>
    %5 = vector.broadcast %4 : vector<1x32xf32> to vector<256x32xf32>
    %6 = arith.addf %3, %5 : vector<256x32xf32>
    %cst_7 = arith.constant 0.000000e+00 : f32
    %7 = vector.broadcast %cst_7 : f32 to vector<256x32xf32>
    %8 = arith.maximumf %6, %7 : vector<256x32xf32>
    %c0_8 = arith.constant 0 : index
    %c0_9 = arith.constant 0 : index
    %9 = vector.load %arg5[%c0_8, %c0_9] : memref<64x192xf32, #tpu.memory_space<vmem>>, vector<32x192xf32>
    %cst_10 = arith.constant dense<0.000000e+00> : vector<256x192xf32>
    %10 = tpu.matmul %8, %9, %cst_10 {dimension_numbers = #tpu.dot_dimension_numbers<[1], [0], [0], [1], [0, 0, 1, 1], [], []>} : vector<256x32xf32>, vector<32x192xf32>, vector<256x192xf32> -> vector<256x192xf32>
    %c32 = arith.constant 32 : index
    %c0_11 = arith.constant 0 : index
    %11 = vector.load %arg5[%c32, %c0_11] : memref<64x192xf32, #tpu.memory_space<vmem>>, vector<32x192xf32>
    %cst_12 = arith.constant dense<0.000000e+00> : vector<256x192xf32>
    %12 = tpu.matmul %1, %11, %cst_12 {dimension_numbers = #tpu.dot_dimension_numbers<[1], [0], [0], [1], [0, 0, 1, 1], [], []>} : vector<256x32xf32>, vector<32x192xf32>, vector<256x192xf32> -> vector<256x192xf32>
    %13 = arith.addf %10, %12 : vector<256x192xf32>
    %c1 = arith.constant 1 : index
    %c0_13 = arith.constant 0 : index
    %14 = vector.load %arg7[%c1, %c0_13] : memref<8x192xf32, #tpu.memory_space<vmem>>, vector<1x192xf32>
    %15 = vector.broadcast %14 : vector<1x192xf32> to vector<256x192xf32>
    %16 = arith.addf %13, %15 : vector<256x192xf32>
    %17 = vector.extract_strided_slice %16 {offsets = [0, 0], sizes = [256, 128], strides = [1, 1]} : vector<256x192xf32> to vector<256x128xf32>
    %cst_14 = arith.constant 0.000000e+00 : f32
    %18 = vector.broadcast %cst_14 : f32 to vector<256x128xf32>
    %19 = arith.maximumf %17, %18 : vector<256x128xf32>
    %c0_15 = arith.constant 0 : index
    %c0_16 = arith.constant 0 : index
    %20 = vector.load %arg6[%c0_15, %c0_16] : memref<128x160xf32, #tpu.memory_space<vmem>>, vector<128x160xf32>
    %cst_17 = arith.constant dense<0.000000e+00> : vector<256x160xf32>
    %21 = tpu.matmul %19, %20, %cst_17 {dimension_numbers = #tpu.dot_dimension_numbers<[1], [0], [0], [1], [0, 0, 1, 1], [], []>} : vector<256x128xf32>, vector<128x160xf32>, vector<256x160xf32> -> vector<256x160xf32>
    %c2 = arith.constant 2 : index
    %c0_18 = arith.constant 0 : index
    %22 = vector.load %arg7[%c2, %c0_18] : memref<8x192xf32, #tpu.memory_space<vmem>>, vector<1x160xf32>
    %23 = vector.broadcast %22 : vector<1x160xf32> to vector<256x160xf32>
    %24 = arith.addf %21, %23 : vector<256x160xf32>
    %25 = math.absf %24 : vector<256x160xf32>
    %26 = vector.extract_strided_slice %16 {offsets = [0, 128], sizes = [256, 32], strides = [1, 1]} : vector<256x192xf32> to vector<256x32xf32>
    %27 = vector.extract_strided_slice %16 {offsets = [0, 160], sizes = [256, 32], strides = [1, 1]} : vector<256x192xf32> to vector<256x32xf32>
    %cst_19 = arith.constant 0.000000e+00 : f32
    %28 = vector.broadcast %cst_19 : f32 to vector<256x32xf32>
    %29 = arith.maximumf %27, %28 : vector<256x32xf32>
    %c0_20 = arith.constant 0 : index
    %c0_21 = arith.constant 0 : index
    %30 = vector.load %arg1[%c0_20, %c0_21] : memref<256x4xf32, #tpu.memory_space<vmem>>, vector<256x4xf32>
    %31 = vector.extract_strided_slice %30 {offsets = [0, 0], sizes = [256, 1], strides = [1, 1]} : vector<256x4xf32> to vector<256x1xf32>
    %32 = vector.extract_strided_slice %25 {offsets = [0, 0], sizes = [256, 32], strides = [1, 1]} : vector<256x160xf32> to vector<256x32xf32>
    %33 = vector.broadcast %31 : vector<256x1xf32> to vector<256x32xf32>
    %34 = arith.mulf %33, %32 : vector<256x32xf32>
    %35 = vector.extract_strided_slice %30 {offsets = [0, 1], sizes = [256, 1], strides = [1, 1]} : vector<256x4xf32> to vector<256x1xf32>
    %36 = vector.extract_strided_slice %25 {offsets = [0, 32], sizes = [256, 32], strides = [1, 1]} : vector<256x160xf32> to vector<256x32xf32>
    %37 = vector.broadcast %35 : vector<256x1xf32> to vector<256x32xf32>
    %38 = arith.mulf %37, %36 : vector<256x32xf32>
    %39 = vector.extract_strided_slice %30 {offsets = [0, 2], sizes = [256, 1], strides = [1, 1]} : vector<256x4xf32> to vector<256x1xf32>
    %40 = vector.extract_strided_slice %25 {offsets = [0, 64], sizes = [256, 32], strides = [1, 1]} : vector<256x160xf32> to vector<256x32xf32>
    %41 = vector.broadcast %39 : vector<256x1xf32> to vector<256x32xf32>
    %42 = arith.mulf %41, %40 : vector<256x32xf32>
    %43 = vector.extract_strided_slice %30 {offsets = [0, 3], sizes = [256, 1], strides = [1, 1]} : vector<256x4xf32> to vector<256x1xf32>
    %44 = vector.extract_strided_slice %25 {offsets = [0, 96], sizes = [256, 32], strides = [1, 1]} : vector<256x160xf32> to vector<256x32xf32>
    %45 = vector.broadcast %43 : vector<256x1xf32> to vector<256x32xf32>
    %46 = arith.mulf %45, %44 : vector<256x32xf32>
    %47 = arith.addf %26, %34 : vector<256x32xf32>
    %48 = arith.addf %38, %42 : vector<256x32xf32>
    %49 = arith.addf %47, %48 : vector<256x32xf32>
    %50 = arith.addf %49, %46 : vector<256x32xf32>
    %cst_22 = arith.constant 0.000000e+00 : f32
    %51 = vector.broadcast %cst_22 : f32 to vector<256x32xf32>
    %52 = arith.cmpf ogt, %50, %51 : vector<256x32xf32>
    %cst_23 = arith.constant 0.000000e+00 : f32
    %53 = vector.broadcast %cst_23 : f32 to vector<256x32xf32>
    %54 = arith.minimumf %50, %53 : vector<256x32xf32>
    %55 = math.exp %54 : vector<256x32xf32>
    %cst_24 = arith.constant 1.000000e+00 : f32
    %56 = vector.broadcast %cst_24 : f32 to vector<256x32xf32>
    %57 = arith.subf %55, %56 : vector<256x32xf32>
    %58 = arith.select %52, %50, %57 : vector<256x32xi1>, vector<256x32xf32>
    %59 = vector.extract_strided_slice %25 {offsets = [0, 128], sizes = [256, 32], strides = [1, 1]} : vector<256x160xf32> to vector<256x32xf32>
    %60 = arith.mulf %58, %59 : vector<256x32xf32>
    %c4 = arith.constant 4 : index
    %c0_25 = arith.constant 0 : index
    %61 = vector.load %arg7[%c4, %c0_25] : memref<8x192xf32, #tpu.memory_space<vmem>>, vector<1x32xf32>
    %62 = vector.broadcast %61 : vector<1x32xf32> to vector<256x32xf32>
    %63 = arith.mulf %29, %62 : vector<256x32xf32>
    %64 = arith.addf %60, %63 : vector<256x32xf32>
    %cst_26 = arith.constant 1.000000e+00 : f32
    %65 = vector.broadcast %cst_26 : f32 to vector<1x32xf32>
    %cst_27 = arith.constant dense<0.000000e+00> : vector<1x256xf32>
    %66 = tpu.matmul %65, %64, %cst_27 {dimension_numbers = #tpu.dot_dimension_numbers<[1], [1], [0], [0], [0, 0, 1, 0], [], []>} : vector<1x32xf32>, vector<256x32xf32>, vector<1x256xf32> -> vector<1x256xf32>
    %c3 = arith.constant 3 : index
    %c0_28 = arith.constant 0 : index
    %67 = vector.load %arg7[%c3, %c0_28] : memref<8x192xf32, #tpu.memory_space<vmem>>, vector<1x1xf32>
    %68 = vector.broadcast %67 : vector<1x1xf32> to vector<1x256xf32>
    %69 = arith.addf %66, %68 : vector<1x256xf32>
    %70 = vector.shape_cast %69 : vector<1x256xf32> to vector<1x1x256xf32>
    %c0_29 = arith.constant 0 : index
    %c0_30 = arith.constant 0 : index
    %c0_31 = arith.constant 0 : index
    %71 = vector.load %arg8[%c0_29, %c0_30, %c0_31] : memref<1x1x256xf32, #tpu.memory_space<vmem>>, vector<1x1x256xf32>
    tpu.vector_store %arg8[%c0_29, %c0_30, %c0_31], %70 {strides = array<i32>} : memref<1x1x256xf32, #tpu.memory_space<vmem>>, vector<1x1x256xf32>,
    return
  }
  func.func @transform_0(%arg0: i32) -> (i32, i32) {
    %c0_i32 = arith.constant 0 : i32
    %c0_i32_0 = arith.constant 0 : i32
    return %arg0, %c0_i32 : i32, i32
  }
  func.func @transform_1(%arg0: i32) -> (i32, i32) {
    %c0_i32 = arith.constant 0 : i32
    %c0_i32_0 = arith.constant 0 : i32
    return %arg0, %c0_i32 : i32, i32
  }
  func.func @transform_2(%arg0: i32) -> (i32, i32) {
    %c0_i32 = arith.constant 0 : i32
    %c0_i32_0 = arith.constant 0 : i32
    return %arg0, %c0_i32 : i32, i32
  }
  func.func @transform_3(%arg0: i32) -> (i32, i32) {
    %c0_i32 = arith.constant 0 : i32
    %c0_i32_0 = arith.constant 0 : i32
    %c0_i32_1 = arith.constant 0 : i32
    return %c0_i32, %c0_i32_0 : i32, i32
  }
  func.func @transform_4(%arg0: i32) -> (i32, i32) {
    %c0_i32 = arith.constant 0 : i32
    %c0_i32_0 = arith.constant 0 : i32
    %c0_i32_1 = arith.constant 0 : i32
    return %c0_i32, %c0_i32_0 : i32, i32
  }
  func.func @transform_5(%arg0: i32) -> (i32, i32) {
    %c0_i32 = arith.constant 0 : i32
    %c0_i32_0 = arith.constant 0 : i32
    %c0_i32_1 = arith.constant 0 : i32
    return %c0_i32, %c0_i32_0 : i32, i32
  }
  func.func @transform_6(%arg0: i32) -> (i32, i32) {
    %c0_i32 = arith.constant 0 : i32
    %c0_i32_0 = arith.constant 0 : i32
    %c0_i32_1 = arith.constant 0 : i32
    return %c0_i32, %c0_i32_0 : i32, i32
  }
  func.func @transform_7(%arg0: i32) -> (i32, i32, i32) {
    %c0_i32 = arith.constant 0 : i32
    %c0_i32_0 = arith.constant 0 : i32
    %c0_i32_1 = arith.constant 0 : i32
    return %arg0, %c0_i32, %c0_i32_0 : i32, i32, i32
  }
}

</mosaic_0001>

<bundles_post_ra>
// kernel: task_encoder_qmix.1
= control target key start
LH: loop header
LB: loop body
LE: loop exit
PB: predicated region body
PF: predicated region fallthrough
CT: control target
= control target key end

     0   :  { %vm97_vm0 = vcmask 392192   ;;  %v4070_v3 = vmov 0   ;;  %v6644_v4 = vmov 0.0   ;;  %v4072_v7 = vmov 1   ;;  %s4075_s22 = smov 32   ;;  %s4076_s29 = smov 96   ;;  %s6634_s3 = inlined_call_operand.vmem [shape: f32[48,32], index: 3, kind: input, shape index: {}]   ;;  %s6635_s1 = inlined_call_operand.vmem [shape: f32[150,48], index: 1, kind: input, shape index: {}]   ;;  %s6636_s0 = inlined_call_operand.vmem [shape: f32[150,4], index: 0, kind: input, shape index: {}]   ;;  %s6637_s4 = inlined_call_operand.vmem [shape: f32[64,192], index: 4, kind: input, shape index: {}]   ;;  %s6638_s2 = inlined_call_operand.vmem [shape: f32[150,32], index: 2, kind: input, shape index: {}]   ;;  %s6639_s6 = inlined_call_operand.vmem [shape: f32[8,192], index: 6, kind: input, shape index: {}]   ;;  %s6640_s5 = inlined_call_operand.vmem [shape: f32[128,160], index: 5, kind: input, shape index: {}]   ;;  %s6641_s7 = inlined_call_operand.vmem [shape: f32[1,1,256], index: 7, kind: output, shape index: {}]  }
   0x1   :  { %v90_v0 = vld [vmem:[%s6634_s3] sm:$0xff]  ;;  %v91_v1 = vld [vmem:[%s6634_s3 + $0x8] sm:$0xff]  ;;  %v92_v2 = vld [vmem:[%s6634_s3 + $0x10] sm:$0xff]  ;;  %3997 = vset.pattern.permute.xlu1 %v4070_v3  ;;  %628 = vmatprep.mubr.f32.mxu1 %v6644_v4  ;;  %vm467_vm1 = vcmask 261120  }
   0x2   :  { %v3816_v5 = vpack.c.bf16 %v91_v1, %v90_v0  ;;  %v93_v6 = vld [vmem:[%s6634_s3 + $0x18] sm:$0xff]  ;;  %3998 = vset.pattern.permute.xlu0 %v4072_v7  ;;  %v94_v9 = vld [vmem:[%s6634_s3 + $0x20] sm:$0xff]  ;;  %v95_v10 = vld [vmem:[%s6634_s3 + $0x28] sm:$0xff] }
   0x3   :  { %v3820_v8 = vpack.c.bf16 %v93_v6, %v92_v2  ;;  %v26_v11 = vld [vmem:[%s6635_s1] sm:$0xff]  ;;  %v3824_v12 = vpack.c.bf16 %v95_v10, %v94_v9  ;;  %v4147_v13 = vld [vmem:[%s6636_s0 + $0x10] sm:$0xff]  ;;  %v4153_v14 = vld [vmem:[%s6636_s0 + $0x18] sm:$0xff] }
   0x4   :  { %3817 = vmatprep.subr.bf16.mxu0 %v3816_v5  ;;  %3768 = vmatprep.mubr.msk.f32.mxu0 %vm97_vm0, %v26_v11  ;;  %v460_v15 = vld [vmem:[%s6637_s4 + $0x48] sm:$0xff]  ;;  %v462_v16 = vld [vmem:[%s6637_s4 + $0x58] sm:$0xff]  ;;  %v459_v17 = vld [vmem:[%s6637_s4 + $0x40] sm:$0xff] }
   0x5   :  { %3819 = vmatpush3.bf16.msra.mxu0 %v3816_v5  ;;  %1725 = vperm.xlu1 %3997, %v4147_v13   ;;  %v27_v18 = vld [vmem:[%s6635_s1 + $0x8] sm:$0xff]  ;;  %v3828_v19 = vpack.c.bf16 %v462_v16, %v460_v15  ;;  %v461_v20 = vld [vmem:[%s6637_s4 + $0x50] sm:$0xff]  ;;  %v466_v23 = vld [vmem:[%s6637_s4 + $0x78] sm:$0xff] }
   0x6   :  { %3821 = vmatprep.subr.bf16.mxu0 %v3820_v8  ;;  %v464_v21 = vld [vmem:[%s6637_s4 + $0x68] sm:$0xff]  ;;  %v3830_v22 = vpack.c.bf16 %v461_v20, %v459_v17  ;;  %v463_v24 = vld [vmem:[%s6637_s4 + $0x60] sm:$0xff]  ;;  %v465_v25 = vld [vmem:[%s6637_s4 + $0x70] sm:$0xff] }
   0x7   :  { %v28_v26 = vld [vmem:[%s6635_s1 + $0x10] sm:$0xff]  ;;  %3829 = vmatprep.subr.bf16.mxu1 %v3828_v19  ;;  %v3832_v27 = vpack.c.bf16 %v466_v23, %v464_v21  ;;  %v4189_v28 = vld [vmem:[%s6636_s0 + $0x28] sm:$0xff]  ;;  %v3834_v29 = vpack.c.bf16 %v465_v25, %v463_v24  ;;  %v29_v30 = vld [vmem:[%s6635_s1 + $0x18] sm:$0xff] }
   0x8   :  { %3831 = vmatpush1.bf16.msra.mxu1 %v3830_v22  ;;  %v30_v31 = vld [vmem:[%s6635_s1 + $0x20] sm:$0xff]  ;;  %v4203_v32 = vld [vmem:[%s6636_s0 + $0x38] sm:$0xff]  ;;  %v31_v34 = vld [vmem:[%s6635_s1 + $0x28] sm:$0xff] }
   0x9   :  { %3823 = vmatpush3.bf16.msra.mxu0 %v3820_v8  ;;  %1730 = vperm.xlu1 %3997, %v4153_v14   ;;  %v58_v33 = vld [vmem:[%s6638_s2] sm:$0xff]  ;;  %v32_v35 = vld [vmem:[%s6635_s1 + $0x30] sm:$0xff]  ;;  %v4221_v36 = vld [vmem:[%s6636_s0 + $0x48] sm:$0xff] }
   0xa   :  { %3825 = vmatprep.subr.bf16.mxu0 %v3824_v12  ;;  %3833 = vmatprep.subr.bf16.mxu1 %v3832_v27  ;;  %v59_v37 = vld [vmem:[%s6638_s2 + $0x8] sm:$0xff]  ;;  %v33_v38 = vld [vmem:[%s6635_s1 + $0x38] sm:$0xff]  ;;  %v34_v39 = vld [vmem:[%s6635_s1 + $0x40] sm:$0xff] }
   0xb   :  { %v4240_v40 = vld [vmem:[%s6636_s0 + $0x58] sm:$0xff]  ;;  %v60_v41 = vld [vmem:[%s6638_s2 + $0x10] sm:$0xff]  ;;  %v452_v42 = vld [vmem:[%s6637_s4 + $0x8] sm:$0xff] }
   0xc   :  { %3835 = vmatpush1.bf16.msra.mxu1 %v3834_v29  ;;  %v454_v43 = vld [vmem:[%s6637_s4 + $0x18] sm:$0xff]  ;;  %v451_v44 = vld [vmem:[%s6637_s4] sm:$0xff]  ;;  %v453_v45 = vld [vmem:[%s6637_s4 + $0x10] sm:$0xff] }
   0xd   :  { %3827 = vmatpush3.bf16.msra.mxu0 %v3824_v12  ;;  %1740 = vperm.xlu1 %3997, %v4189_v28   ;;  %v35_v46 = vld [vmem:[%s6635_s1 + $0x48] sm:$0xff]  ;;  %v3836_v47 = vpack.c.bf16 %v454_v43, %v452_v42  ;;  %v3838_v48 = vpack.c.bf16 %v453_v45, %v451_v44  ;;  %v36_v49 = vld [vmem:[%s6635_s1 + $0x50] sm:$0xff]  ;;  %v61_v51 = vld [vmem:[%s6638_s2 + $0x18] sm:$0xff] }
   0xe   :  { %v4271_v50 = vld [vmem:[%s6636_s0 + $0x68] sm:$0xff]  ;;  %v4281_v52 = vld [vmem:[%s6636_s0] sm:$0xff]  ;;  %v37_v53 = vld [vmem:[%s6635_s1 + $0x58] sm:$0xff] }
   0xf   :  { %3553 = vmatmul.mubr.msk.f32.vlgmr.msra.gmra.mrb[0].mxu1 %vm467_vm1, %v58_v33  ;;  %3837 = vmatprep.subr.bf16.mxu1 %v3836_v47  ;;  %v38_v54 = vld [vmem:[%s6635_s1 + $0x60] sm:$0xff]  ;;  %v4296_v55 = vld [vmem:[%s6636_s0 + $0x78] sm:$0xff]  ;;  %v39_v57 = vld [vmem:[%s6635_s1 + $0x68] sm:$0xff] }
  0x10   :  { %3769 = vmatmul.mubr.msk.f32.vlgmr.msra.gmra.mrb[0].mxu0 %vm97_vm0, %v27_v18  ;;  %634 = vmatprep.mubr.f32.mxu1 %v6644_v4  ;;  %v62_v56 = vld [vmem:[%s6638_s2 + $0x20] sm:$0xff]  ;;  %v40_v58 = vld [vmem:[%s6635_s1 + $0x70] sm:$0xff]  ;;  %v4316_v59 = vld [vmem:[%s6636_s0 + $0x88] sm:$0xff] }
  0x11   :  { %3771 = vmatprep.mubr.msk.f32.mxu0 %vm97_vm0, %v28_v26  ;;  %1750 = vperm.xlu1 %3997, %v4203_v32   ;;  %v63_v60 = vld [vmem:[%s6638_s2 + $0x28] sm:$0xff]  ;;  %v41_v61 = vld [vmem:[%s6635_s1 + $0x78] sm:$0xff]  ;;  %v42_v62 = vld [vmem:[%s6635_s1 + $0x80] sm:$0xff] }
  0x12   :  { %3839 = vmatpush1.bf16.msra.mxu1 %v3838_v48  ;;  %1906 = vperm.xlu0 %3998, %v4281_v52   ;;  %v4336_v63 = vld [vmem:[%s6636_s0 + $0x98] sm:$0xff]  ;;  %v64_v0 = vld [vmem:[%s6638_s2 + $0x30] sm:$0xff]  ;;  %v43_v1 = vld [vmem:[%s6635_s1 + $0x88] sm:$0xff] }
  0x13   :  { %3554 = vmatmul.mubr.msk.f32.gmra.mrb[2].mxu1 %vm467_vm1, %v59_v37  ;;  %v44_v2 = vld [vmem:[%s6635_s1 + $0x90] sm:$0xff]  ;;  %v4356_v5 = vld [vmem:[%s6636_s0 + $0xa8] sm:$0xff]  ;;  %v65_v6 = vld [vmem:[%s6638_s2 + $0x38] sm:$0xff] }
  0x14   :  { %3772 = vmatmul.mubr.msk.f32.gmra.mrb[2].mxu0 %vm97_vm0, %v29_v30  ;;  %640 = vmatprep.mubr.f32.mxu1 %v6644_v4  ;;  %v45_v8 = vld [vmem:[%s6635_s1 + $0x98] sm:$0xff]  ;;  %v46_v9 = vld [vmem:[%s6635_s1 + $0xa0] sm:$0xff]  ;;  %v47_v12 = vld [vmem:[%s6635_s1 + $0xa8] sm:$0xff] }
  0x15   :  { %3774 = vmatprep.mubr.msk.f32.mxu0 %vm97_vm0, %v30_v31  ;;  %1760 = vperm.xlu1 %3997, %v4221_v36   ;;  %v4376_v10 = vld [vmem:[%s6636_s0 + $0xb8] sm:$0xff]  ;;  %v66_v11 = vld [vmem:[%s6638_s2 + $0x40] sm:$0xff]  ;;  %v48_v15 = vld [vmem:[%s6635_s1 + $0xb0] sm:$0xff] }
  0x16   :  { %1918 = vperm.xlu0 %3998, %v4153_v14   ;;  %v4396_v16 = vld [vmem:[%s6636_s0 + $0xc8] sm:$0xff]  ;;  %v49_v18 = vld [vmem:[%s6635_s1 + $0xb8] sm:$0xff]  ;;  %v50_v19 = vld [vmem:[%s6635_s1 + $0xc0] sm:$0xff] }
  0x17   :  { %3555 = vmatmul.mubr.msk.f32.gmra.mrb[4].mxu1 %vm467_vm1, %v60_v41  ;;  %v67_v17 = vld [vmem:[%s6638_s2 + $0x48] sm:$0xff]  ;;  %v4416_v20 = vld [vmem:[%s6636_s0 + $0xd8] sm:$0xff]  ;;  %v68_v21 = vld [vmem:[%s6638_s2 + $0x50] sm:$0xff] }
  0x18   :  { %3775 = vmatmul.mubr.msk.f32.gmra.mrb[4].mxu0 %vm97_vm0, %v31_v34  ;;  %646 = vmatprep.mubr.f32.mxu1 %v6644_v4  ;;  %v51_v22 = vld [vmem:[%s6635_s1 + $0xc8] sm:$0xff]  ;;  %v52_v23 = vld [vmem:[%s6635_s1 + $0xd0] sm:$0xff]  ;;  %v69_v25 = vld [vmem:[%s6638_s2 + $0x58] sm:$0xff] }
  0x19   :  { %3777 = vmatprep.mubr.msk.f32.mxu0 %vm97_vm0, %v32_v35  ;;  %1770 = vperm.xlu1 %3997, %v4240_v40   ;;  %v4436_v24 = vld [vmem:[%s6636_s0 + $0xe8] sm:$0xff]  ;;  %v53_v26 = vld [vmem:[%s6635_s1 + $0xd8] sm:$0xff]  ;;  %v54_v27 = vld [vmem:[%s6635_s1 + $0xe0] sm:$0xff] }
  0x1a   :  { %1926 = vperm.xlu0 %3998, %v4189_v28   ;;  %v4456_v29 = vld [vmem:[%s6636_s0 + $0xf8] sm:$0xff]  ;;  %v70_v30 = vld [vmem:[%s6638_s2 + $0x60] sm:$0xff]  ;;  %v55_v31 = vld [vmem:[%s6635_s1 + $0xe8] sm:$0xff] }
  0x1b   :  { %3556 = vmatmul.mubr.msk.f32.gmra.mrb[6].mxu1 %vm467_vm1, %v61_v51  ;;  %v56_v33 = vld [vmem:[%s6635_s1 + $0xf0] sm:$0xff]  ;;  %v71_v34 = vld [vmem:[%s6638_s2 + $0x68] sm:$0xff]  ;;  %v57_v37 = vld [vmem:[%s6635_s1 + $0xf8] sm:$0xff] }
  0x1c   :  { %3778 = vmatmul.mubr.msk.f32.gmra.mrb[6].mxu0 %vm97_vm0, %v33_v38  ;;  %652 = vmatprep.mubr.f32.mxu1 %v6644_v4  ;;  %v4481_v35 = vld [vmem:[%s6636_s0 + $0x8] sm:$0xff]  ;;  %v72_v38 = vld [vmem:[%s6638_s2 + $0x70] sm:$0xff]  ;;  %v74_v41 = vld [vmem:[%s6638_s2 + $0x80] sm:$0xff] }
  0x1d   :  { %3780 = vmatprep.mubr.msk.f32.mxu0 %vm97_vm0, %v34_v39  ;;  %1780 = vperm.xlu1 %3997, %v4271_v50   ;;  %v4507_v39 = vld [vmem:[%s6636_s0 + $0x20] sm:$0xff]  ;;  %v4519_v42 = vld [vmem:[%s6636_s0 + $0x30] sm:$0xff]  ;;  %v75_v43 = vld [vmem:[%s6638_s2 + $0x88] sm:$0xff] }
  0x1e   :  { %1934 = vperm.xlu0 %3998, %v4203_v32   ;;  %v4531_v44 = vld [vmem:[%s6636_s0 + $0x40] sm:$0xff]  ;;  %v76_v45 = vld [vmem:[%s6638_s2 + $0x90] sm:$0xff]  ;;  %v77_v47 = vld [vmem:[%s6638_s2 + $0x98] sm:$0xff] }
  0x1f   :  { %3557 = vmatmul.mubr.msk.f32.gmra.mrb[8].mxu1 %vm467_vm1, %v62_v56  ;;  %v4555_v48 = vld [vmem:[%s6636_s0 + $0x60] sm:$0xff]  ;;  %v456_v51 = vld [vmem:[%s6637_s4 + $0x28] sm:$0xff] }
  0x20   :  { %3781 = vmatmul.mubr.msk.f32.gmra.mrb[8].mxu0 %vm97_vm0, %v35_v46  ;;  %658 = vmatprep.mubr.f32.mxu1 %v6644_v4  ;;  %v4543_v46 = vld [vmem:[%s6636_s0 + $0x50] sm:$0xff] }
  0x21   :  { %3783 = vmatprep.mubr.msk.f32.mxu0 %vm97_vm0, %v36_v49  ;;  %1790 = vperm.xlu1 %3997, %v4296_v55   ;;  %v4073_v49 = vmov 2  }
  0x22   :  { %1942 = vperm.xlu0 %3998, %v4221_v36  }
  0x23   :  { %3558 = vmatmul.mubr.msk.f32.gmra.mrb[10].mxu1 %vm467_vm1, %v63_v60  ;;  %v4580_v60 = vld [vmem:[%s6636_s0 + $0x70] sm:$0xff] }
  0x24   :  { %3784 = vmatmul.mubr.msk.f32.gmra.mrb[10].mxu0 %vm97_vm0, %v37_v53  ;;  %664 = vmatprep.mubr.f32.mxu1 %v6644_v4  ;;  %v458_v53 = vld [vmem:[%s6637_s4 + $0x38] sm:$0xff] }
  0x25   :  { %3786 = vmatprep.mubr.msk.f32.mxu0 %vm97_vm0, %v38_v54  ;;  %1800 = vperm.xlu1 %3997, %v4316_v59   ;;  %v78_v54 = vld [vmem:[%s6638_s2 + $0xa0] sm:$0xff]  ;;  %v3840_v56 = vpack.c.bf16 %v458_v53, %v456_v51  ;;  %v4074_v51 = vmov 3  }
  0x26   :  { %1950 = vperm.xlu0 %3998, %v4240_v40  }
  0x27   :  { %3559 = vmatmul.mubr.msk.f32.gmra.mrb[12].mxu1 %vm467_vm1, %v64_v0  ;;  %3841 = vmatprep.subr.bf16.mxu1 %v3840_v56  ;;  %v4592_v0 = vld [vmem:[%s6636_s0 + $0x80] sm:$0xff] }
  0x28   :  { %3787 = vmatmul.mubr.msk.f32.gmra.mrb[12].mxu0 %vm97_vm0, %v39_v57  ;;  %670 = vmatprep.mubr.f32.mxu1 %v6644_v4  ;;  %v455_v57 = vld [vmem:[%s6637_s4 + $0x20] sm:$0xff] }
  0x29   :  { %3789 = vmatprep.mubr.msk.f32.mxu0 %vm97_vm0, %v40_v58  ;;  %1810 = vperm.xlu1 %3997, %v4336_v63   ;;  %v457_v58 = vld [vmem:[%s6637_s4 + $0x30] sm:$0xff] }
  0x2a   :  { %1958 = vperm.xlu0 %3998, %v4271_v50  }
  0x2b   :  { %3560 = vmatmul.mubr.msk.f32.gmra.mrb[14].mxu1 %vm467_vm1, %v65_v6 }
  0x2c   :  { %3790 = vmatmul.mubr.msk.f32.gmra.mrb[14].mxu0 %vm97_vm0, %v41_v61  ;;  %676 = vmatprep.mubr.f32.mxu1 %v6644_v4  ;;  %v3842_v61 = vpack.c.bf16 %v457_v58, %v455_v57 }
  0x2d   :  { %3792 = vmatprep.mubr.msk.f32.mxu0 %vm97_vm0, %v42_v62  ;;  %1820 = vperm.xlu1 %3997, %v4356_v5   ;;  %v79_v62 = vld [vmem:[%s6638_s2 + $0xa8] sm:$0xff] }
  0x2e   :  { %1966 = vperm.xlu0 %3998, %v4296_v55   ;;  %3843 = vmatpush1.bf16.msra.mxu1 %v3842_v61 }
  0x2f   :  { %3561 = vmatmul.mubr.msk.f32.gmra.mrb[16].mxu1 %vm467_vm1, %v66_v11 }
  0x30   :  { %3793 = vmatmul.mubr.msk.f32.gmra.mrb[16].mxu0 %vm97_vm0, %v43_v1  ;;  %682 = vmatprep.mubr.f32.mxu1 %v6644_v4  ;;  %v6642_v1 = vlaneseq }
  0x31   :  { %3795 = vmatprep.mubr.msk.f32.mxu0 %vm97_vm0, %v44_v2  ;;  %1830 = vperm.xlu1 %3997, %v4376_v10   ;;  %v80_v2 = vld [vmem:[%s6638_s2 + $0xb0] sm:$0xff] }
  0x32   :  { %1974 = vperm.xlu0 %3998, %v4316_v59   ;;  %v4602_v6 = vshrl.u32 %v6642_v1, 7  ;;  %v1285_v1 = vld [vmem:[%s6640_s5 + $0x10] sm:$0xff] }
  0x33   :  { %3562 = vmatmul.mubr.msk.f32.gmra.mrb[18].mxu1 %vm467_vm1, %v67_v17 }
  0x34   :  { %3796 = vmatmul.mubr.msk.f32.gmra.mrb[18].mxu0 %vm97_vm0, %v45_v8  ;;  %688 = vmatprep.mubr.f32.mxu1 %v6644_v4  ;;  %6686 = vst [vmem:[#allocation2_spill] sm:$0xff] %v4602_v6  ;;  %v4607_v8 = vld [vmem:[%s6636_s0 + $0x90] sm:$0xff]  ;;  %v6643_v11 = vsub.s32 1, %v4602_v6 }
  0x35   :  { %3798 = vmatprep.mubr.msk.f32.mxu0 %vm97_vm0, %v46_v9  ;;  %1840 = vperm.xlu1 %3997, %v4396_v16   ;;  %v3618_v9 = vld [vmem:[%s6639_s6 + $0x2] ss:$8 sm:$0x3] }
  0x36   :  { %1982 = vperm.xlu0 %3998, %v4336_v63   ;;  %v4627_v17 = vrot.slane %v3618_v9, %v6643_v11  ;;  %v1288_v11 = vld [vmem:[%s6640_s5 + $0x28] sm:$0xff] }
  0x37   :  { %3563 = vmatmul.mubr.msk.f32.gmra.mrb[20].mxu1 %vm467_vm1, %v68_v21  ;;  %v83_v21 = vld [vmem:[%s6638_s2 + $0xc8] sm:$0xff] }
  0x38   :  { %3799 = vmatmul.mubr.msk.f32.gmra.mrb[20].mxu0 %vm97_vm0, %v47_v12  ;;  %694 = vmatprep.mubr.f32.mxu1 %v6644_v4  ;;  %v81_v12 = vld [vmem:[%s6638_s2 + $0xb8] sm:$0xff] }
  0x39   :  { %3801 = vmatprep.mubr.msk.f32.mxu0 %vm97_vm0, %v48_v15  ;;  %1850 = vperm.xlu1 %3997, %v4416_v20   ;;  %v4623_v15 = vld [vmem:[%s6636_s0 + $0xa0] sm:$0xff] }
  0x3a   :  { %1990 = vperm.xlu0 %3998, %v4356_v5  }
  0x3b   :  { %3564 = vmatmul.mubr.msk.f32.gmra.mrb[22].mxu1 %vm467_vm1, %v69_v25  ;;  %v4663_v25 = vld [vmem:[%s6636_s0 + $0xd0] sm:$0xff] }
  0x3c   :  { %3802 = vmatmul.mubr.msk.f32.gmra.mrb[22].mxu0 %vm97_vm0, %v49_v18  ;;  %700 = vmatprep.mubr.f32.mxu1 %v6644_v4  ;;  %v82_v18 = vld [vmem:[%s6638_s2 + $0xc0] sm:$0xff] }
  0x3d   :  { %3804 = vmatprep.mubr.msk.f32.mxu0 %vm97_vm0, %v50_v19  ;;  %1860 = vperm.xlu1 %3997, %v4436_v24   ;;  %v4639_v19 = vld [vmem:[%s6636_s0 + $0xb0] sm:$0xff] }
  0x3e   :  { %1998 = vperm.xlu0 %3998, %v4376_v10  }
  0x3f   :  { %3565 = vmatmul.mubr.msk.f32.gmra.mrb[24].mxu1 %vm467_vm1, %v70_v30  ;;  %v86_v30 = vld [vmem:[%s6638_s2 + $0xe0] sm:$0xff] }
  0x40   :  { %3805 = vmatmul.mubr.msk.f32.gmra.mrb[24].mxu0 %vm97_vm0, %v51_v22  ;;  %706 = vmatprep.mubr.f32.mxu1 %v6644_v4  ;;  %v4651_v22 = vld [vmem:[%s6636_s0 + $0xc0] sm:$0xff] }
  0x41   :  { %3807 = vmatprep.mubr.msk.f32.mxu0 %vm97_vm0, %v52_v23  ;;  %1870 = vperm.xlu1 %3997, %v4456_v29   ;;  %v84_v23 = vld [vmem:[%s6638_s2 + $0xd0] sm:$0xff] }
  0x42   :  { %2006 = vperm.xlu0 %3998, %v4396_v16  }
  0x43   :  { %3566 = vmatmul.mubr.msk.f32.gmra.mrb[26].mxu1 %vm467_vm1, %v71_v34 }
  0x44   :  { %3808 = vmatmul.mubr.msk.f32.gmra.mrb[26].mxu0 %vm97_vm0, %v53_v26  ;;  %712 = vmatprep.mubr.f32.mxu1 %v6644_v4  ;;  %v85_v26 = vld [vmem:[%s6638_s2 + $0xd8] sm:$0xff] }
  0x45   :  { %3810 = vmatprep.mubr.msk.f32.mxu0 %vm97_vm0, %v54_v27  ;;  %3999 = vset.pattern.permute.xlu1 %v4072_v7  ;;  %v73_v7 = vld [vmem:[%s6638_s2 + $0x78] sm:$0xff]  ;;  %v4675_v27 = vld [vmem:[%s6636_s0 + $0xe0] sm:$0xff] }
  0x46   :  { %1910 = vperm.xlu1 %3999, %v4481_v35   ;;  %2014 = vperm.xlu0 %3998, %v4416_v20  }
  0x47   :  { %3567 = vmatmul.mubr.msk.f32.gmra.mrb[28].mxu1 %vm467_vm1, %v72_v38 }
  0x48   :  { %3811 = vmatmul.mubr.msk.f32.gmra.mrb[28].mxu0 %vm97_vm0, %v55_v31  ;;  %718 = vmatprep.mubr.f32.mxu1 %v6644_v4  ;;  %v4687_v31 = vld [vmem:[%s6636_s0 + $0xf0] sm:$0xff] }
  0x49   :  { %3813 = vmatprep.mubr.msk.f32.mxu0 %vm97_vm0, %v56_v33  ;;  %v87_v33 = vld [vmem:[%s6638_s2 + $0xe8] sm:$0xff] }
  0x4a   :  { %1914 = vperm.xlu1 %3999, %v4147_v13   ;;  %2022 = vperm.xlu0 %3998, %v4436_v24  }
  0x4b   :  { %3568 = vmatmul.mubr.msk.f32.gmra.mrb[30].mxu1 %vm467_vm1, %v73_v7  ;;  %v89_v7 = vld [vmem:[%s6638_s2 + $0xf8] sm:$0xff] }
  0x4c   :  { %3814 = vmatmul.mubr.msk.f32.gmra.mrb[30].mxu0 %vm97_vm0, %v57_v37  ;;  %724 = vmatprep.mubr.f32.mxu1 %v6644_v4  ;;  %v88_v37 = vld [vmem:[%s6638_s2 + $0xf0] sm:$0xff] }
  0x4d   :  { %1392 = vmatprep.mubr.f32.mxu0 %v6644_v4 }
  0x4e   :  { %1922 = vperm.xlu1 %3999, %v4507_v39   ;;  %2030 = vperm.xlu0 %3998, %v4456_v29  }
  0x4f   :  { %3569 = vmatmul.mubr.msk.f32.gmra.mrb[32].mxu1 %vm467_vm1, %v74_v41 }
  0x50   :  { %730 = vmatprep.mubr.f32.mxu1 %v6644_v4 }
  0x52   :  { %1930 = vperm.xlu1 %3999, %v4519_v42   ;;  %4001 = vset.pattern.permute.xlu0 %v4073_v49 }
  0x53   :  { %3570 = vmatmul.mubr.msk.f32.gmra.mrb[34].mxu1 %vm467_vm1, %v75_v43  ;;  %2070 = vperm.xlu0 %4001, %v4481_v35  }
  0x54   :  { %736 = vmatprep.mubr.f32.mxu1 %v6644_v4 }
  0x56   :  { %1938 = vperm.xlu1 %3999, %v4531_v44  }
  0x57   :  { %3571 = vmatmul.mubr.msk.f32.gmra.mrb[36].mxu1 %vm467_vm1, %v76_v45  ;;  %2082 = vperm.xlu0 %4001, %v4507_v39  }
  0x58   :  { %742 = vmatprep.mubr.f32.mxu1 %v6644_v4 }
  0x5a   :  { %1946 = vperm.xlu1 %3999, %v4543_v46  }
  0x5b   :  { %3572 = vmatmul.mubr.msk.f32.gmra.mrb[38].mxu1 %vm467_vm1, %v77_v47  ;;  %2134 = vperm.xlu0 %4001, %v4316_v59  }
  0x5c   :  { %748 = vmatprep.mubr.f32.mxu1 %v6644_v4 }
  0x5e   :  { %1954 = vperm.xlu1 %3999, %v4555_v48  }
  0x5f   :  { %3573 = vmatmul.mubr.msk.f32.gmra.mrb[40].mxu1 %vm467_vm1, %v78_v54  ;;  %2142 = vperm.xlu0 %4001, %v4336_v63  }
  0x60   :  { %754 = vmatprep.mubr.f32.mxu1 %v6644_v4 }
  0x62   :  { %1962 = vperm.xlu1 %3999, %v4580_v60  }
  0x63   :  { %3574 = vmatmul.mubr.msk.f32.gmra.mrb[42].mxu1 %vm467_vm1, %v79_v62  ;;  %2150 = vperm.xlu0 %4001, %v4356_v5  }
  0x64   :  { %760 = vmatprep.mubr.f32.mxu1 %v6644_v4 }
  0x66   :  { %1970 = vperm.xlu1 %3999, %v4592_v0  }
  0x67   :  { %3575 = vmatmul.mubr.msk.f32.gmra.mrb[44].mxu1 %vm467_vm1, %v80_v2  ;;  %2154 = vperm.xlu0 %4001, %v4639_v19  }
  0x68   :  { %766 = vmatprep.mubr.f32.mxu1 %v6644_v4 }
  0x6a   :  { %1978 = vperm.xlu1 %3999, %v4607_v8  }
  0x6b   :  { %3576 = vmatmul.mubr.msk.f32.gmra.mrb[46].mxu1 %vm467_vm1, %v81_v12  ;;  %2090 = vperm.xlu0 %4001, %v4519_v42  }
  0x6c   :  { %772 = vmatprep.mubr.f32.mxu1 %v6644_v4 }
  0x6e   :  { %1986 = vperm.xlu1 %3999, %v4623_v15  }
  0x6f   :  { %3577 = vmatmul.mubr.msk.f32.gmra.mrb[48].mxu1 %vm467_vm1, %v82_v18  ;;  %2162 = vperm.xlu0 %4001, %v4651_v22   ;;  %v4803_v18 = vld [vmem:[%s6639_s6] ss:$0 sm:$0xff] }
  0x70   :  { %778 = vmatprep.mubr.f32.mxu1 %v6644_v4 }
  0x72   :  { %1994 = vperm.xlu1 %3999, %v4639_v19  }
  0x73   :  { %3578 = vmatmul.mubr.msk.f32.gmra.mrb[50].mxu1 %vm467_vm1, %v83_v21  ;;  %2098 = vperm.xlu0 %4001, %v4531_v44  }
  0x74   :  { %784 = vmatprep.mubr.f32.mxu1 %v6644_v4 }
  0x76   :  { %2002 = vperm.xlu1 %3999, %v4651_v22  }
  0x77   :  { %3579 = vmatmul.mubr.msk.f32.gmra.mrb[52].mxu1 %vm467_vm1, %v84_v23  ;;  %2170 = vperm.xlu0 %4001, %v4663_v25  }
  0x78   :  { %790 = vmatprep.mubr.f32.mxu1 %v6644_v4 }
  0x7a   :  { %2010 = vperm.xlu1 %3999, %v4663_v25  }
  0x7b   :  { %3580 = vmatmul.mubr.msk.f32.gmra.mrb[54].mxu1 %vm467_vm1, %v85_v26  ;;  %2106 = vperm.xlu0 %4001, %v4543_v46  }
  0x7c   :  { %796 = vmatprep.mubr.f32.mxu1 %v6644_v4 }
  0x7e   :  { %2018 = vperm.xlu1 %3999, %v4675_v27  }
  0x7f   :  { %3581 = vmatmul.mubr.msk.f32.gmra.mrb[56].mxu1 %vm467_vm1, %v86_v30  ;;  %2178 = vperm.xlu0 %4001, %v4675_v27   ;;  %v1284_v30 = vld [vmem:[%s6640_s5 + $0x8] sm:$0xff] }
  0x80   :  { %802 = vmatprep.mubr.f32.mxu1 %v6644_v4 }
  0x82   :  { %2026 = vperm.xlu1 %3999, %v4687_v31  }
  0x83   :  { %3582 = vmatmul.mubr.msk.f32.gmra.mrb[58].mxu1 %vm467_vm1, %v87_v33  ;;  %2114 = vperm.xlu0 %4001, %v4555_v48   ;;  %v1286_v33 = vld [vmem:[%s6640_s5 + $0x18] sm:$0xff] }
  0x84   :  { %v4696_v34 = vpop.permute.xlu1 %1725  ;;  %808 = vmatprep.mubr.f32.mxu1 %v6644_v4 }
  0x85   :  { %6687 = vst [vmem:[#allocation3_spill] sm:$0xff] %v4696_v34 }
  0x86   :  { %4000 = vset.pattern.permute.xlu1 %v4073_v49 }
  0x87   :  { %2066 = vperm.xlu1 %4000, %v4281_v52   ;;  %3583 = vmatmul.mubr.msk.f32.gmra.mrb[60].mxu1 %vm467_vm1, %v88_v37 }
  0x88   :  { %v4706_v38 = vpop.permute.xlu1 %1730  ;;  %814 = vmatprep.mubr.f32.mxu1 %v6644_v4  ;;  %2186 = vperm.xlu0 %4001, %v4687_v31  }
  0x89   :  { %6688 = vst [vmem:[#allocation4_spill] sm:$0xff] %v4706_v38 }
  0x8b   :  { %2074 = vperm.xlu1 %4000, %v4147_v13   ;;  %3584 = vmatmul.mubr.msk.f32.gmra.mrb[62].mxu1 %vm467_vm1, %v89_v7 }
  0x8c   :  { %v4715_v41 = vpop.permute.xlu1 %1740  ;;  %981 = vmatprep.mubr.f32.mxu1 %v6644_v4  ;;  %2122 = vperm.xlu0 %4001, %v4580_v60   ;;  %v1290_v4 = vld [vmem:[%s6640_s5 + $0x38] sm:$0xff] }
  0x8d   :  { %6689 = vst [vmem:[#allocation5_spill] sm:$0xff] %v4715_v41  ;;  %v6736_v41 = vsub.s32 1, %v4602_v6 }
  0x8f   :  { %2078 = vperm.xlu1 %4000, %v4153_v14  }
  0x90   :  { %v4721_v43 = vpop.permute.xlu1 %1750  ;;  %4002 = vset.pattern.permute.xlu0 %v4074_v51 }
  0x91   :  { %6690 = vst [vmem:[#allocation6_spill] sm:$0xff] %v4721_v43  ;;  %2290 = vperm.xlu0 %4002, %v4592_v0   ;;  %v4780_v61 = vpop.permute.xlu0 %1906 }
  0x92   :  { %6705 = vst [vmem:[#allocation21_spill] sm:$0xff] %v4780_v61 }
  0x93   :  { %2130 = vperm.xlu1 %4000, %v4592_v0  }
  0x94   :  { %v4725_v45 = vpop.permute.xlu1 %1760 }
  0x95   :  { %6691 = vst [vmem:[#allocation7_spill] sm:$0xff] %v4725_v45  ;;  %2230 = vperm.xlu0 %4002, %v4481_v35   ;;  %v4787_v2 = vpop.permute.xlu0 %1918 }
  0x96   :  { %6707 = vst [vmem:[#allocation23_spill] sm:$0xff] %v4787_v2 }
  0x97   :  { %2138 = vperm.xlu1 %4000, %v4607_v8  }
  0x98   :  { %v4729_v47 = vpop.permute.xlu1 %1770 }
  0x99   :  { %6692 = vst [vmem:[#allocation8_spill] sm:$0xff] %v4729_v47  ;;  %2302 = vperm.xlu0 %4002, %v4336_v63   ;;  %v3617_v47 = vld [vmem:[%s6639_s6 + $0x1] ss:$8 sm:$0x3] }
  0x9a   :  { %v5201_v38 = vrot.slane %v3617_v47, %v6736_v41 }
  0x9b   :  { %2146 = vperm.xlu1 %4000, %v4623_v15  }
  0x9c   :  { %v4732_v49 = vpop.permute.xlu1 %1780  ;;  %6737 = vst [vmem:[#allocation51_spill] sm:$0xff] %v5201_v38 }
  0x9d   :  { %6693 = vst [vmem:[#allocation9_spill] sm:$0xff] %v4732_v49  ;;  %2238 = vperm.xlu0 %4002, %v4153_v14   ;;  %v1297_v49 = vld [vmem:[%s6640_s5 + $0x70] sm:$0xff] }
  0x9f   :  { %2086 = vperm.xlu1 %4000, %v4189_v28  }
  0xa0   :  { %v4736_v53 = vpop.permute.xlu1 %1790 }
  0xa1   :  { %6694 = vst [vmem:[#allocation10_spill] sm:$0xff] %v4736_v53  ;;  %2310 = vperm.xlu0 %4002, %v4356_v5   ;;  %v3848_v53 = vpack.c.bf16 %v1290_v4, %v1288_v11  ;;  %v1292_v4 = vld [vmem:[%s6640_s5 + $0x48] sm:$0xff]  ;;  %v6714_v11 = vmov 0.0  }
  0xa3   :  { %2158 = vperm.xlu1 %4000, %v4376_v10  }
  0xa4   :  { %v4740_v54 = vpop.permute.xlu1 %1800 }
  0xa5   :  { %6695 = vst [vmem:[#allocation11_spill] sm:$0xff] %v4740_v54  ;;  %2246 = vperm.xlu0 %4002, %v4189_v28   ;;  %v6646_v54 = vsub.s32 0, %v4602_v6 }
  0xa7   :  { %2094 = vperm.xlu1 %4000, %v4203_v32   ;;  %v5195_v45 = vrot.slane %v3617_v47, %v6646_v54 }
  0xa8   :  { %v4744_v56 = vpop.permute.xlu1 %1810 }
  0xa9   :  { %6696 = vst [vmem:[#allocation12_spill] sm:$0xff] %v4744_v56  ;;  %2318 = vperm.xlu0 %4002, %v4376_v10  }
  0xab   :  { %2166 = vperm.xlu1 %4000, %v4396_v16  }
  0xac   :  { %v4748_v57 = vpop.permute.xlu1 %1820 }
  0xad   :  { %6697 = vst [vmem:[#allocation13_spill] sm:$0xff] %v4748_v57  ;;  %2254 = vperm.xlu0 %4002, %v4203_v32  }
  0xaf   :  { %2102 = vperm.xlu1 %4000, %v4221_v36  }
  0xb0   :  { %v4752_v58 = vpop.permute.xlu1 %1830 }
  0xb1   :  { %6698 = vst [vmem:[#allocation14_spill] sm:$0xff] %v4752_v58  ;;  %2322 = vperm.xlu0 %4002, %v4651_v22   ;;  %v1293_v58 = vld [vmem:[%s6640_s5 + $0x50] sm:$0xff] }
  0xb3   :  { %2174 = vperm.xlu1 %4000, %v4416_v20  }
  0xb4   :  { %v4756_v63 = vpop.permute.xlu1 %1840 }
  0xb5   :  { %6699 = vst [vmem:[#allocation15_spill] sm:$0xff] %v4756_v63  ;;  %2258 = vperm.xlu0 %4002, %v4531_v44   ;;  %v1291_v63 = vld [vmem:[%s6640_s5 + $0x40] sm:$0xff] }
  0xb7   :  { %2110 = vperm.xlu1 %4000, %v4240_v40  }
  0xb8   :  { %v4760_v14 = vpop.permute.xlu1 %1850 }
  0xb9   :  { %6700 = vst [vmem:[#allocation16_spill] sm:$0xff] %v4760_v14  ;;  %2330 = vperm.xlu0 %4002, %v4663_v25  }
  0xbb   :  { %2182 = vperm.xlu1 %4000, %v4436_v24  }
  0xbc   :  { %v4764_v5 = vpop.permute.xlu1 %1860 }
  0xbd   :  { %6701 = vst [vmem:[#allocation17_spill] sm:$0xff] %v4764_v5  ;;  %2266 = vperm.xlu0 %4002, %v4543_v46  }
  0xbf   :  { %2118 = vperm.xlu1 %4000, %v4271_v50  }
  0xc0   :  { %v4768_v28 = vpop.permute.xlu1 %1870 }
  0xc1   :  { %6702 = vst [vmem:[#allocation18_spill] sm:$0xff] %v4768_v28  ;;  %2338 = vperm.xlu0 %4002, %v4675_v27  }
  0xc3   :  { %2190 = vperm.xlu1 %4000, %v4456_v29  }
  0xc5   :  { %v4772_v10 = vpop.permute.xlu1 %1910  ;;  %2274 = vperm.xlu0 %4002, %v4555_v48  }
  0xc6   :  { %6703 = vst [vmem:[#allocation19_spill] sm:$0xff] %v4772_v10 }
  0xc7   :  { %2126 = vperm.xlu1 %4000, %v4296_v55  }
  0xc9   :  { %v4777_v32 = vpop.permute.xlu1 %1914  ;;  %2346 = vperm.xlu0 %4002, %v4687_v31  }
  0xca   :  { %6704 = vst [vmem:[#allocation20_spill] sm:$0xff] %v4777_v32 }
  0xcb   :  { %4003 = vset.pattern.permute.xlu1 %v4074_v51 }
  0xcc   :  { %2294 = vperm.xlu1 %4003, %v4316_v59   ;;  %v4794_v59 = vpop.permute.xlu0 %1926 }
  0xcd   :  { %v4783_v62 = vpop.permute.xlu1 %1922  ;;  %6709 = vst [vmem:[#allocation25_spill] sm:$0xff] %v4794_v59  ;;  %2282 = vperm.xlu0 %4002, %v4580_v60   ;;  %v4069_v59 = vld [vmem:[%s6639_s6 + $0x2] ss:$8 sm:$0x3] }
  0xce   :  { %6706 = vst [vmem:[#allocation22_spill] sm:$0xff] %v4783_v62  ;;  %v6778_v62 = vsub.s32 0, %v4602_v6 }
  0xd0   :  { %2226 = vperm.xlu1 %4003, %v4281_v52   ;;  %v4806_v23 = vpop.permute.xlu0 %1934  ;;  %v5455_v2 = vrot.slane %v4069_v59, %v6778_v62 }
  0xd1   :  { %v4791_v9 = vpop.permute.xlu1 %1930  ;;  %4004 = vset.pattern.permute.xlu0 %v4070_v3  ;;  %6711 = vst [vmem:[#allocation27_spill] sm:$0xff] %v4806_v23  ;;  %v1283_v3 = vld [vmem:[%s6640_s5] sm:$0xff] }
  0xd2   :  { %6708 = vst [vmem:[#allocation24_spill] sm:$0xff] %v4791_v9  ;;  %1715 = vperm.xlu0 %4004, %v4281_v52  }
  0xd4   :  { %2298 = vperm.xlu1 %4003, %v4607_v8   ;;  %v4842_v28 = vpop.permute.xlu0 %1942 }
  0xd5   :  { %v4797_v12 = vpop.permute.xlu1 %1938  ;;  %6713 = vst [vmem:[#allocation29_spill] sm:$0xff] %v4842_v28 }
  0xd6   :  { %6710 = vst [vmem:[#allocation26_spill] sm:$0xff] %v4797_v12  ;;  %1720 = vperm.xlu0 %4004, %v4481_v35   ;;  %v1287_v35 = vld [vmem:[%s6640_s5 + $0x20] sm:$0xff] }
  0xd8   :  { %2234 = vperm.xlu1 %4003, %v4147_v13  }
  0xd9   :  { %v4821_v51 = vpop.permute.xlu1 %1946 }
  0xda   :  { %6712 = vst [vmem:[#allocation28_spill] sm:$0xff] %v4821_v51  ;;  %1735 = vperm.xlu0 %4004, %v4507_v39  }
  0xdc   :  { %2306 = vperm.xlu1 %4003, %v4623_v15  }
  0xde   :  { %1745 = vperm.xlu0 %4004, %v4519_v42  }
  0xe0   :  { %2242 = vperm.xlu1 %4003, %v4507_v39   ;;  %v1296_v39 = vld [vmem:[%s6640_s5 + $0x68] sm:$0xff] }
  0xe2   :  { %1755 = vperm.xlu0 %4004, %v4531_v44   ;;  %v1304_v44 = vld [vmem:[%s6640_s5 + $0xa8] sm:$0xff] }
  0xe3   :  { %v3770_v21 = vpop.f32.mrb[0].mxu0 }
  0xe4   :  { %v260_v13 = vpop.f32.mrb[1].mxu0  ;;  %v266_v37 = vadd.f32 %v3770_v21, %v4803_v18  ;;  %2314 = vperm.xlu1 %4003, %v4639_v19  }
  0xe5   :  { %v261_v26 = vadd.f32 %v260_v13, %v4803_v18  ;;  %v3844_v13 = vpack.c.bf16 %v1286_v33, %v1284_v30  ;;  %v1289_v30 = vld [vmem:[%s6640_s5 + $0x30] sm:$0xff] }
  0xe6   :  { %1765 = vperm.xlu0 %4004, %v4543_v46   ;;  %v1308_v46 = vld [vmem:[%s6640_s5 + $0xc8] sm:$0xff] }
  0xe7   :  { %v419_v52 = vmax.f32 %v261_v26, 0.0  ;;  %v3773_v7 = vpop.f32.mrb[2].mxu0  ;;  %v3846_v26 = vpack.c.bf16 %v1285_v1, %v1283_v3  ;;  %v1294_v1 = vld [vmem:[%s6640_s5 + $0x58] sm:$0xff]  ;;  %3845 = vmatprep.subr.bf16.mxu0 %v3844_v13  ;;  %v420_v3 = vmax.f32 %v266_v37, 0.0  ;;  %v4859_v37 = vpop.permute.xlu1 %1954  ;;  %v3121_v13 = vld [vmem:[%s6639_s6 + $0x4] ss:$0 sm:$0xff] }
  0xe8   :  { %v270_v21 = vpop.f32.mrb[3].mxu0  ;;  %v3852_v14 = vpack.c.bf16 %v1294_v1, %v1292_v4  ;;  %6715 = vst [vmem:[#allocation30_spill] sm:$0xff] %v4859_v37  ;;  %2250 = vperm.xlu1 %4003, %v4519_v42   ;;  %v1300_v42 = vld [vmem:[%s6640_s5 + $0x88] sm:$0xff] }
  0xe9   :  { %3585 = vmatmul.mubr.msk.f32.vlgmr.msra.gmra.mrb[0].mxu1 %vm467_vm1, %v419_v52  ;;  %v271_v33 = vadd.f32 %v270_v21, %v4803_v18  ;;  %3847 = vmatpush1.bf16.msra.mxu0 %v3846_v26  ;;  %v3850_v52 = vpack.c.bf16 %v1289_v30, %v1287_v35  ;;  %v276_v26 = vadd.f32 %v3773_v7, %v4803_v18  ;;  %v4875_v30 = vpop.permute.xlu0 %1950 }
  0xea   :  { %987 = vmatprep.mubr.f32.mxu1 %v6714_v11  ;;  %3849 = vmatprep.subr.bf16.mxu0 %v3848_v53  ;;  %v1298_v53 = vld [vmem:[%s6640_s5 + $0x78] sm:$0xff]  ;;  %6716 = vst [vmem:[#allocation31_spill] sm:$0xff] %v4875_v30 }
  0xeb   :  { %v3776_v5 = vpop.f32.mrb[4].mxu0  ;;  %v421_v57 = vmax.f32 %v271_v33, 0.0  ;;  %v3854_v33 = vpack.c.bf16 %v1293_v58, %v1291_v63  ;;  %v3856_v1 = vpack.c.bf16 %v1298_v53, %v1296_v39  ;;  %v1302_v58 = vld [vmem:[%s6640_s5 + $0x98] sm:$0xff]  ;;  %v422_v63 = vmax.f32 %v276_v26, 0.0  ;;  %v1299_v53 = vld [vmem:[%s6640_s5 + $0x80] sm:$0xff]  ;;  %1775 = vperm.xlu0 %4004, %v4555_v48  }
  0xec   :  { %v280_v21 = vpop.f32.mrb[5].mxu0  ;;  %3123 = vrot.lane.b32.xlu1 %v3121_v13, %s4075_s22  ;;  %v3860_v39 = vpack.c.bf16 %v1302_v58, %v1300_v42  ;;  %v1301_v13 = vld [vmem:[%s6640_s5 + $0x90] sm:$0xff]  ;;  %v1303_v42 = vld [vmem:[%s6640_s5 + $0xa0] sm:$0xff] }
  0xed   :  { %3586 = vmatmul.mubr.msk.f32.gmra.mrb[2].mxu1 %vm467_vm1, %v420_v3  ;;  %3851 = vmatpush1.bf16.msra.mxu0 %v3850_v52  ;;  %v1295_v3 = vld [vmem:[%s6640_s5 + $0x60] sm:$0xff]  ;;  %v281_v7 = vadd.f32 %v280_v21, %v4803_v18  ;;  %v4896_v52 = vpop.permute.xlu1 %1962  ;;  %v4906_v56 = vpop.permute.xlu0 %1958  ;;  %v1305_v58 = vld [vmem:[%s6640_s5 + $0xb0] sm:$0xff] }
  0xee   :  { %993 = vmatprep.mubr.f32.mxu1 %v6714_v11  ;;  %3853 = vmatprep.subr.bf16.mxu0 %v3852_v14  ;;  %6717 = vst [vmem:[#allocation32_spill] sm:$0xff] %v4896_v52  ;;  %6718 = vst [vmem:[#allocation33_spill] sm:$0xff] %v4906_v56 }
  0xef   :  { %v4873_v35 = vpop.f32.mrb[6].mxu0  ;;  %v423_v26 = vmax.f32 %v281_v7, 0.0  ;;  %1785 = vperm.xlu0 %4004, %v4580_v60  }
  0xf0   :  { %v290_v4 = vpop.f32.mrb[7].mxu0  ;;  %2326 = vperm.xlu1 %4003, %v4396_v16   ;;  %v296_v48 = vadd.f32 %v4873_v35, %v4803_v18 }
  0xf1   :  { %3587 = vmatmul.mubr.msk.f32.gmra.mrb[4].mxu1 %vm467_vm1, %v421_v57  ;;  %3855 = vmatpush1.bf16.msra.mxu0 %v3854_v33  ;;  %v3858_v57 = vpack.c.bf16 %v1297_v49, %v1295_v3  ;;  %v1306_v49 = vld [vmem:[%s6640_s5 + $0xb8] sm:$0xff]  ;;  %v286_v33 = vadd.f32 %v3776_v5, %v4803_v18  ;;  %v3862_v3 = vpack.c.bf16 %v1301_v13, %v1299_v53  ;;  %v4940_v13 = vpop.permute.xlu0 %1966 }
  0xf2   :  { %999 = vmatprep.mubr.f32.mxu1 %v6714_v11  ;;  %3857 = vmatprep.subr.bf16.mxu0 %v3856_v1  ;;  %v3864_v16 = vpack.c.bf16 %v1306_v49, %v1304_v44  ;;  %v291_v5 = vadd.f32 %v290_v4, %v4803_v18  ;;  %6720 = vst [vmem:[#allocation35_spill] sm:$0xff] %v4940_v13  ;;  %v1307_v44 = vld [vmem:[%s6640_s5 + $0xc0] sm:$0xff]  ;;  %v1309_v49 = vld [vmem:[%s6640_s5 + $0xd0] sm:$0xff]  ;;  %v426_v35 = vmax.f32 %v296_v48, 0.0 }
  0xf3   :  { %v4894_v14 = vpop.f32.mrb[8].mxu0  ;;  %v3866_v4 = vpack.c.bf16 %v1305_v58, %v1303_v42  ;;  %v3870_v42 = vpack.c.bf16 %v1309_v49, %v1307_v44  ;;  %1795 = vperm.xlu0 %4004, %v4592_v0  }
  0xf4   :  { %v300_v21 = vpop.f32.mrb[9].mxu0  ;;  %2262 = vperm.xlu1 %4003, %v4221_v36  }
  0xf5   :  { %3588 = vmatmul.mubr.msk.f32.gmra.mrb[6].mxu1 %vm467_vm1, %v422_v63  ;;  %3859 = vmatpush1.bf16.msra.mxu0 %v3858_v57  ;;  %v4928_v63 = vpop.permute.xlu1 %1970  ;;  %v1310_v57 = vld [vmem:[%s6640_s5 + $0xd8] sm:$0xff] }
  0xf6   :  { %1005 = vmatprep.mubr.f32.mxu1 %v6714_v11  ;;  %3861 = vmatprep.subr.bf16.mxu0 %v3860_v39  ;;  %6719 = vst [vmem:[#allocation34_spill] sm:$0xff] %v4928_v63  ;;  %v424_v39 = vmax.f32 %v286_v33, 0.0  ;;  %v425_v33 = vmax.f32 %v291_v5, 0.0  ;;  %v4965_v5 = vpop.permute.xlu0 %1974 }
  0xf7   :  { %v4917_v1 = vpop.f32.mrb[10].mxu0  ;;  %6722 = vst [vmem:[#allocation37_spill] sm:$0xff] %v4965_v5  ;;  %1805 = vperm.xlu0 %4004, %v4607_v8  }
  0xf8   :  { %v310_v7 = vpop.f32.mrb[11].mxu0  ;;  %2334 = vperm.xlu1 %4003, %v4416_v20   ;;  %v301_v20 = vadd.f32 %v300_v21, %v4803_v18 }
  0xf9   :  { %3589 = vmatmul.mubr.msk.f32.gmra.mrb[8].mxu1 %vm467_vm1, %v423_v26  ;;  %3863 = vmatpush1.bf16.msra.mxu0 %v3862_v3  ;;  %v3868_v26 = vpack.c.bf16 %v1310_v57, %v1308_v46 }
  0xfa   :  { %1011 = vmatprep.mubr.f32.mxu1 %v6714_v11  ;;  %3865 = vmatprep.subr.bf16.mxu0 %v3864_v16  ;;  %v4958_v16 = vpop.permute.xlu1 %1978 }
  0xfb   :  { %v4938_v53 = vpop.f32.mrb[12].mxu0  ;;  %6721 = vst [vmem:[#allocation36_spill] sm:$0xff] %v4958_v16  ;;  %1815 = vperm.xlu0 %4004, %v4623_v15  }
  0xfc   :  { %v4943_v36 = vpop.f32.mrb[13].mxu0  ;;  %2270 = vperm.xlu1 %4003, %v4240_v40   ;;  %v306_v40 = vadd.f32 %v4894_v14, %v4803_v18 }
  0xfd   :  { %3590 = vmatmul.mubr.msk.f32.gmra.mrb[10].mxu1 %vm467_vm1, %v424_v39  ;;  %3867 = vmatpush1.bf16.msra.mxu0 %v3866_v4  ;;  %v427_v39 = vmax.f32 %v301_v20, 0.0 }
  0xfe   :  { %1017 = vmatprep.mubr.f32.mxu1 %v6714_v11  ;;  %3869 = vmatprep.subr.bf16.mxu0 %v3868_v26  ;;  %v4977_v4 = vpop.permute.xlu1 %1986  ;;  %v4983_v26 = vpop.permute.xlu0 %1982  ;;  %v428_v14 = vmax.f32 %v306_v40, 0.0  ;;  %v321_v40 = vadd.f32 %v4943_v36, %v4803_v18 }
  0xff   :  { %v4956_v3 = vpop.f32.mrb[14].mxu0  ;;  %6723 = vst [vmem:[#allocation38_spill] sm:$0xff] %v4977_v4  ;;  %6724 = vst [vmem:[#allocation39_spill] sm:$0xff] %v4983_v26  ;;  %1825 = vperm.xlu0 %4004, %v4639_v19  }
 0x100   :  { %v4961_v58 = vpop.f32.mrb[15].mxu0  ;;  %2342 = vperm.xlu1 %4003, %v4436_v24   ;;  %v431_v36 = vmax.f32 %v321_v40, 0.0 }
 0x101   :  { %3591 = vmatmul.mubr.msk.f32.gmra.mrb[12].mxu1 %vm467_vm1, %v425_v33  ;;  %3871 = vmatpush1.bf16.msra.mxu0 %v3870_v42  ;;  %v311_v33 = vadd.f32 %v310_v7, %v4803_v18 }
 0x102   :  { %1023 = vmatprep.mubr.f32.mxu1 %v6714_v11  ;;  %v4996_v42 = vpop.permute.xlu1 %1994 }
 0x103   :  { %v3794_v46 = vpop.f32.mrb[16].mxu0  ;;  %6725 = vst [vmem:[#allocation40_spill] sm:$0xff] %v4996_v42 }
 0x104   :  { %v4971_v60 = vadd.f32 %v3794_v46, %v4803_v18  ;;  %v340_v57 = vpop.f32.mrb[17].mxu0  ;;  %2278 = vperm.xlu1 %4003, %v4271_v50   ;;  %v5006_v46 = vpop.permute.xlu0 %1990  ;;  %v316_v50 = vadd.f32 %v4917_v1, %v4803_v18  ;;  %1835 = vperm.xlu0 %4004, %v4651_v22  }
 0x105   :  { %3592 = vmatmul.mubr.msk.f32.gmra.mrb[14].mxu1 %vm467_vm1, %v426_v35  ;;  %v4975_v21 = vadd.f32 %v340_v57, %v4803_v18  ;;  %v429_v35 = vmax.f32 %v311_v33, 0.0  ;;  %6726 = vst [vmem:[#allocation41_spill] sm:$0xff] %v5006_v46 }
 0x106   :  { %1029 = vmatprep.mubr.f32.mxu1 %v6714_v11  ;;  %v430_v1 = vmax.f32 %v316_v50, 0.0 }
 0x107   :  { %v3797_v0 = vpop.f32.mrb[18].mxu0 }
 0x108   :  { %v4987_v44 = vadd.f32 %v3797_v0, %v4803_v18  ;;  %v350_v49 = vpop.f32.mrb[19].mxu0  ;;  %2350 = vperm.xlu1 %4003, %v4456_v29   ;;  %v5022_v29 = vpop.permute.xlu1 %2002 }
 0x109   :  { %3593 = vmatmul.mubr.msk.f32.gmra.mrb[16].mxu1 %vm467_vm1, %v427_v39  ;;  %v4992_v24 = vadd.f32 %v350_v49, %v4803_v18  ;;  %6727 = vst [vmem:[#allocation42_spill] sm:$0xff] %v5022_v29  ;;  %v5026_v49 = vpop.permute.xlu0 %1998  ;;  %1845 = vperm.xlu0 %4004, %v4663_v25  }
 0x10a   :  { %1035 = vmatprep.mubr.f32.mxu1 %v6714_v11  ;;  %6728 = vst [vmem:[#allocation43_spill] sm:$0xff] %v5026_v49 }
 0x10b   :  { %v3800_v48 = vpop.f32.mrb[20].mxu0 }
 0x10c   :  { %v5000_v8 = vadd.f32 %v3800_v48, %v4803_v18  ;;  %v360_v20 = vpop.f32.mrb[21].mxu0  ;;  %2286 = vperm.xlu1 %4003, %v4296_v55   ;;  %v326_v55 = vadd.f32 %v4938_v53, %v4803_v18 }
 0x10d   :  { %3594 = vmatmul.mubr.msk.f32.gmra.mrb[18].mxu1 %vm467_vm1, %v428_v14  ;;  %v5004_v7 = vadd.f32 %v360_v20, %v4803_v18  ;;  %v5051_v40 = vpop.permute.xlu0 %2006  ;;  %1855 = vperm.xlu0 %4004, %v4675_v27  }
 0x10e   :  { %1041 = vmatprep.mubr.f32.mxu1 %v6714_v11  ;;  %6730 = vst [vmem:[#allocation45_spill] sm:$0xff] %v5051_v40  ;;  %v432_v53 = vmax.f32 %v326_v55, 0.0  ;;  %v336_v55 = vadd.f32 %v4956_v3, %v4803_v18  ;;  %v435_v3 = vmax.f32 %v4975_v21, 0.0  ;;  %v438_v21 = vmax.f32 %v4987_v44, 0.0  ;;  %v1314_v44 = vld [vmem:[%s6640_s5 + $0xf8] sm:$0xff] }
 0x10f   :  { %v3803_v15 = vpop.f32.mrb[22].mxu0 }
 0x110   :  { %v5014_v57 = vadd.f32 %v3803_v15, %v4803_v18  ;;  %v370_v39 = vpop.f32.mrb[23].mxu0  ;;  %v331_v15 = vadd.f32 %v4961_v58, %v4803_v18 }
 0x111   :  { %3595 = vmatmul.mubr.msk.f32.gmra.mrb[20].mxu1 %vm467_vm1, %v429_v35  ;;  %v5020_v0 = vadd.f32 %v370_v39, %v4803_v18  ;;  %v5039_v35 = vpop.permute.xlu1 %2010 }
 0x112   :  { %1047 = vmatprep.mubr.f32.mxu1 %v6714_v11  ;;  %6729 = vst [vmem:[#allocation44_spill] sm:$0xff] %v5039_v35 }
 0x113   :  { %v3806_v19 = vpop.f32.mrb[24].mxu0 }
 0x114   :  { %v5030_v33 = vadd.f32 %v3806_v19, %v4803_v18  ;;  %v380_v14 = vpop.f32.mrb[25].mxu0 }
 0x115   :  { %3596 = vmatmul.mubr.msk.f32.gmra.mrb[22].mxu1 %vm467_vm1, %v430_v1  ;;  %v5034_v48 = vadd.f32 %v380_v14, %v4803_v18  ;;  %v433_v14 = vmax.f32 %v331_v15, 0.0 }
 0x116   :  { %1053 = vmatprep.mubr.f32.mxu1 %v6714_v11 }
 0x117   :  { %v3809_v20 = vpop.f32.mrb[26].mxu0 }
 0x118   :  { %v5043_v22 = vadd.f32 %v3809_v20, %v4803_v18  ;;  %v390_v50 = vpop.f32.mrb[27].mxu0 }
 0x119   :  { %3597 = vmatmul.mubr.msk.f32.gmra.mrb[24].mxu1 %vm467_vm1, %v431_v36  ;;  %v5049_v39 = vadd.f32 %v390_v50, %v4803_v18  ;;  %v5062_v36 = vpop.permute.xlu1 %2018  ;;  %v5067_v50 = vpop.permute.xlu0 %2014  ;;  %1865 = vperm.xlu0 %4004, %v4687_v31  }
 0x11a   :  { %1059 = vmatprep.mubr.f32.mxu1 %v6714_v11  ;;  %6731 = vst [vmem:[#allocation46_spill] sm:$0xff] %v5062_v36  ;;  %6732 = vst [vmem:[#allocation47_spill] sm:$0xff] %v5067_v50 }
 0x11b   :  { %v3812_v1 = vpop.f32.mrb[28].mxu0 }
 0x11c   :  { %v5056_v25 = vadd.f32 %v3812_v1, %v4803_v18  ;;  %v400_v19 = vpop.f32.mrb[29].mxu0  ;;  %v434_v1 = vmax.f32 %v336_v55, 0.0 }
 0x11d   :  { %3598 = vmatmul.mubr.msk.f32.gmra.mrb[26].mxu1 %vm467_vm1, %v432_v53  ;;  %v5060_v58 = vadd.f32 %v400_v19, %v4803_v18  ;;  %v5078_v19 = vpop.permute.xlu1 %2026 }
 0x11e   :  { %1065 = vmatprep.mubr.f32.mxu1 %v6714_v11  ;;  %6733 = vst [vmem:[#allocation48_spill] sm:$0xff] %v5078_v19 }
 0x11f   :  { %v3815_v20 = vpop.f32.mrb[30].mxu0 }
 0x120   :  { %v5071_v27 = vadd.f32 %v3815_v20, %v4803_v18  ;;  %v410_v15 = vpop.f32.mrb[31].mxu0  ;;  %v439_v20 = vmax.f32 %v5004_v7, 0.0 }
 0x121   :  { %3599 = vmatmul.mubr.msk.f32.gmra.mrb[28].mxu1 %vm467_vm1, %v433_v14  ;;  %v5075_v53 = vadd.f32 %v410_v15, %v4803_v18  ;;  %v5084_v31 = vpop.permute.xlu1 %2066  ;;  %v436_v18 = vmax.f32 %v4971_v60, 0.0  ;;  %v437_v14 = vmax.f32 %v4992_v24, 0.0  ;;  %v1312_v60 = vld [vmem:[%s6640_s5 + $0xe8] sm:$0xff]  ;;  %v440_v24 = vmax.f32 %v5000_v8, 0.0 }
 0x122   :  { %1071 = vmatprep.mubr.f32.mxu1 %v6714_v11 }
 0x125   :  { %3600 = vmatmul.mubr.msk.f32.gmra.mrb[30].mxu1 %vm467_vm1, %v434_v1  ;;  %v5091_v55 = vpop.permute.xlu1 %2074  ;;  %v3872_v1 = vpack.c.bf16 %v1314_v44, %v1312_v60  ;;  %v443_v60 = vmax.f32 %v5034_v48, 0.0  ;;  %v444_v44 = vmax.f32 %v5030_v33, 0.0 }
 0x126   :  { %1077 = vmatprep.mubr.f32.mxu1 %v6714_v11 }
 0x127   :  { %3873 = vmatprep.subr.bf16.mxu0 %v3872_v1 }
 0x129   :  { %3601 = vmatmul.mubr.msk.f32.gmra.mrb[32].mxu1 %vm467_vm1, %v435_v3  ;;  %v5098_v15 = vpop.permute.xlu1 %2078  ;;  %v1311_v3 = vld [vmem:[%s6640_s5 + $0xe0] sm:$0xff] }
 0x12a   :  { %1083 = vmatprep.mubr.f32.mxu1 %v6714_v11 }
 0x12d   :  { %3602 = vmatmul.mubr.msk.f32.gmra.mrb[34].mxu1 %vm467_vm1, %v436_v18  ;;  %v5110_v7 = vpop.permute.xlu1 %2130  ;;  %v1313_v18 = vld [vmem:[%s6640_s5 + $0xf0] sm:$0xff] }
 0x12e   :  { %1089 = vmatprep.mubr.f32.mxu1 %v6714_v11 }
 0x131   :  { %3603 = vmatmul.mubr.msk.f32.gmra.mrb[36].mxu1 %vm467_vm1, %v437_v14  ;;  %v3874_v14 = vpack.c.bf16 %v1313_v18, %v1311_v3  ;;  %v5122_v8 = vpop.permute.xlu1 %2138  ;;  %v447_v3 = vmax.f32 %v5060_v58, 0.0  ;;  %v449_v18 = vmax.f32 %v5075_v53, 0.0  ;;  %v450_v58 = vmax.f32 %v5071_v27, 0.0 }
 0x132   :  { %1095 = vmatprep.mubr.f32.mxu1 %v6714_v11 }
 0x133   :  { %3875 = vmatpush1.bf16.msra.mxu0 %v3874_v14 }
 0x135   :  { %3604 = vmatmul.mubr.msk.f32.gmra.mrb[38].mxu1 %vm467_vm1, %v438_v21  ;;  %v441_v21 = vmax.f32 %v5020_v0, 0.0  ;;  %v5129_v0 = vpop.permute.xlu1 %2146 }
 0x136   :  { %1101 = vmatprep.mubr.f32.mxu1 %v6714_v11 }
 0x139   :  { %3605 = vmatmul.mubr.msk.f32.gmra.mrb[40].mxu1 %vm467_vm1, %v439_v20  ;;  %v442_v20 = vmax.f32 %v5014_v57, 0.0  ;;  %v5136_v1 = vpop.permute.xlu1 %2086  ;;  %v446_v57 = vmax.f32 %v5043_v22, 0.0 }
 0x13a   :  { %1107 = vmatprep.mubr.f32.mxu1 %v6714_v11 }
 0x13d   :  { %3606 = vmatmul.mubr.msk.f32.gmra.mrb[42].mxu1 %vm467_vm1, %v440_v24  ;;  %v445_v24 = vmax.f32 %v5049_v39, 0.0  ;;  %v5142_v48 = vpop.permute.xlu1 %2158  ;;  %v448_v39 = vmax.f32 %v5056_v25, 0.0 }
 0x13e   :  { %1113 = vmatprep.mubr.f32.mxu1 %v6714_v11 }
 0x141   :  { %3607 = vmatmul.mubr.msk.f32.gmra.mrb[44].mxu1 %vm467_vm1, %v441_v21  ;;  %v5148_v33 = vpop.permute.xlu1 %2094 }
 0x142   :  { %1119 = vmatprep.mubr.f32.mxu1 %v6714_v11 }
 0x145   :  { %3608 = vmatmul.mubr.msk.f32.gmra.mrb[46].mxu1 %vm467_vm1, %v442_v20  ;;  %v5155_v22 = vpop.permute.xlu1 %2166 }
 0x146   :  { %1125 = vmatprep.mubr.f32.mxu1 %v6714_v11 }
 0x149   :  { %3609 = vmatmul.mubr.msk.f32.gmra.mrb[48].mxu1 %vm467_vm1, %v443_v60  ;;  %v5161_v14 = vpop.permute.xlu1 %2102 }
 0x14a   :  { %1131 = vmatprep.mubr.f32.mxu1 %v6714_v11 }
 0x14d   :  { %3610 = vmatmul.mubr.msk.f32.gmra.mrb[50].mxu1 %vm467_vm1, %v444_v44  ;;  %v5163_v21 = vpop.permute.xlu1 %2174 }
 0x14e   :  { %1137 = vmatprep.mubr.f32.mxu1 %v6714_v11 }
 0x151   :  { %3611 = vmatmul.mubr.msk.f32.gmra.mrb[52].mxu1 %vm467_vm1, %v445_v24  ;;  %v5165_v25 = vpop.permute.xlu1 %2110 }
 0x152   :  { %1143 = vmatprep.mubr.f32.mxu1 %v6714_v11 }
 0x155   :  { %3612 = vmatmul.mubr.msk.f32.gmra.mrb[54].mxu1 %vm467_vm1, %v446_v57  ;;  %v5167_v53 = vpop.permute.xlu1 %2182 }
 0x156   :  { %1149 = vmatprep.mubr.f32.mxu1 %v6714_v11  ;;  %6734 = vst [vmem:[#allocation49_spill] sm:$0xff] %v5167_v53 }
 0x159   :  { %3613 = vmatmul.mubr.msk.f32.gmra.mrb[56].mxu1 %vm467_vm1, %v447_v3  ;;  %v5169_v20 = vpop.permute.xlu1 %2118 }
 0x15a   :  { %1155 = vmatprep.mubr.f32.mxu1 %v6714_v11 }
 0x15d   :  { %3614 = vmatmul.mubr.msk.f32.gmra.mrb[58].mxu1 %vm467_vm1, %v448_v39  ;;  %v5171_v60 = vpop.permute.xlu1 %2190 }
 0x15e   :  { %1161 = vmatprep.mubr.f32.mxu1 %v6714_v11  ;;  %6735 = vst [vmem:[#allocation50_spill] sm:$0xff] %v5171_v60 }
 0x161   :  { %3615 = vmatmul.mubr.msk.f32.gmra.mrb[60].mxu1 %vm467_vm1, %v449_v18  ;;  %v5173_v44 = vpop.permute.xlu1 %2126 }
 0x162   :  { %1167 = vmatprep.mubr.f32.mxu1 %v6714_v11 }
 0x165   :  { %3616 = vmatmul.mubr.msk.f32.gmra.mrb[62].mxu1 %vm467_vm1, %v450_v58  ;;  %v5175_v24 = vpop.permute.xlu1 %2294 }
 0x169   :  { %v5177_v57 = vpop.permute.xlu1 %2226 }
 0x16d   :  { %v5179_v27 = vpop.permute.xlu1 %2298 }
 0x171   :  { %v5181_v3 = vpop.permute.xlu1 %2234 }
 0x175   :  { %v5183_v39 = vpop.permute.xlu1 %2306 }
 0x179   :  { %v5185_v18 = vpop.permute.xlu1 %2242 }
 0x17d   :  { %v5187_v58 = vpop.permute.xlu1 %2314 }
 0x181   :  { %v5197_v43 = vpop.permute.xlu1 %2250 }
 0x185   :  { %v5207_v13 = vpop.permute.xlu1 %3123 }
 0x186   :  { %6739 = vst [vmem:[#allocation53_spill] sm:$0xff] %v5207_v13 }
 0x1bc   :  { %v983_v34 = vpop.f32.mrb[0].mxu1 }
 0x1bd   :  { %v1187_v19 = vadd.f32 %v5195_v45, %v983_v34  ;;  %v985_v36 = vpop.f32.mrb[1].mxu1 }
 0x1be   :  { %v5205_v50 = vadd.f32 %v5201_v38, %v985_v36  ;;  %v5216_v36 = vpop.permute.xlu0 %2022 }
 0x1bf   :  { %v1251_v35 = vmax.f32 %v1187_v19, 0.0  ;;  %6741 = vst [vmem:[#allocation55_spill] sm:$0xff] %v5216_v36 }
 0x1c0   :  { %6738 = vst [vmem:[#allocation52_spill] sm:$0xff] %v5205_v50  ;;  %v1649_v40 = vmax.f32 %v5205_v50, 0.0  ;;  %v989_v54 = vpop.f32.mrb[2].mxu1 }
 0x1c1   :  { %v1189_v52 = vadd.f32 %v5195_v45, %v989_v54  ;;  %v991_v29 = vpop.f32.mrb[3].mxu1  ;;  %1393 = vmatmul.mubr.f32.vlgmr.msra.gmra.mrb[32].mxu0 %v1251_v35 }
 0x1c2   :  { %v5212_v41 = vadd.f32 %v5201_v38, %v991_v29  ;;  %1398 = vmatprep.mubr.f32.mxu0 %v6714_v11  ;;  %v3126_v34 = vmul.f32 %v5207_v13, %v1649_v40  ;;  %v5234_v42 = vpop.permute.xlu0 %2030 }
 0x1c3   :  { %v1252_v47 = vmax.f32 %v1189_v52, 0.0  ;;  %6744 = vst [vmem:[#allocation58_spill] sm:$0xff] %v5234_v42 }
 0x1c4   :  { %6740 = vst [vmem:[#allocation54_spill] sm:$0xff] %v5212_v41  ;;  %v1650_v19 = vmax.f32 %v5212_v41, 0.0  ;;  %v995_v49 = vpop.f32.mrb[4].mxu1  ;;  %3190 = vrot.lane.b32.xlu0 %v3126_v34, %s4076_s29 }
 0x1c5   :  { %v1191_v54 = vadd.f32 %v5195_v45, %v995_v49  ;;  %v997_v50 = vpop.f32.mrb[5].mxu1  ;;  %1399 = vmatmul.mubr.f32.gmra.mrb[34].mxu0 %v1252_v47 }
 0x1c6   :  { %v5222_v29 = vadd.f32 %v5201_v38, %v997_v50  ;;  %1404 = vmatprep.mubr.f32.mxu0 %v6714_v11  ;;  %v3127_v35 = vmul.f32 %v5207_v13, %v1650_v19 }
 0x1c7   :  { %v1253_v52 = vmax.f32 %v1191_v54, 0.0 }
 0x1c8   :  { %6742 = vst [vmem:[#allocation56_spill] sm:$0xff] %v5222_v29  ;;  %v1651_v40 = vmax.f32 %v5222_v29, 0.0  ;;  %v1001_v36 = vpop.f32.mrb[6].mxu1  ;;  %3192 = vrot.lane.b32.xlu1 %v3127_v35, %s4076_s29 }
 0x1c9   :  { %v1193_v41 = vadd.f32 %v5195_v45, %v1001_v36  ;;  %v1003_v34 = vpop.f32.mrb[7].mxu1  ;;  %1405 = vmatmul.mubr.f32.gmra.mrb[36].mxu0 %v1253_v52 }
 0x1ca   :  { %v3128_v49 = vmul.f32 %v5207_v13, %v1651_v40  ;;  %v5231_v47 = vadd.f32 %v5201_v38, %v1003_v34  ;;  %1410 = vmatprep.mubr.f32.mxu0 %v6714_v11 }
 0x1cb   :  { %v1254_v50 = vmax.f32 %v1193_v41, 0.0 }
 0x1cc   :  { %6743 = vst [vmem:[#allocation57_spill] sm:$0xff] %v5231_v47  ;;  %v1652_v19 = vmax.f32 %v5231_v47, 0.0  ;;  %v1007_v54 = vpop.f32.mrb[8].mxu1  ;;  %3194 = vrot.lane.b32.xlu0 %v3128_v49, %s4076_s29 }
 0x1cd   :  { %v1195_v35 = vadd.f32 %v5195_v45, %v1007_v54  ;;  %v1009_v36 = vpop.f32.mrb[9].mxu1  ;;  %1411 = vmatmul.mubr.f32.gmra.mrb[38].mxu0 %v1254_v50 }
 0x1ce   :  { %v3129_v52 = vmul.f32 %v5207_v13, %v1652_v19  ;;  %v5241_v40 = vadd.f32 %v5201_v38, %v1009_v36  ;;  %1416 = vmatprep.mubr.f32.mxu0 %v6714_v11  ;;  %v5252_v36 = vpop.permute.xlu0 %2070 }
 0x1cf   :  { %v1255_v34 = vmax.f32 %v1195_v35, 0.0 }
 0x1d0   :  { %6745 = vst [vmem:[#allocation59_spill] sm:$0xff] %v5241_v40  ;;  %v1653_v41 = vmax.f32 %v5241_v40, 0.0  ;;  %v1013_v42 = vpop.f32.mrb[10].mxu1  ;;  %3196 = vrot.lane.b32.xlu1 %v3129_v52, %s4076_s29 }
 0x1d1   :  { %v1197_v47 = vadd.f32 %v5195_v45, %v1013_v42  ;;  %v1015_v49 = vpop.f32.mrb[11].mxu1  ;;  %1417 = vmatmul.mubr.f32.gmra.mrb[40].mxu0 %v1255_v34 }
 0x1d2   :  { %v3130_v54 = vmul.f32 %v5207_v13, %v1653_v41  ;;  %v5249_v50 = vadd.f32 %v5201_v38, %v1015_v49  ;;  %1422 = vmatprep.mubr.f32.mxu0 %v6714_v11 }
 0x1d3   :  { %v1256_v19 = vmax.f32 %v1197_v47, 0.0 }
 0x1d4   :  { %6746 = vst [vmem:[#allocation60_spill] sm:$0xff] %v5249_v50  ;;  %v1654_v35 = vmax.f32 %v5249_v50, 0.0  ;;  %v1019_v40 = vpop.f32.mrb[12].mxu1  ;;  %3198 = vrot.lane.b32.xlu0 %v3130_v54, %s4076_s29  ;;  %v5266_v50 = vpop.permute.xlu0 %2082 }
 0x1d5   :  { %v1199_v52 = vadd.f32 %v5195_v45, %v1019_v40  ;;  %v5257_v42 = vpop.f32.mrb[13].mxu1  ;;  %1423 = vmatmul.mubr.f32.gmra.mrb[42].mxu0 %v1256_v19 }
 0x1d6   :  { %6747 = vst [vmem:[#allocation61_spill] sm:$0xff] %v5257_v42  ;;  %v3131_v34 = vmul.f32 %v5207_v13, %v1654_v35  ;;  %1428 = vmatprep.mubr.f32.mxu0 %v6714_v11 }
 0x1d7   :  { %v1257_v41 = vmax.f32 %v1199_v52, 0.0 }
 0x1d8   :  { %v1025_v49 = vpop.f32.mrb[14].mxu1  ;;  %3200 = vrot.lane.b32.xlu1 %v3131_v34, %s4076_s29 }
 0x1d9   :  { %v1201_v47 = vadd.f32 %v5195_v45, %v1025_v49  ;;  %v5263_v29 = vpop.f32.mrb[15].mxu1  ;;  %1429 = vmatmul.mubr.f32.gmra.mrb[44].mxu0 %v1257_v41  ;;  %v5276_v41 = vpop.permute.xlu0 %2134 }
 0x1da   :  { %6748 = vst [vmem:[#allocation62_spill] sm:$0xff] %v5263_v29  ;;  %1434 = vmatprep.mubr.f32.mxu0 %v6714_v11 }
 0x1db   :  { %v1258_v54 = vmax.f32 %v1201_v47, 0.0 }
 0x1dc   :  { %v1031_v40 = vpop.f32.mrb[16].mxu1 }
 0x1dd   :  { %v1203_v19 = vadd.f32 %v5195_v45, %v1031_v40  ;;  %v5269_v35 = vpop.f32.mrb[17].mxu1  ;;  %1435 = vmatmul.mubr.f32.gmra.mrb[46].mxu0 %v1258_v54 }
 0x1de   :  { %6749 = vst [vmem:[#allocation63_spill] sm:$0xff] %v5269_v35  ;;  %1440 = vmatprep.mubr.f32.mxu0 %v6714_v11  ;;  %v5282_v35 = vpop.permute.xlu0 %2142 }
 0x1df   :  { %v1259_v52 = vmax.f32 %v1203_v19, 0.0 }
 0x1e0   :  { %v1037_v34 = vpop.f32.mrb[18].mxu1 }
 0x1e1   :  { %v1205_v49 = vadd.f32 %v5195_v45, %v1037_v34  ;;  %v5273_v46 = vpop.f32.mrb[19].mxu1  ;;  %1441 = vmatmul.mubr.f32.gmra.mrb[48].mxu0 %v1259_v52 }
 0x1e2   :  { %6750 = vst [vmem:[#allocation64_spill] sm:$0xff] %v5273_v46  ;;  %1446 = vmatprep.mubr.f32.mxu0 %v6714_v11 }
 0x1e3   :  { %v1260_v47 = vmax.f32 %v1205_v49, 0.0 }
 0x1e4   :  { %v1043_v4 = vpop.f32.mrb[20].mxu1 }
 0x1e5   :  { %v1207_v40 = vadd.f32 %v5195_v45, %v1043_v4  ;;  %v5279_v26 = vpop.f32.mrb[21].mxu1  ;;  %1447 = vmatmul.mubr.f32.gmra.mrb[50].mxu0 %v1260_v47  ;;  %v5292_v47 = vpop.permute.xlu0 %2150 }
 0x1e6   :  { %6751 = vst [vmem:[#allocation65_spill] sm:$0xff] %v5279_v26  ;;  %1452 = vmatprep.mubr.f32.mxu0 %v6714_v11 }
 0x1e7   :  { %v1261_v54 = vmax.f32 %v1207_v40, 0.0 }
 0x1e8   :  { %v1049_v19 = vpop.f32.mrb[22].mxu1 }
 0x1e9   :  { %v1209_v34 = vadd.f32 %v5195_v45, %v1049_v19  ;;  %v5285_v52 = vpop.f32.mrb[23].mxu1  ;;  %1453 = vmatmul.mubr.f32.gmra.mrb[52].mxu0 %v1261_v54 }
 0x1ea   :  { %6752 = vst [vmem:[#allocation66_spill] sm:$0xff] %v5285_v52  ;;  %1458 = vmatprep.mubr.f32.mxu0 %v6714_v11  ;;  %v5298_v52 = vpop.permute.xlu0 %2154 }
 0x1eb   :  { %v1262_v49 = vmax.f32 %v1209_v34, 0.0 }
 0x1ec   :  { %v1055_v46 = vpop.f32.mrb[24].mxu1 }
 0x1ed   :  { %v1211_v4 = vadd.f32 %v5195_v45, %v1055_v46  ;;  %v5289_v16 = vpop.f32.mrb[25].mxu1  ;;  %1459 = vmatmul.mubr.f32.gmra.mrb[54].mxu0 %v1262_v49 }
 0x1ee   :  { %6753 = vst [vmem:[#allocation67_spill] sm:$0xff] %v5289_v16  ;;  %1464 = vmatprep.mubr.f32.mxu0 %v6714_v11 }
 0x1ef   :  { %v1263_v40 = vmax.f32 %v1211_v4, 0.0 }
 0x1f0   :  { %v1061_v26 = vpop.f32.mrb[26].mxu1 }
 0x1f1   :  { %v1213_v19 = vadd.f32 %v5195_v45, %v1061_v26  ;;  %v5295_v5 = vpop.f32.mrb[27].mxu1  ;;  %1465 = vmatmul.mubr.f32.gmra.mrb[56].mxu0 %v1263_v40  ;;  %v5308_v40 = vpop.permute.xlu0 %2090 }
 0x1f2   :  { %6754 = vst [vmem:[#allocation68_spill] sm:$0xff] %v5295_v5  ;;  %1470 = vmatprep.mubr.f32.mxu0 %v6714_v11 }
 0x1f3   :  { %v1264_v54 = vmax.f32 %v1213_v19, 0.0 }
 0x1f4   :  { %v1067_v34 = vpop.f32.mrb[28].mxu1 }
 0x1f5   :  { %v1215_v46 = vadd.f32 %v5195_v45, %v1067_v34  ;;  %v5301_v49 = vpop.f32.mrb[29].mxu1  ;;  %1471 = vmatmul.mubr.f32.gmra.mrb[58].mxu0 %v1264_v54 }
 0x1f6   :  { %6755 = vst [vmem:[#allocation69_spill] sm:$0xff] %v5301_v49  ;;  %1476 = vmatprep.mubr.f32.mxu0 %v6714_v11 }
 0x1f7   :  { %v1265_v4 = vmax.f32 %v1215_v46, 0.0 }
 0x1f8   :  { %v1073_v16 = vpop.f32.mrb[30].mxu1 }
 0x1f9   :  { %v1217_v26 = vadd.f32 %v5195_v45, %v1073_v16  ;;  %v5305_v29 = vpop.f32.mrb[31].mxu1  ;;  %1477 = vmatmul.mubr.f32.gmra.mrb[60].mxu0 %v1265_v4  ;;  %v5316_v4 = vpop.permute.xlu0 %2162 }
 0x1fa   :  { %6756 = vst [vmem:[#allocation70_spill] sm:$0xff] %v5305_v29  ;;  %1482 = vmatprep.mubr.f32.mxu0 %v6714_v11 }
 0x1fb   :  { %v1266_v19 = vmax.f32 %v1217_v26, 0.0 }
 0x1fc   :  { %v1079_v5 = vpop.f32.mrb[32].mxu1 }
 0x1fd   :  { %v1219_v34 = vadd.f32 %v5195_v45, %v1079_v5  ;;  %v1081_v63 = vpop.f32.mrb[33].mxu1  ;;  %1483 = vmatmul.mubr.f32.gmra.mrb[62].mxu0 %v1266_v19 }
 0x1fe   :  { %v5312_v54 = vadd.f32 %v5201_v38, %v1081_v63  ;;  %1488 = vmatprep.mubr.f32.mxu0 %v6714_v11 }
 0x1ff   :  { %v1267_v46 = vmax.f32 %v1219_v34, 0.0 }
 0x200   :  { %6757 = vst [vmem:[#allocation71_spill] sm:$0xff] %v5312_v54  ;;  %v1665_v16 = vmax.f32 %v5312_v54, 0.0  ;;  %v1085_v29 = vpop.f32.mrb[34].mxu1 }
 0x201   :  { %v1221_v49 = vadd.f32 %v5195_v45, %v1085_v29  ;;  %v1087_v42 = vpop.f32.mrb[35].mxu1  ;;  %1489 = vmatmul.mubr.f32.gmra.mrb[64].mxu0 %v1267_v46 }
 0x202   :  { %v3142_v26 = vmul.f32 %v5207_v13, %v1665_v16  ;;  %v5321_v5 = vadd.f32 %v5201_v38, %v1087_v42  ;;  %1494 = vmatprep.mubr.f32.mxu0 %v6714_v11  ;;  %v5332_v42 = vpop.permute.xlu0 %2098 }
 0x203   :  { %v1268_v63 = vmax.f32 %v1221_v49, 0.0 }
 0x204   :  { %6758 = vst [vmem:[#allocation72_spill] sm:$0xff] %v5321_v5  ;;  %v1666_v19 = vmax.f32 %v5321_v5, 0.0  ;;  %v1091_v34 = vpop.f32.mrb[36].mxu1  ;;  %3222 = vrot.lane.b32.xlu0 %v3142_v26, %s4076_s29 }
 0x205   :  { %v1223_v54 = vadd.f32 %v5195_v45, %v1091_v34  ;;  %v1093_v56 = vpop.f32.mrb[37].mxu1  ;;  %1495 = vmatmul.mubr.f32.gmra.mrb[66].mxu0 %v1268_v63 }
 0x206   :  { %v3143_v29 = vmul.f32 %v5207_v13, %v1666_v19  ;;  %v5329_v46 = vadd.f32 %v5201_v38, %v1093_v56  ;;  %1500 = vmatprep.mubr.f32.mxu0 %v6714_v11 }
 0x207   :  { %v1269_v16 = vmax.f32 %v1223_v54, 0.0 }
 0x208   :  { %6759 = vst [vmem:[#allocation73_spill] sm:$0xff] %v5329_v46  ;;  %v1667_v49 = vmax.f32 %v5329_v46, 0.0  ;;  %v1097_v5 = vpop.f32.mrb[38].mxu1  ;;  %3224 = vrot.lane.b32.xlu1 %v3143_v29, %s4076_s29  ;;  %v5344_v46 = vpop.permute.xlu0 %2170 }
 0x209   :  { %v1225_v26 = vadd.f32 %v5195_v45, %v1097_v5  ;;  %v1099_v34 = vpop.f32.mrb[39].mxu1  ;;  %1501 = vmatmul.mubr.f32.gmra.mrb[68].mxu0 %v1269_v16 }
 0x20a   :  { %v3144_v63 = vmul.f32 %v5207_v13, %v1667_v49  ;;  %v5339_v19 = vadd.f32 %v5201_v38, %v1099_v34  ;;  %1506 = vmatprep.mubr.f32.mxu0 %v6714_v11 }
 0x20b   :  { %v1270_v56 = vmax.f32 %v1225_v26, 0.0 }
 0x20c   :  { %6760 = vst [vmem:[#allocation74_spill] sm:$0xff] %v5339_v19  ;;  %v1668_v37 = vmax.f32 %v5339_v19, 0.0  ;;  %v1103_v54 = vpop.f32.mrb[40].mxu1  ;;  %3226 = vrot.lane.b32.xlu0 %v3144_v63, %s4076_s29 }
 0x20d   :  { %v1227_v29 = vadd.f32 %v5195_v45, %v1103_v54  ;;  %v1105_v5 = vpop.f32.mrb[41].mxu1  ;;  %1507 = vmatmul.mubr.f32.gmra.mrb[70].mxu0 %v1270_v56 }
 0x20e   :  { %v3145_v16 = vmul.f32 %v5207_v13, %v1668_v37  ;;  %v5349_v49 = vadd.f32 %v5201_v38, %v1105_v5  ;;  %1512 = vmatprep.mubr.f32.mxu0 %v6714_v11  ;;  %v5360_v37 = vpop.permute.xlu0 %2106 }
 0x20f   :  { %v1271_v34 = vmax.f32 %v1227_v29, 0.0 }
 0x210   :  { %6761 = vst [vmem:[#allocation75_spill] sm:$0xff] %v5349_v49  ;;  %v1669_v26 = vmax.f32 %v5349_v49, 0.0  ;;  %v1109_v19 = vpop.f32.mrb[42].mxu1  ;;  %3228 = vrot.lane.b32.xlu1 %v3145_v16, %s4076_s29 }
 0x211   :  { %v1229_v63 = vadd.f32 %v5195_v45, %v1109_v19  ;;  %v1111_v30 = vpop.f32.mrb[43].mxu1  ;;  %1513 = vmatmul.mubr.f32.gmra.mrb[72].mxu0 %v1271_v34 }
 0x212   :  { %v3146_v54 = vmul.f32 %v5207_v13, %v1669_v26  ;;  %v5357_v56 = vadd.f32 %v5201_v38, %v1111_v30  ;;  %1518 = vmatprep.mubr.f32.mxu0 %v6714_v11 }
 0x213   :  { %v1272_v5 = vmax.f32 %v1229_v63, 0.0 }
 0x214   :  { %6762 = vst [vmem:[#allocation76_spill] sm:$0xff] %v5357_v56  ;;  %v1670_v29 = vmax.f32 %v5357_v56, 0.0  ;;  %v1115_v49 = vpop.f32.mrb[44].mxu1  ;;  %3230 = vrot.lane.b32.xlu0 %v3146_v54, %s4076_s29  ;;  %v5372_v56 = vpop.permute.xlu0 %2178 }
 0x215   :  { %v1231_v16 = vadd.f32 %v5195_v45, %v1115_v49  ;;  %v1117_v19 = vpop.f32.mrb[45].mxu1  ;;  %1519 = vmatmul.mubr.f32.gmra.mrb[74].mxu0 %v1272_v5 }
 0x216   :  { %v3147_v34 = vmul.f32 %v5207_v13, %v1670_v29  ;;  %v5367_v26 = vadd.f32 %v5201_v38, %v1117_v19  ;;  %1524 = vmatprep.mubr.f32.mxu0 %v6714_v11 }
 0x217   :  { %v1273_v30 = vmax.f32 %v1231_v16, 0.0 }
 0x218   :  { %6763 = vst [vmem:[#allocation77_spill] sm:$0xff] %v5367_v26  ;;  %v1671_v51 = vmax.f32 %v5367_v26, 0.0  ;;  %v1121_v63 = vpop.f32.mrb[46].mxu1  ;;  %3232 = vrot.lane.b32.xlu1 %v3147_v34, %s4076_s29 }
 0x219   :  { %v1233_v54 = vadd.f32 %v5195_v45, %v1121_v63  ;;  %v1123_v49 = vpop.f32.mrb[47].mxu1  ;;  %1525 = vmatmul.mubr.f32.gmra.mrb[76].mxu0 %v1273_v30 }
 0x21a   :  { %v3148_v5 = vmul.f32 %v5207_v13, %v1671_v51  ;;  %v5377_v29 = vadd.f32 %v5201_v38, %v1123_v49  ;;  %1530 = vmatprep.mubr.f32.mxu0 %v6714_v11  ;;  %v5387_v51 = vpop.permute.xlu0 %2114 }
 0x21b   :  { %v1274_v19 = vmax.f32 %v1233_v54, 0.0 }
 0x21c   :  { %6764 = vst [vmem:[#allocation78_spill] sm:$0xff] %v5377_v29  ;;  %v1672_v16 = vmax.f32 %v5377_v29, 0.0  ;;  %v1127_v26 = vpop.f32.mrb[48].mxu1  ;;  %3234 = vrot.lane.b32.xlu0 %v3148_v5, %s4076_s29 }
 0x21d   :  { %v1235_v34 = vadd.f32 %v5195_v45, %v1127_v26  ;;  %v5383_v28 = vpop.f32.mrb[49].mxu1  ;;  %1531 = vmatmul.mubr.f32.gmra.mrb[78].mxu0 %v1274_v19 }
 0x21e   :  { %6765 = vst [vmem:[#allocation79_spill] sm:$0xff] %v5383_v28  ;;  %v3149_v30 = vmul.f32 %v5207_v13, %v1672_v16  ;;  %1536 = vmatprep.mubr.f32.mxu0 %v6714_v11  ;;  %v5394_v19 = vpop.permute.xlu0 %2186 }
 0x21f   :  { %v1275_v63 = vmax.f32 %v1235_v34, 0.0  ;;  %6767 = vst [vmem:[#allocation81_spill] sm:$0xff] %v5394_v19 }
 0x220   :  { %v1133_v49 = vpop.f32.mrb[50].mxu1  ;;  %3236 = vrot.lane.b32.xlu1 %v3149_v30, %s4076_s29 }
 0x221   :  { %v1237_v54 = vadd.f32 %v5195_v45, %v1133_v49  ;;  %v5391_v29 = vpop.f32.mrb[51].mxu1  ;;  %1537 = vmatmul.mubr.f32.gmra.mrb[80].mxu0 %v1275_v63 }
 0x222   :  { %6766 = vst [vmem:[#allocation80_spill] sm:$0xff] %v5391_v29  ;;  %1542 = vmatprep.mubr.f32.mxu0 %v6714_v11  ;;  %v5404_v63 = vpop.permute.xlu0 %2122 }
 0x223   :  { %v1276_v26 = vmax.f32 %v1237_v54, 0.0 }
 0x224   :  { %v1139_v5 = vpop.f32.mrb[52].mxu1 }
 0x225   :  { %v1239_v16 = vadd.f32 %v5195_v45, %v1139_v5  ;;  %v5397_v28 = vpop.f32.mrb[53].mxu1  ;;  %1543 = vmatmul.mubr.f32.gmra.mrb[82].mxu0 %v1276_v26 }
 0x226   :  { %6768 = vst [vmem:[#allocation82_spill] sm:$0xff] %v5397_v28  ;;  %1548 = vmatprep.mubr.f32.mxu0 %v6714_v11  ;;  %v5410_v28 = vpop.permute.xlu0 %2290 }
 0x227   :  { %v1277_v34 = vmax.f32 %v1239_v16, 0.0 }
 0x228   :  { %v1145_v30 = vpop.f32.mrb[54].mxu1 }
 0x229   :  { %v1241_v49 = vadd.f32 %v5195_v45, %v1145_v30  ;;  %v5401_v13 = vpop.f32.mrb[55].mxu1  ;;  %1549 = vmatmul.mubr.f32.gmra.mrb[84].mxu0 %v1277_v34 }
 0x22a   :  { %6769 = vst [vmem:[#allocation83_spill] sm:$0xff] %v5401_v13  ;;  %1554 = vmatprep.mubr.f32.mxu0 %v6714_v11 }
 0x22b   :  { %v1278_v54 = vmax.f32 %v1241_v49, 0.0 }
 0x22c   :  { %v1151_v29 = vpop.f32.mrb[56].mxu1 }
 0x22d   :  { %v1243_v5 = vadd.f32 %v5195_v45, %v1151_v29  ;;  %v5407_v38 = vpop.f32.mrb[57].mxu1  ;;  %1555 = vmatmul.mubr.f32.gmra.mrb[86].mxu0 %v1278_v54  ;;  %v2231_v54 = vpop.permute.xlu0 %2230 }
 0x22e   :  { %6770 = vst [vmem:[#allocation84_spill] sm:$0xff] %v5407_v38  ;;  %1560 = vmatprep.mubr.f32.mxu0 %v6714_v11 }
 0x22f   :  { %v1279_v26 = vmax.f32 %v1243_v5, 0.0 }
 0x230   :  { %v1157_v16 = vpop.f32.mrb[58].mxu1 }
 0x231   :  { %v1245_v30 = vadd.f32 %v5195_v45, %v1157_v16  ;;  %v5413_v34 = vpop.f32.mrb[59].mxu1  ;;  %1561 = vmatmul.mubr.f32.gmra.mrb[88].mxu0 %v1279_v26 }
 0x232   :  { %6771 = vst [vmem:[#allocation85_spill] sm:$0xff] %v5413_v34  ;;  %1566 = vmatprep.mubr.f32.mxu0 %v6714_v11 }
 0x233   :  { %v1280_v49 = vmax.f32 %v1245_v30, 0.0  ;;  %v5424_v30 = vpop.permute.xlu0 %2302 }
 0x234   :  { %v1163_v13 = vpop.f32.mrb[60].mxu1 }
 0x235   :  { %v1247_v29 = vadd.f32 %v5195_v45, %v1163_v13  ;;  %v5417_v12 = vpop.f32.mrb[61].mxu1  ;;  %1567 = vmatmul.mubr.f32.gmra.mrb[90].mxu0 %v1280_v49 }
 0x236   :  { %6772 = vst [vmem:[#allocation86_spill] sm:$0xff] %v5417_v12  ;;  %1572 = vmatprep.mubr.f32.mxu0 %v6714_v11 }
 0x237   :  { %v1281_v5 = vmax.f32 %v1247_v29, 0.0  ;;  %v2239_v13 = vpop.permute.xlu0 %2238 }
 0x238   :  { %v1169_v38 = vpop.f32.mrb[62].mxu1 }
 0x239   :  { %v1249_v23 = vadd.f32 %v5195_v45, %v1169_v38  ;;  %v5421_v16 = vpop.f32.mrb[63].mxu1  ;;  %1573 = vmatmul.mubr.f32.gmra.mrb[92].mxu0 %v1281_v5 }
 0x23a   :  { %6773 = vst [vmem:[#allocation87_spill] sm:$0xff] %v5421_v16  ;;  %1578 = vmatprep.mubr.f32.mxu0 %v6714_v11 }
 0x23b   :  { %v1282_v26 = vmax.f32 %v1249_v23, 0.0  ;;  %v5426_v34 = vpop.permute.xlu0 %2310 }
 0x23d   :  { %1579 = vmatmul.mubr.f32.gmra.mrb[94].mxu0 %v1282_v26 }
 0x23f   :  { %v5428_v49 = vpop.permute.xlu0 %2246 }
 0x243   :  { %v5430_v12 = vpop.permute.xlu0 %2318 }
 0x247   :  { %v5432_v29 = vpop.permute.xlu0 %2254 }
 0x24b   :  { %v5434_v9 = vpop.permute.xlu0 %2322 }
 0x24f   :  { %v5436_v38 = vpop.permute.xlu0 %2258 }
 0x253   :  { %v5438_v45 = vpop.permute.xlu0 %2330 }
 0x257   :  { %v5440_v11 = vpop.permute.xlu0 %2266 }
 0x25b   :  { %v5442_v23 = vpop.permute.xlu0 %2338 }
 0x25c   :  { %6774 = vst [vmem:[#allocation88_spill] sm:$0xff] %v5442_v23 }
 0x25f   :  { %v5444_v5 = vpop.permute.xlu0 %2274 }
 0x260   :  { %6775 = vst [vmem:[#allocation89_spill] sm:$0xff] %v5444_v5 }
 0x263   :  { %v5446_v26 = vpop.permute.xlu0 %2346 }
 0x264   :  { %6776 = vst [vmem:[#allocation90_spill] sm:$0xff] %v5446_v26 }
 0x267   :  { %v5448_v16 = vpop.permute.xlu0 %2282 }
 0x268   :  { %6777 = vst [vmem:[#allocation91_spill] sm:$0xff] %v5448_v16 }
 0x26b   :  { %v5457_v60 = vpop.permute.xlu0 %1715 }
 0x26f   :  { %v5463_v26 = vpop.permute.xlu0 %1720 }
 0x294   :  { %v1394_v32 = vpop.f32.mrb[32].mxu0 }
 0x295   :  { %v1395_v19 = vadd.f32 %v1394_v32, %v5455_v2  ;;  %v1396_v23 = vpop.f32.mrb[33].mxu0 }
 0x296   :  { %v5461_v5 = vadd.f32 %v1396_v23, %v4627_v17  ;;  %v5479_v23 = vpop.permute.xlu0 %1735 }
 0x297   :  { %v5465_v16 = vand.u32 2147483647, %v1395_v19 }
 0x298   :  { %6779 = vst [vmem:[#allocation92_spill] sm:$0xff] %v5461_v5  ;;  %v1400_v10 = vpop.f32.mrb[34].mxu0 }
 0x299   :  { %v1401_v53 = vadd.f32 %v1400_v10, %v5455_v2  ;;  %v1402_v61 = vpop.f32.mrb[35].mxu0  ;;  %v2193_v62 = vmul.f32 %v5084_v31, %v5465_v16  ;;  %v2353_v59 = vmul.f32 %v5177_v57, %v5465_v16 }
 0x29a   :  { %v5473_v32 = vadd.f32 %v1402_v61, %v4627_v17 }
 0x29b   :  { %v5475_v6 = vand.u32 2147483647, %v1401_v53  ;;  %2449 = vrot.lane.b32.xlu1 %v2193_v62, %s4076_s29  ;;  %2769 = vrot.lane.b32.xlu0 %v2353_v59, %s4075_s22 }
 0x29c   :  { %6780 = vst [vmem:[#allocation93_spill] sm:$0xff] %v5473_v32  ;;  %v1406_v19 = vpop.f32.mrb[36].mxu0 }
 0x29d   :  { %v1407_v10 = vadd.f32 %v1406_v19, %v5455_v2  ;;  %v1408_v5 = vpop.f32.mrb[37].mxu0  ;;  %v2194_v31 = vmul.f32 %v5252_v36, %v5475_v6  ;;  %v2354_v57 = vmul.f32 %v2231_v54, %v5475_v6 }
 0x29e   :  { %v5486_v61 = vadd.f32 %v1408_v5, %v4627_v17  ;;  %v5500_v5 = vpop.permute.xlu0 %1745 }
 0x29f   :  { %v5488_v53 = vand.u32 2147483647, %v1407_v10  ;;  %2451 = vrot.lane.b32.xlu0 %v2194_v31, %s4076_s29  ;;  %2771 = vrot.lane.b32.xlu1 %v2354_v57, %s4075_s22 }
 0x2a0   :  { %v1412_v62 = vpop.f32.mrb[38].mxu0 }
 0x2a1   :  { %v1413_v59 = vadd.f32 %v1412_v62, %v5455_v2  ;;  %v1414_v32 = vpop.f32.mrb[39].mxu0  ;;  %v2355_v19 = vmul.f32 %v5181_v3, %v5488_v53  ;;  %v2195_v36 = vmul.f32 %v5091_v55, %v5488_v53 }
 0x2a2   :  { %v5498_v54 = vadd.f32 %v1414_v32, %v4627_v17 }
 0x2a3   :  { %v5502_v10 = vand.u32 2147483647, %v1413_v59  ;;  %2773 = vrot.lane.b32.xlu0 %v2355_v19, %s4075_s22  ;;  %2453 = vrot.lane.b32.xlu1 %v2195_v36, %s4076_s29  ;;  %v5517_v19 = vpop.permute.xlu0 %1755 }
 0x2a4   :  { %6781 = vst [vmem:[#allocation94_spill] sm:$0xff] %v5498_v54  ;;  %v1418_v31 = vpop.f32.mrb[40].mxu0 }
 0x2a5   :  { %v1419_v57 = vadd.f32 %v1418_v31, %v5455_v2  ;;  %v1420_v62 = vpop.f32.mrb[41].mxu0  ;;  %v2196_v3 = vmul.f32 %v5098_v15, %v5502_v10  ;;  %v2356_v55 = vmul.f32 %v2239_v13, %v5502_v10 }
 0x2a6   :  { %v5511_v32 = vadd.f32 %v1420_v62, %v4627_v17 }
 0x2a7   :  { %v5513_v54 = vand.u32 2147483647, %v1419_v57  ;;  %2455 = vrot.lane.b32.xlu0 %v2196_v3, %s4076_s29  ;;  %2775 = vrot.lane.b32.xlu1 %v2356_v55, %s4075_s22 }
 0x2a8   :  { %6782 = vst [vmem:[#allocation95_spill] sm:$0xff] %v5511_v32  ;;  %v1424_v59 = vpop.f32.mrb[42].mxu0 }
 0x2a9   :  { %v1425_v36 = vadd.f32 %v1424_v59, %v5455_v2  ;;  %v1426_v31 = vpop.f32.mrb[43].mxu0  ;;  %v2357_v15 = vmul.f32 %v5185_v18, %v5513_v54  ;;  %v2197_v13 = vmul.f32 %v5266_v50, %v5513_v54 }
 0x2aa   :  { %v5525_v62 = vadd.f32 %v1426_v31, %v4627_v17  ;;  %v5539_v31 = vpop.permute.xlu0 %1765 }
 0x2ab   :  { %v5527_v57 = vand.u32 2147483647, %v1425_v36  ;;  %2777 = vrot.lane.b32.xlu0 %v2357_v15, %s4075_s22  ;;  %2457 = vrot.lane.b32.xlu1 %v2197_v13, %s4076_s29  ;;  %6785 = vst [vmem:[#allocation98_spill] sm:$0xff] %v5539_v31 }
 0x2ac   :  { %6783 = vst [vmem:[#allocation96_spill] sm:$0xff] %v5525_v62  ;;  %v1430_v3 = vpop.f32.mrb[44].mxu0 }
 0x2ad   :  { %v1431_v55 = vadd.f32 %v1430_v3, %v5455_v2  ;;  %v1432_v59 = vpop.f32.mrb[45].mxu0  ;;  %v2198_v32 = vmul.f32 %v5136_v1, %v5527_v57  ;;  %v2358_v18 = vmul.f32 %v5428_v49, %v5527_v57 }
 0x2ae   :  { %v5537_v50 = vadd.f32 %v1432_v59, %v4627_v17 }
 0x2af   :  { %v5541_v36 = vand.u32 2147483647, %v1431_v55  ;;  %2459 = vrot.lane.b32.xlu0 %v2198_v32, %s4076_s29  ;;  %2779 = vrot.lane.b32.xlu1 %v2358_v18, %s4075_s22 }
 0x2b0   :  { %6784 = vst [vmem:[#allocation97_spill] sm:$0xff] %v5537_v50  ;;  %v1436_v15 = vpop.f32.mrb[46].mxu0  ;;  %v5554_v50 = vpop.permute.xlu0 %1775 }
 0x2b1   :  { %v1437_v13 = vadd.f32 %v1436_v15, %v5455_v2  ;;  %v1438_v3 = vpop.f32.mrb[47].mxu0  ;;  %v2199_v1 = vmul.f32 %v5308_v40, %v5541_v36  ;;  %6787 = vst [vmem:[#allocation100_spill] sm:$0xff] %v5554_v50  ;;  %v2359_v15 = vmul.f32 %v5197_v43, %v5541_v36  ;;  %v5561_v40 = vpop.permute.xlu1 %2326 }
 0x2b2   :  { %v5549_v49 = vadd.f32 %v1438_v3, %v4627_v17 }
 0x2b3   :  { %v5551_v59 = vand.u32 2147483647, %v1437_v13  ;;  %2461 = vrot.lane.b32.xlu0 %v2199_v1, %s4076_s29 }
 0x2b4   :  { %6786 = vst [vmem:[#allocation99_spill] sm:$0xff] %v5549_v49  ;;  %v1442_v55 = vpop.f32.mrb[48].mxu0 }
 0x2b5   :  { %v1443_v32 = vadd.f32 %v1442_v55, %v5455_v2  ;;  %v1444_v18 = vpop.f32.mrb[49].mxu0  ;;  %v2200_v62 = vmul.f32 %v5148_v33, %v5551_v59  ;;  %v2360_v33 = vmul.f32 %v5432_v29, %v5551_v59 }
 0x2b6   :  { %v5564_v3 = vadd.f32 %v1444_v18, %v4627_v17  ;;  %v5578_v18 = vpop.permute.xlu0 %1785 }
 0x2b7   :  { %v5566_v13 = vand.u32 2147483647, %v1443_v32  ;;  %2781 = vrot.lane.b32.xlu0 %v2359_v15, %s4075_s22  ;;  %2463 = vrot.lane.b32.xlu1 %v2200_v62, %s4076_s29  ;;  %6790 = vst [vmem:[#allocation103_spill] sm:$0xff] %v5578_v18  ;;  %v2263_v62 = vpop.permute.xlu1 %2262 }
 0x2b8   :  { %6788 = vst [vmem:[#allocation101_spill] sm:$0xff] %v5564_v3  ;;  %v1448_v1 = vpop.f32.mrb[50].mxu0 }
 0x2b9   :  { %v1449_v55 = vadd.f32 %v1448_v1, %v5455_v2  ;;  %v1450_v50 = vpop.f32.mrb[51].mxu0  ;;  %v2201_v43 = vmul.f32 %v5332_v42, %v5566_v13  ;;  %v2361_v29 = vmul.f32 %v5436_v38, %v5566_v13 }
 0x2ba   :  { %v5576_v49 = vadd.f32 %v1450_v50, %v4627_v17 }
 0x2bb   :  { %v5580_v32 = vand.u32 2147483647, %v1449_v55  ;;  %2465 = vrot.lane.b32.xlu0 %v2201_v43, %s4076_s29  ;;  %2783 = vrot.lane.b32.xlu1 %v2360_v33, %s4075_s22  ;;  %v5596_v33 = vpop.permute.xlu0 %1795 }
 0x2bc   :  { %6789 = vst [vmem:[#allocation102_spill] sm:$0xff] %v5576_v49  ;;  %v1454_v15 = vpop.f32.mrb[52].mxu0  ;;  %6794 = vst [vmem:[#allocation107_spill] sm:$0xff] %v5596_v33  ;;  %v5602_v49 = vpop.permute.xlu1 %2334 }
 0x2bd   :  { %6791 = vst [vmem:[#allocation104_spill] sm:$0xff] %v5580_v32  ;;  %v1455_v1 = vadd.f32 %v1454_v15, %v5455_v2  ;;  %v1456_v3 = vpop.f32.mrb[53].mxu0  ;;  %v2202_v42 = vmul.f32 %v5161_v14, %v5580_v32  ;;  %v2362_v14 = vmul.f32 %v2263_v62, %v5580_v32 }
 0x2be   :  { %v5590_v50 = vadd.f32 %v1456_v3, %v4627_v17 }
 0x2bf   :  { %v5592_v55 = vand.u32 2147483647, %v1455_v1  ;;  %2467 = vrot.lane.b32.xlu1 %v2202_v42, %s4076_s29  ;;  %2785 = vrot.lane.b32.xlu0 %v2361_v29, %s4075_s22 }
 0x2c0   :  { %6792 = vst [vmem:[#allocation105_spill] sm:$0xff] %v5590_v50  ;;  %v1460_v43 = vpop.f32.mrb[54].mxu0 }
 0x2c1   :  { %6793 = vst [vmem:[#allocation106_spill] sm:$0xff] %v5592_v55  ;;  %v1461_v15 = vadd.f32 %v1460_v43, %v5455_v2  ;;  %v1462_v18 = vpop.f32.mrb[55].mxu0  ;;  %v2203_v38 = vmul.f32 %v5360_v37, %v5592_v55  ;;  %v2363_v37 = vmul.f32 %v5440_v11, %v5592_v55 }
 0x2c2   :  { %v5605_v3 = vadd.f32 %v1462_v18, %v4627_v17  ;;  %v5619_v18 = vpop.permute.xlu0 %1805 }
 0x2c3   :  { %v5607_v1 = vand.u32 2147483647, %v1461_v15  ;;  %2787 = vrot.lane.b32.xlu1 %v2362_v14, %s4075_s22  ;;  %2469 = vrot.lane.b32.xlu0 %v2203_v38, %s4076_s29  ;;  %6798 = vst [vmem:[#allocation111_spill] sm:$0xff] %v5619_v18  ;;  %v2271_v14 = vpop.permute.xlu1 %2270 }
 0x2c4   :  { %6795 = vst [vmem:[#allocation108_spill] sm:$0xff] %v5605_v3  ;;  %v1466_v42 = vpop.f32.mrb[56].mxu0 }
 0x2c5   :  { %6796 = vst [vmem:[#allocation109_spill] sm:$0xff] %v5607_v1  ;;  %v1467_v29 = vadd.f32 %v1466_v42, %v5455_v2  ;;  %v1468_v43 = vpop.f32.mrb[57].mxu0  ;;  %v2204_v62 = vmul.f32 %v5165_v25, %v5607_v1  ;;  %v2364_v25 = vmul.f32 %v2271_v14, %v5607_v1 }
 0x2c6   :  { %v5617_v50 = vadd.f32 %v1468_v43, %v4627_v17  ;;  %v5639_v14 = vpop.permute.xlu0 %1815 }
 0x2c7   :  { %v5621_v15 = vand.u32 2147483647, %v1467_v29  ;;  %2471 = vrot.lane.b32.xlu1 %v2204_v62, %s4076_s29  ;;  %2789 = vrot.lane.b32.xlu0 %v2363_v37, %s4075_s22  ;;  %6800 = vst [vmem:[#allocation113_spill] sm:$0xff] %v5639_v14 }
 0x2c8   :  { %6797 = vst [vmem:[#allocation110_spill] sm:$0xff] %v5617_v50  ;;  %v1472_v38 = vpop.f32.mrb[58].mxu0 }
 0x2c9   :  { %v1473_v42 = vadd.f32 %v1472_v38, %v5455_v2  ;;  %v1474_v3 = vpop.f32.mrb[59].mxu0  ;;  %v2205_v11 = vmul.f32 %v5387_v51, %v5621_v15 }
 0x2ca   :  { %v5630_v43 = vadd.f32 %v1474_v3, %v4627_v17 }
 0x2cb   :  { %v5632_v50 = vand.u32 2147483647, %v1473_v42  ;;  %2791 = vrot.lane.b32.xlu1 %v2364_v25, %s4075_s22  ;;  %2473 = vrot.lane.b32.xlu0 %v2205_v11, %s4076_s29 }
 0x2cc   :  { %6799 = vst [vmem:[#allocation112_spill] sm:$0xff] %v5630_v43  ;;  %v1478_v29 = vpop.f32.mrb[60].mxu0 }
 0x2cd   :  { %v1479_v62 = vadd.f32 %v1478_v29, %v5455_v2  ;;  %v1480_v37 = vpop.f32.mrb[61].mxu0  ;;  %v2206_v38 = vmul.f32 %v5169_v20, %v5632_v50 }
 0x2ce   :  { %v5642_v51 = vadd.f32 %v1480_v37, %v4627_v17  ;;  %v5656_v37 = vpop.permute.xlu0 %1825 }
 0x2cf   :  { %v5644_v3 = vand.u32 2147483647, %v1479_v62  ;;  %2475 = vrot.lane.b32.xlu1 %v2206_v38, %s4076_s29  ;;  %6805 = vst [vmem:[#allocation118_spill] sm:$0xff] %v5656_v37 }
 0x2d0   :  { %6801 = vst [vmem:[#allocation114_spill] sm:$0xff] %v5642_v51  ;;  %v1484_v42 = vpop.f32.mrb[62].mxu0 }
 0x2d1   :  { %6802 = vst [vmem:[#allocation115_spill] sm:$0xff] %v5644_v3  ;;  %v1485_v25 = vadd.f32 %v1484_v42, %v5455_v2  ;;  %v1486_v11 = vpop.f32.mrb[63].mxu0  ;;  %v2207_v29 = vmul.f32 %v5404_v63, %v5644_v3 }
 0x2d2   :  { %v5651_v43 = vadd.f32 %v1486_v11, %v4627_v17  ;;  %v5667_v11 = vpop.permute.xlu1 %2342 }
 0x2d3   :  { %v5653_v20 = vand.u32 2147483647, %v1485_v25  ;;  %2477 = vrot.lane.b32.xlu0 %v2207_v29, %s4076_s29 }
 0x2d4   :  { %6803 = vst [vmem:[#allocation116_spill] sm:$0xff] %v5651_v43  ;;  %v1490_v62 = vpop.f32.mrb[64].mxu0 }
 0x2d5   :  { %6804 = vst [vmem:[#allocation117_spill] sm:$0xff] %v5653_v20  ;;  %v1491_v51 = vadd.f32 %v1490_v62, %v5455_v2  ;;  %v1492_v38 = vpop.f32.mrb[65].mxu0  ;;  %v2208_v42 = vmul.f32 %v5173_v44, %v5653_v20  ;;  %v5674_v44 = vpop.permute.xlu0 %1835 }
 0x2d6   :  { %v5662_v14 = vadd.f32 %v1492_v38, %v4627_v17  ;;  %6808 = vst [vmem:[#allocation121_spill] sm:$0xff] %v5674_v44 }
 0x2d7   :  { %v5664_v63 = vand.u32 2147483647, %v1491_v51  ;;  %2479 = vrot.lane.b32.xlu1 %v2208_v42, %s4076_s29 }
 0x2d8   :  { %6806 = vst [vmem:[#allocation119_spill] sm:$0xff] %v5662_v14  ;;  %v1496_v25 = vpop.f32.mrb[66].mxu0 }
 0x2d9   :  { %6807 = vst [vmem:[#allocation120_spill] sm:$0xff] %v5664_v63  ;;  %v1497_v29 = vadd.f32 %v1496_v25, %v5455_v2  ;;  %v1498_v43 = vpop.f32.mrb[67].mxu0  ;;  %v2209_v62 = vmul.f32 %v5110_v7, %v5664_v63  ;;  %v2369_v37 = vmul.f32 %v5410_v28, %v5664_v63 }
 0x2da   :  { %v5677_v38 = vadd.f32 %v1498_v43, %v4627_v17  ;;  %v5691_v43 = vpop.permute.xlu1 %2278 }
 0x2db   :  { %v5679_v51 = vand.u32 2147483647, %v1497_v29  ;;  %2481 = vrot.lane.b32.xlu1 %v2209_v62, %s4076_s29  ;;  %2801 = vrot.lane.b32.xlu0 %v2369_v37, %s4075_s22  ;;  %v5697_v37 = vpop.permute.xlu0 %1845 }
 0x2dc   :  { %6809 = vst [vmem:[#allocation122_spill] sm:$0xff] %v5677_v38  ;;  %v1502_v42 = vpop.f32.mrb[68].mxu0  ;;  %6812 = vst [vmem:[#allocation125_spill] sm:$0xff] %v5697_v37 }
 0x2dd   :  { %6810 = vst [vmem:[#allocation123_spill] sm:$0xff] %v5679_v51  ;;  %v1503_v25 = vadd.f32 %v1502_v42, %v5455_v2  ;;  %v1504_v14 = vpop.f32.mrb[69].mxu0  ;;  %v2370_v7 = vmul.f32 %v5175_v24, %v5679_v51  ;;  %v2210_v28 = vmul.f32 %v5276_v41, %v5679_v51 }
 0x2de   :  { %v5689_v44 = vadd.f32 %v1504_v14, %v4627_v17 }
 0x2df   :  { %v5693_v29 = vand.u32 2147483647, %v1503_v25  ;;  %2803 = vrot.lane.b32.xlu1 %v2370_v7, %s4075_s22  ;;  %2483 = vrot.lane.b32.xlu0 %v2210_v28, %s4076_s29  ;;  %v5711_v28 = vpop.permute.xlu1 %2350 }
 0x2e0   :  { %6811 = vst [vmem:[#allocation124_spill] sm:$0xff] %v5689_v44  ;;  %v1508_v62 = vpop.f32.mrb[70].mxu0 }
 0x2e1   :  { %v1509_v42 = vadd.f32 %v1508_v62, %v5455_v2  ;;  %v1510_v24 = vpop.f32.mrb[71].mxu0  ;;  %v2211_v41 = vmul.f32 %v5122_v8, %v5693_v29  ;;  %v2371_v14 = vmul.f32 %v5179_v27, %v5693_v29 }
 0x2e2   :  { %v5705_v44 = vadd.f32 %v1510_v24, %v4627_v17  ;;  %v5718_v24 = vpop.permute.xlu0 %1855 }
 0x2e3   :  { %v5707_v25 = vand.u32 2147483647, %v1509_v42  ;;  %2485 = vrot.lane.b32.xlu1 %v2211_v41, %s4076_s29  ;;  %2805 = vrot.lane.b32.xlu0 %v2371_v14, %s4075_s22  ;;  %6814 = vst [vmem:[#allocation127_spill] sm:$0xff] %v5718_v24 }
 0x2e4   :  { %6813 = vst [vmem:[#allocation126_spill] sm:$0xff] %v5705_v44  ;;  %v1514_v7 = vpop.f32.mrb[72].mxu0 }
 0x2e5   :  { %v1515_v62 = vadd.f32 %v1514_v7, %v5455_v2  ;;  %v1516_v37 = vpop.f32.mrb[73].mxu0  ;;  %v2372_v8 = vmul.f32 %v5424_v30, %v5707_v25  ;;  %v2212_v27 = vmul.f32 %v5282_v35, %v5707_v25 }
 0x2e6   :  { %v5721_v42 = vadd.f32 %v1516_v37, %v4627_v17  ;;  %v5735_v37 = vpop.permute.xlu1 %2286 }
 0x2e7   :  { %v5723_v41 = vand.u32 2147483647, %v1515_v62  ;;  %2807 = vrot.lane.b32.xlu1 %v2372_v8, %s4075_s22  ;;  %2487 = vrot.lane.b32.xlu0 %v2212_v27, %s4076_s29  ;;  %v5741_v8 = vpop.permute.xlu0 %1865 }
 0x2e8   :  { %6815 = vst [vmem:[#allocation128_spill] sm:$0xff] %v5721_v42  ;;  %v1520_v14 = vpop.f32.mrb[74].mxu0  ;;  %6817 = vst [vmem:[#allocation130_spill] sm:$0xff] %v5741_v8 }
 0x2e9   :  { %v1521_v7 = vadd.f32 %v1520_v14, %v5455_v2  ;;  %v1522_v44 = vpop.f32.mrb[75].mxu0  ;;  %v2213_v30 = vmul.f32 %v5129_v0, %v5723_v41  ;;  %v2373_v35 = vmul.f32 %v5183_v39, %v5723_v41 }
 0x2ea   :  { %v5733_v24 = vadd.f32 %v1522_v44, %v4627_v17 }
 0x2eb   :  { %v5737_v62 = vand.u32 2147483647, %v1521_v7  ;;  %2489 = vrot.lane.b32.xlu1 %v2213_v30, %s4076_s29  ;;  %2809 = vrot.lane.b32.xlu0 %v2373_v35, %s4075_s22  ;;  %v5755_v35 = vpop.permute.xlu1 %3192 }
 0x2ec   :  { %6816 = vst [vmem:[#allocation129_spill] sm:$0xff] %v5733_v24  ;;  %v1526_v27 = vpop.f32.mrb[76].mxu0  ;;  %6819 = vst [vmem:[#allocation132_spill] sm:$0xff] %v5755_v35  ;;  %v6875_v35 = vld [vmem:[#allocation53_spill] sm:$0xff] }
 0x2ed   :  { %v1527_v14 = vadd.f32 %v1526_v27, %v5455_v2  ;;  %v1528_v0 = vpop.f32.mrb[77].mxu0  ;;  %v2374_v39 = vmul.f32 %v5426_v34, %v5737_v62  ;;  %v2214_v44 = vmul.f32 %v5292_v47, %v5737_v62 }
 0x2ee   :  { %v5749_v24 = vadd.f32 %v1528_v0, %v4627_v17  ;;  %v5762_v0 = vpop.permute.xlu0 %3190 }
 0x2ef   :  { %v5751_v7 = vand.u32 2147483647, %v1527_v14  ;;  %2811 = vrot.lane.b32.xlu1 %v2374_v39, %s4075_s22  ;;  %2491 = vrot.lane.b32.xlu0 %v2214_v44, %s4076_s29 }
 0x2f0   :  { %6818 = vst [vmem:[#allocation131_spill] sm:$0xff] %v5749_v24  ;;  %v1532_v30 = vpop.f32.mrb[78].mxu0 }
 0x2f1   :  { %v1533_v27 = vadd.f32 %v1532_v30, %v5455_v2  ;;  %v1534_v8 = vpop.f32.mrb[79].mxu0  ;;  %v2215_v34 = vmul.f32 %v5298_v52, %v5751_v7  ;;  %v2375_v47 = vmul.f32 %v5187_v58, %v5751_v7  ;;  %v5771_v30 = vpop.permute.xlu1 %3196 }
 0x2f2   :  { %v5765_v14 = vadd.f32 %v1534_v8, %v4627_v17  ;;  %6822 = vst [vmem:[#allocation135_spill] sm:$0xff] %v5771_v30  ;;  %v5778_v8 = vpop.permute.xlu0 %3194 }
 0x2f3   :  { %v5767_v39 = vand.u32 2147483647, %v1533_v27  ;;  %2493 = vrot.lane.b32.xlu1 %v2215_v34, %s4076_s29  ;;  %2813 = vrot.lane.b32.xlu0 %v2375_v47, %s4075_s22  ;;  %6823 = vst [vmem:[#allocation136_spill] sm:$0xff] %v5778_v8 }
 0x2f4   :  { %6820 = vst [vmem:[#allocation133_spill] sm:$0xff] %v5765_v14  ;;  %v1538_v44 = vpop.f32.mrb[80].mxu0 }
 0x2f5   :  { %6821 = vst [vmem:[#allocation134_spill] sm:$0xff] %v5767_v39  ;;  %v1539_v24 = vadd.f32 %v1538_v44, %v5455_v2  ;;  %v1540_v52 = vpop.f32.mrb[81].mxu0  ;;  %v2376_v58 = vmul.f32 %v5430_v12, %v5767_v39  ;;  %v2216_v42 = vmul.f32 %v5142_v48, %v5767_v39  ;;  %v5787_v44 = vpop.permute.xlu1 %3200 }
 0x2f6   :  { %v5781_v27 = vadd.f32 %v1540_v52, %v4627_v17  ;;  %6825 = vst [vmem:[#allocation138_spill] sm:$0xff] %v5787_v44  ;;  %v5792_v38 = vpop.permute.xlu0 %3198 }
 0x2f7   :  { %v5783_v34 = vand.u32 2147483647, %v1539_v24  ;;  %2815 = vrot.lane.b32.xlu1 %v2376_v58, %s4075_s22  ;;  %2495 = vrot.lane.b32.xlu0 %v2216_v42, %s4076_s29  ;;  %6826 = vst [vmem:[#allocation139_spill] sm:$0xff] %v5792_v38 }
 0x2f8   :  { %6824 = vst [vmem:[#allocation137_spill] sm:$0xff] %v5781_v27  ;;  %v1544_v47 = vpop.f32.mrb[82].mxu0 }
 0x2f9   :  { %v1545_v14 = vadd.f32 %v1544_v47, %v5455_v2  ;;  %v1546_v12 = vpop.f32.mrb[83].mxu0  ;;  %v2217_v48 = vmul.f32 %v5316_v4, %v5783_v34  ;;  %v5800_v42 = vpop.permute.xlu1 %3224  ;;  %v2377_v4 = vmul.f32 %v5434_v9, %v5783_v34 }
 0x2fa   :  { %v5795_v52 = vadd.f32 %v1546_v12, %v4627_v17  ;;  %6829 = vst [vmem:[#allocation142_spill] sm:$0xff] %v5800_v42  ;;  %v5807_v33 = vpop.permute.xlu0 %3222 }
 0x2fb   :  { %v5797_v24 = vand.u32 2147483647, %v1545_v14  ;;  %2497 = vrot.lane.b32.xlu0 %v2217_v48, %s4076_s29  ;;  %6830 = vst [vmem:[#allocation143_spill] sm:$0xff] %v5807_v33 }
 0x2fc   :  { %6827 = vst [vmem:[#allocation140_spill] sm:$0xff] %v5795_v52  ;;  %v1550_v58 = vpop.f32.mrb[84].mxu0 }
 0x2fd   :  { %6828 = vst [vmem:[#allocation141_spill] sm:$0xff] %v5797_v24  ;;  %v1551_v27 = vadd.f32 %v1550_v58, %v5455_v2  ;;  %v1552_v18 = vpop.f32.mrb[85].mxu0  ;;  %v2218_v47 = vmul.f32 %v5155_v22, %v5797_v24  ;;  %v5816_v58 = vpop.permute.xlu1 %3228  ;;  %v2378_v9 = vmul.f32 %v5561_v40, %v5797_v24 }
 0x2fe   :  { %v5810_v12 = vadd.f32 %v1552_v18, %v4627_v17  ;;  %6832 = vst [vmem:[#allocation145_spill] sm:$0xff] %v5816_v58  ;;  %v5823_v18 = vpop.permute.xlu0 %3226 }
 0x2ff   :  { %v5812_v14 = vand.u32 2147483647, %v1551_v27  ;;  %2499 = vrot.lane.b32.xlu1 %v2218_v47, %s4076_s29  ;;  %2817 = vrot.lane.b32.xlu0 %v2377_v4, %s4075_s22  ;;  %6833 = vst [vmem:[#allocation146_spill] sm:$0xff] %v5823_v18 }
 0x300   :  { %6831 = vst [vmem:[#allocation144_spill] sm:$0xff] %v5810_v12  ;;  %v1556_v48 = vpop.f32.mrb[86].mxu0 }
 0x301   :  { %v1557_v52 = vadd.f32 %v1556_v48, %v5455_v2  ;;  %v1558_v22 = vpop.f32.mrb[87].mxu0  ;;  %v2219_v42 = vmul.f32 %v5344_v46, %v5812_v14  ;;  %v5832_v48 = vpop.permute.xlu1 %3232  ;;  %v2379_v58 = vmul.f32 %v5438_v45, %v5812_v14 }
 0x302   :  { %v5826_v27 = vadd.f32 %v1558_v22, %v4627_v17  ;;  %6835 = vst [vmem:[#allocation148_spill] sm:$0xff] %v5832_v48  ;;  %v5839_v22 = vpop.permute.xlu0 %3230 }
 0x303   :  { %v5828_v47 = vand.u32 2147483647, %v1557_v52  ;;  %2819 = vrot.lane.b32.xlu1 %v2378_v9, %s4075_s22  ;;  %2501 = vrot.lane.b32.xlu0 %v2219_v42, %s4076_s29  ;;  %6836 = vst [vmem:[#allocation149_spill] sm:$0xff] %v5839_v22 }
 0x304   :  { %6834 = vst [vmem:[#allocation147_spill] sm:$0xff] %v5826_v27  ;;  %v1562_v4 = vpop.f32.mrb[88].mxu0 }
 0x305   :  { %v1563_v12 = vadd.f32 %v1562_v4, %v5455_v2  ;;  %v1564_v40 = vpop.f32.mrb[89].mxu0  ;;  %v2220_v46 = vmul.f32 %v5163_v21, %v5828_v47  ;;  %v5848_v4 = vpop.permute.xlu1 %3236  ;;  %v2380_v45 = vmul.f32 %v5602_v49, %v5828_v47 }
 0x306   :  { %v5842_v52 = vadd.f32 %v1564_v40, %v4627_v17  ;;  %6838 = vst [vmem:[#allocation151_spill] sm:$0xff] %v5848_v4  ;;  %v5855_v40 = vpop.permute.xlu0 %3234 }
 0x307   :  { %v5844_v9 = vand.u32 2147483647, %v1563_v12  ;;  %2503 = vrot.lane.b32.xlu1 %v2220_v46, %s4076_s29  ;;  %2821 = vrot.lane.b32.xlu0 %v2379_v58, %s4075_s22  ;;  %6839 = vst [vmem:[#allocation152_spill] sm:$0xff] %v5855_v40 }
 0x308   :  { %6837 = vst [vmem:[#allocation150_spill] sm:$0xff] %v5842_v52  ;;  %v1568_v42 = vpop.f32.mrb[90].mxu0 }
 0x309   :  { %v1569_v27 = vadd.f32 %v1568_v42, %v5455_v2  ;;  %v1570_v21 = vpop.f32.mrb[91].mxu0  ;;  %v2221_v48 = vmul.f32 %v5372_v56, %v5844_v9  ;;  %v6842_v42 = vld [vmem:[#allocation21_spill] sm:$0xff] }
 0x30a   :  { %v5858_v12 = vadd.f32 %v1570_v21, %v4627_v17  ;;  %v2033_v52 = vmul.f32 %v6842_v42, %v5465_v16  ;;  %v6843_v56 = vld [vmem:[#allocation49_spill] sm:$0xff] }
 0x30b   :  { %v5860_v46 = vand.u32 2147483647, %v1569_v27  ;;  %2823 = vrot.lane.b32.xlu1 %v2380_v45, %s4075_s22  ;;  %2505 = vrot.lane.b32.xlu0 %v2221_v48, %s4076_s29 }
 0x30c   :  { %6840 = vst [vmem:[#allocation153_spill] sm:$0xff] %v5858_v12  ;;  %v1574_v58 = vpop.f32.mrb[92].mxu0 }
 0x30d   :  { %6841 = vst [vmem:[#allocation154_spill] sm:$0xff] %v5860_v46  ;;  %v1575_v49 = vadd.f32 %v1574_v58, %v5455_v2  ;;  %v1576_v4 = vpop.f32.mrb[93].mxu0  ;;  %v2450_v22 = vpop.permute.xlu1 %2449  ;;  %v2222_v40 = vmul.f32 %v6843_v56, %v5860_v46  ;;  %v6846_v56 = vld [vmem:[#allocation19_spill] sm:$0xff] }
 0x30e   :  { %v5870_v21 = vadd.f32 %v1576_v4, %v4627_v17  ;;  %v2545_v27 = vadd.f32 %v2450_v22, %v2033_v52  ;;  %v5872_v12 = vpop.permute.xlu0 %2769  ;;  %v2034_v33 = vmul.f32 %v6846_v56, %v5475_v6  ;;  %v6847_v4 = vld [vmem:[#allocation81_spill] sm:$0xff]  ;;  %v6851_v56 = vld [vmem:[#allocation50_spill] sm:$0xff] }
 0x30f   :  { %v5874_v45 = vand.u32 2147483647, %v1575_v49  ;;  %2507 = vrot.lane.b32.xlu1 %v2222_v40, %s4076_s29 }
 0x310   :  { %6844 = vst [vmem:[#allocation21_spill] sm:$0xff] %v5870_v21  ;;  %v1580_v48 = vpop.f32.mrb[94].mxu0  ;;  %2609 = vrot.lane.b32.xlu0 %v2545_v27, %s4076_s29 }
 0x311   :  { %6845 = vst [vmem:[#allocation49_spill] sm:$0xff] %v5874_v45  ;;  %v1581_v58 = vadd.f32 %v1580_v48, %v5455_v2  ;;  %v1582_v42 = vpop.f32.mrb[95].mxu0  ;;  %v5879_v18 = vpop.permute.xlu1 %2771  ;;  %v2223_v22 = vmul.f32 %v6847_v4, %v5874_v45  ;;  %v6850_v2 = vld [vmem:[#allocation20_spill] sm:$0xff] }
 0x312   :  { %v5886_v52 = vadd.f32 %v1582_v42, %v4627_v17  ;;  %v2452_v49 = vpop.permute.xlu0 %2451  ;;  %v2035_v27 = vmul.f32 %v6850_v2, %v5488_v53 }
 0x313   :  { %v5888_v21 = vand.u32 2147483647, %v1581_v58  ;;  %v2546_v40 = vadd.f32 %v2452_v49, %v2034_v33  ;;  %v6852_v33 = vld [vmem:[#allocation23_spill] sm:$0xff]  ;;  %v6853_v49 = vld [vmem:[#allocation22_spill] sm:$0xff] }
 0x314   :  { %6848 = vst [vmem:[#allocation19_spill] sm:$0xff] %v5886_v52  ;;  %2509 = vrot.lane.b32.xlu0 %v2223_v22, %s4076_s29  ;;  %v2036_v58 = vmul.f32 %v6852_v33, %v5502_v10  ;;  %v6855_v33 = vld [vmem:[#allocation24_spill] sm:$0xff] }
 0x315   :  { %6849 = vst [vmem:[#allocation81_spill] sm:$0xff] %v5888_v21  ;;  %2611 = vrot.lane.b32.xlu1 %v2546_v40, %s4076_s29  ;;  %v2454_v48 = vpop.permute.xlu1 %2453  ;;  %v2224_v44 = vmul.f32 %v6851_v56, %v5888_v21  ;;  %v2037_v40 = vmul.f32 %v6853_v49, %v5513_v54  ;;  %v6856_v49 = vld [vmem:[#allocation27_spill] sm:$0xff] }
 0x316   :  { %v2547_v38 = vadd.f32 %v2454_v48, %v2035_v27  ;;  %v5896_v4 = vpop.permute.xlu0 %2773 }
 0x318   :  { %2613 = vrot.lane.b32.xlu0 %v2547_v38, %s4076_s29  ;;  %v6854_v38 = vld [vmem:[#allocation25_spill] sm:$0xff] }
 0x319   :  { %2511 = vrot.lane.b32.xlu1 %v2224_v44, %s4076_s29  ;;  %v5900_v17 = vpop.permute.xlu1 %2775  ;;  %v2038_v44 = vmul.f32 %v6854_v38, %v5527_v57 }
 0x31a   :  { %v2456_v42 = vpop.permute.xlu0 %2455 }
 0x31b   :  { %v2548_v22 = vadd.f32 %v2456_v42, %v2036_v58  ;;  %v2039_v58 = vmul.f32 %v6855_v33, %v5541_v36 }
 0x31d   :  { %2615 = vrot.lane.b32.xlu1 %v2548_v22, %s4076_s29  ;;  %v2458_v2 = vpop.permute.xlu1 %2457 }
 0x31e   :  { %v2549_v27 = vadd.f32 %v2458_v2, %v2037_v40  ;;  %v5907_v48 = vpop.permute.xlu0 %2777  ;;  %v2040_v40 = vmul.f32 %v6856_v49, %v5551_v59 }
 0x320   :  { %2617 = vrot.lane.b32.xlu0 %v2549_v27, %s4076_s29 }
 0x321   :  { %v5912_v30 = vpop.permute.xlu1 %2779 }
 0x322   :  { %v2460_v56 = vpop.permute.xlu0 %2459 }
 0x323   :  { %v2550_v52 = vadd.f32 %v2460_v56, %v2038_v44 }
 0x325   :  { %2619 = vrot.lane.b32.xlu1 %v2550_v52, %s4076_s29  ;;  %v6858_v52 = vld [vmem:[#allocation26_spill] sm:$0xff] }
 0x326   :  { %v2462_v42 = vpop.permute.xlu0 %2461  ;;  %v2041_v44 = vmul.f32 %v6858_v52, %v5566_v13 }
 0x327   :  { %v2551_v22 = vadd.f32 %v2462_v42, %v2039_v58  ;;  %v6859_v58 = vld [vmem:[#allocation29_spill] sm:$0xff] }
 0x328   :  { %v2042_v42 = vmul.f32 %v6859_v58, %v5580_v32 }
 0x329   :  { %2621 = vrot.lane.b32.xlu0 %v2551_v22, %s4076_s29  ;;  %v2464_v2 = vpop.permute.xlu1 %2463 }
 0x32a   :  { %v2552_v27 = vadd.f32 %v2464_v2, %v2040_v40  ;;  %v5920_v8 = vpop.permute.xlu0 %2781  ;;  %v6862_v2 = vld [vmem:[#allocation28_spill] sm:$0xff] }
 0x32c   :  { %2623 = vrot.lane.b32.xlu1 %v2552_v27, %s4076_s29  ;;  %v2043_v27 = vmul.f32 %v6862_v2, %v5592_v55 }
 0x32d   :  { %v5923_v38 = vpop.permute.xlu1 %2783 }
 0x32e   :  { %6857 = vst [vmem:[#allocation20_spill] sm:$0xff] %v5923_v38  ;;  %v2466_v56 = vpop.permute.xlu0 %2465 }
 0x32f   :  { %v2553_v33 = vadd.f32 %v2466_v56, %v2041_v44  ;;  %v6863_v44 = vld [vmem:[#allocation31_spill] sm:$0xff] }
 0x330   :  { %v2044_v56 = vmul.f32 %v6863_v44, %v5607_v1 }
 0x331   :  { %2625 = vrot.lane.b32.xlu0 %v2553_v33, %s4076_s29  ;;  %v2468_v49 = vpop.permute.xlu1 %2467 }
 0x332   :  { %v2554_v22 = vadd.f32 %v2468_v49, %v2042_v42  ;;  %v5930_v31 = vpop.permute.xlu0 %2785  ;;  %v6866_v49 = vld [vmem:[#allocation30_spill] sm:$0xff] }
 0x333   :  { %6860 = vst [vmem:[#allocation50_spill] sm:$0xff] %v5930_v31 }
 0x334   :  { %2627 = vrot.lane.b32.xlu1 %v2554_v22, %s4076_s29  ;;  %v2045_v22 = vmul.f32 %v6866_v49, %v5621_v15  ;;  %v6870_v49 = vld [vmem:[#allocation34_spill] sm:$0xff] }
 0x335   :  { %v5933_v40 = vpop.permute.xlu1 %2787 }
 0x336   :  { %6861 = vst [vmem:[#allocation23_spill] sm:$0xff] %v5933_v40  ;;  %v2470_v38 = vpop.permute.xlu0 %2469 }
 0x337   :  { %v2555_v52 = vadd.f32 %v2470_v38, %v2043_v27  ;;  %v6867_v38 = vld [vmem:[#allocation33_spill] sm:$0xff] }
 0x338   :  { %v2046_v27 = vmul.f32 %v6867_v38, %v5632_v50  ;;  %v6872_v38 = vld [vmem:[#allocation62_spill] sm:$0xff] }
 0x339   :  { %2629 = vrot.lane.b32.xlu0 %v2555_v52, %s4076_s29  ;;  %v2472_v58 = vpop.permute.xlu1 %2471 }
 0x33a   :  { %v2556_v33 = vadd.f32 %v2472_v58, %v2044_v56  ;;  %v5940_v32 = vpop.permute.xlu0 %2789 }
 0x33b   :  { %6864 = vst [vmem:[#allocation22_spill] sm:$0xff] %v5940_v32 }
 0x33c   :  { %2631 = vrot.lane.b32.xlu1 %v2556_v33, %s4076_s29  ;;  %v6868_v33 = vld [vmem:[#allocation61_spill] sm:$0xff] }
 0x33d   :  { %v5943_v42 = vpop.permute.xlu1 %2791 }
 0x33e   :  { %6865 = vst [vmem:[#allocation25_spill] sm:$0xff] %v5943_v42  ;;  %v2474_v40 = vpop.permute.xlu0 %2473  ;;  %v6869_v42 = vld [vmem:[#allocation51_spill] sm:$0xff] }
 0x33f   :  { %v2557_v2 = vadd.f32 %v2474_v40, %v2045_v22  ;;  %v5957_v32 = vadd.f32 %v6869_v42, %v6868_v33  ;;  %v2049_v40 = vmul.f32 %v6870_v49, %v5664_v63 }
 0x341   :  { %2633 = vrot.lane.b32.xlu0 %v2557_v2, %s4076_s29  ;;  %v2476_v44 = vpop.permute.xlu1 %2475  ;;  %v1655_v2 = vmax.f32 %v5957_v32, 0.0 }
 0x342   :  { %v2558_v52 = vadd.f32 %v2476_v44, %v2046_v27  ;;  %v5966_v27 = vadd.f32 %v6869_v42, %v6872_v38  ;;  %v6876_v38 = vld [vmem:[#allocation36_spill] sm:$0xff] }
 0x343   :  { %v3132_v49 = vmul.f32 %v6875_v35, %v1655_v2  ;;  %v6877_v2 = vld [vmem:[#allocation39_spill] sm:$0xff] }
 0x344   :  { %2635 = vrot.lane.b32.xlu1 %v2558_v52, %s4076_s29  ;;  %v6873_v52 = vld [vmem:[#allocation37_spill] sm:$0xff]  ;;  %v1656_v63 = vmax.f32 %v5966_v27, 0.0 }
 0x345   :  { %v5951_v56 = vpop.permute.xlu0 %2477  ;;  %v2050_v55 = vmul.f32 %v6873_v52, %v5679_v51 }
 0x346   :  { %v3133_v52 = vmul.f32 %v6875_v35, %v1656_v63  ;;  %v6880_v63 = vld [vmem:[#allocation38_spill] sm:$0xff] }
 0x349   :  { %v5953_v58 = vpop.permute.xlu1 %2479 }
 0x34d   :  { %v2482_v22 = vpop.permute.xlu1 %2481  ;;  %v5961_v1 = vpop.permute.xlu0 %2801 }
 0x34e   :  { %6871 = vst [vmem:[#allocation24_spill] sm:$0xff] %v5961_v1  ;;  %v2561_v44 = vadd.f32 %v2482_v22, %v2049_v40  ;;  %v2051_v40 = vmul.f32 %v6876_v38, %v5693_v29 }
 0x350   :  { %2641 = vrot.lane.b32.xlu0 %v2561_v44, %s4076_s29 }
 0x351   :  { %v5971_v33 = vpop.permute.xlu1 %2803  ;;  %v2484_v31 = vpop.permute.xlu0 %2483 }
 0x352   :  { %6874 = vst [vmem:[#allocation27_spill] sm:$0xff] %v5971_v33  ;;  %v2562_v1 = vadd.f32 %v2484_v31, %v2050_v55  ;;  %v2052_v31 = vmul.f32 %v6877_v2, %v5707_v25  ;;  %v6879_v33 = vld [vmem:[#allocation88_spill] sm:$0xff]  ;;  %v2382_v2 = vmul.f32 %v5667_v11, %v5860_v46 }
 0x353   :  { %v2381_v38 = vmul.f32 %v6879_v33, %v5844_v9  ;;  %v6882_v33 = vld [vmem:[#allocation41_spill] sm:$0xff]  ;;  %v6887_v11 = vld [vmem:[#allocation40_spill] sm:$0xff] }
 0x354   :  { %3202 = vrot.lane.b32.xlu0 %v3132_v49, %s4076_s29  ;;  %2643 = vrot.lane.b32.xlu1 %v2562_v1, %s4076_s29 }
 0x355   :  { %v2486_v22 = vpop.permute.xlu1 %2485  ;;  %v5979_v44 = vpop.permute.xlu0 %2805 }
 0x356   :  { %v2563_v51 = vadd.f32 %v2486_v22, %v2051_v40  ;;  %v2053_v40 = vmul.f32 %v6880_v63, %v5723_v41 }
 0x358   :  { %2645 = vrot.lane.b32.xlu0 %v2563_v51, %s4076_s29  ;;  %3204 = vrot.lane.b32.xlu1 %v3133_v52, %s4076_s29 }
 0x359   :  { %v5986_v55 = vpop.permute.xlu1 %2807  ;;  %v2488_v49 = vpop.permute.xlu0 %2487 }
 0x35a   :  { %6878 = vst [vmem:[#allocation26_spill] sm:$0xff] %v5986_v55  ;;  %v2564_v1 = vadd.f32 %v2488_v49, %v2052_v31  ;;  %v2054_v31 = vmul.f32 %v6882_v33, %v5737_v62 }
 0x35c   :  { %2825 = vrot.lane.b32.xlu0 %v2381_v38, %s4075_s22  ;;  %2647 = vrot.lane.b32.xlu1 %v2564_v1, %s4076_s29  ;;  %v6884_v38 = vld [vmem:[#allocation79_spill] sm:$0xff] }
 0x35d   :  { %v2490_v51 = vpop.permute.xlu1 %2489  ;;  %v5994_v22 = vpop.permute.xlu0 %2809  ;;  %v6006_v63 = vadd.f32 %v6869_v42, %v6884_v38 }
 0x35e   :  { %6881 = vst [vmem:[#allocation29_spill] sm:$0xff] %v5994_v22  ;;  %v2565_v52 = vadd.f32 %v2490_v51, %v2053_v40  ;;  %v6886_v40 = vld [vmem:[#allocation89_spill] sm:$0xff]  ;;  %v6889_v22 = vld [vmem:[#allocation80_spill] sm:$0xff] }
 0x35f   :  { %6885 = vst [vmem:[#allocation31_spill] sm:$0xff] %v6006_v63  ;;  %v2365_v51 = vmul.f32 %v6886_v40, %v5621_v15  ;;  %v6019_v38 = vadd.f32 %v6869_v42, %v6889_v22  ;;  %v6892_v22 = vld [vmem:[#allocation42_spill] sm:$0xff] }
 0x360   :  { %2649 = vrot.lane.b32.xlu0 %v2565_v52, %s4076_s29  ;;  %2827 = vrot.lane.b32.xlu1 %v2382_v2, %s4075_s22  ;;  %v2055_v52 = vmul.f32 %v6887_v11, %v5751_v7 }
 0x361   :  { %v6002_v49 = vpop.permute.xlu1 %2811  ;;  %v2492_v1 = vpop.permute.xlu0 %2491  ;;  %6890 = vst [vmem:[#allocation33_spill] sm:$0xff] %v6019_v38 }
 0x362   :  { %6883 = vst [vmem:[#allocation28_spill] sm:$0xff] %v6002_v49  ;;  %v2566_v55 = vadd.f32 %v2492_v1, %v2054_v31  ;;  %v1673_v49 = vmax.f32 %v6006_v63, 0.0  ;;  %v2366_v1 = vmul.f32 %v5691_v43, %v5632_v50  ;;  %v1674_v63 = vmax.f32 %v6019_v38, 0.0 }
 0x363   :  { %v2057_v43 = vmul.f32 %v6892_v22, %v5783_v34 }
 0x364   :  { %2793 = vrot.lane.b32.xlu0 %v2365_v51, %s4075_s22  ;;  %2651 = vrot.lane.b32.xlu1 %v2566_v55, %s4076_s29  ;;  %v6891_v55 = vld [vmem:[#allocation43_spill] sm:$0xff]  ;;  %v3150_v11 = vmul.f32 %v6875_v35, %v1673_v49  ;;  %v6894_v49 = vld [vmem:[#allocation45_spill] sm:$0xff] }
 0x365   :  { %v2494_v2 = vpop.permute.xlu1 %2493  ;;  %v6014_v33 = vpop.permute.xlu0 %2813  ;;  %v2056_v40 = vmul.f32 %v6891_v55, %v5767_v39  ;;  %v6893_v55 = vld [vmem:[#allocation32_spill] sm:$0xff] }
 0x366   :  { %6888 = vst [vmem:[#allocation30_spill] sm:$0xff] %v6014_v33  ;;  %v2567_v31 = vadd.f32 %v2494_v2, %v2055_v52  ;;  %v2047_v39 = vmul.f32 %v6893_v55, %v5644_v3 }
 0x368   :  { %2653 = vrot.lane.b32.xlu0 %v2567_v31, %s4076_s29  ;;  %2795 = vrot.lane.b32.xlu1 %v2366_v1, %s4075_s22  ;;  %v3151_v31 = vmul.f32 %v6875_v35, %v1674_v63  ;;  %v2559_v63 = vadd.f32 %v5951_v56, %v2047_v39 }
 0x369   :  { %v2496_v51 = vpop.permute.xlu0 %2495  ;;  %v6033_v52 = vpop.permute.xlu1 %2815 }
 0x36a   :  { %v2568_v33 = vadd.f32 %v2496_v51, %v2056_v40  ;;  %v2058_v40 = vmul.f32 %v6894_v49, %v5797_v24 }
 0x36c   :  { %3238 = vrot.lane.b32.xlu0 %v3150_v11, %s4076_s29  ;;  %2655 = vrot.lane.b32.xlu1 %v2568_v33, %s4076_s29  ;;  %v6896_v11 = vld [vmem:[#allocation63_spill] sm:$0xff] }
 0x36d   :  { %v2498_v2 = vpop.permute.xlu0 %2497  ;;  %v6046_v22 = vadd.f32 %v6869_v42, %v6896_v11  ;;  %v6900_v11 = vld [vmem:[#allocation64_spill] sm:$0xff] }
 0x36e   :  { %v2569_v1 = vadd.f32 %v2498_v2, %v2057_v43  ;;  %v6897_v2 = vld [vmem:[#allocation35_spill] sm:$0xff]  ;;  %v6060_v24 = vadd.f32 %v6869_v42, %v6900_v11  ;;  %v1873_v11 = vmul.f32 %v5457_v60, %v5465_v16  ;;  %v1874_v60 = vmul.f32 %v5463_v26, %v5475_v6  ;;  %v6911_v26 = vld [vmem:[#allocation82_spill] sm:$0xff] }
 0x36f   :  { %v2048_v55 = vmul.f32 %v6897_v2, %v5653_v20  ;;  %v2384_v6 = vmul.f32 %v5711_v28, %v5888_v21 }
 0x370   :  { %3240 = vrot.lane.b32.xlu1 %v3151_v31, %s4076_s29  ;;  %2657 = vrot.lane.b32.xlu0 %v2569_v1, %s4076_s29  ;;  %v6898_v31 = vld [vmem:[#allocation44_spill] sm:$0xff] }
 0x371   :  { %v2500_v33 = vpop.permute.xlu1 %2499  ;;  %v6042_v51 = vpop.permute.xlu0 %2817  ;;  %v2059_v1 = vmul.f32 %v6898_v31, %v5812_v14  ;;  %v2560_v39 = vadd.f32 %v5953_v58, %v2048_v55  ;;  %v1658_v31 = vmax.f32 %v6060_v24, 0.0  ;;  %v6903_v58 = vld [vmem:[#allocation46_spill] sm:$0xff] }
 0x372   :  { %6895 = vst [vmem:[#allocation61_spill] sm:$0xff] %v6042_v51  ;;  %v2570_v43 = vadd.f32 %v2500_v33, %v2058_v40  ;;  %v1657_v51 = vmax.f32 %v6046_v22, 0.0  ;;  %v6901_v40 = vld [vmem:[#allocation47_spill] sm:$0xff] }
 0x373   :  { %v2060_v33 = vmul.f32 %v6901_v40, %v5828_v47 }
 0x374   :  { %2659 = vrot.lane.b32.xlu1 %v2570_v43, %s4076_s29  ;;  %2637 = vrot.lane.b32.xlu0 %v2559_v63, %s4076_s29  ;;  %v3134_v2 = vmul.f32 %v6875_v35, %v1657_v51  ;;  %v6905_v51 = vld [vmem:[#allocation55_spill] sm:$0xff] }
 0x375   :  { %v6055_v49 = vpop.permute.xlu1 %2819  ;;  %v2502_v38 = vpop.permute.xlu0 %2501 }
 0x376   :  { %6899 = vst [vmem:[#allocation51_spill] sm:$0xff] %v6055_v49  ;;  %v2571_v56 = vadd.f32 %v2502_v38, %v2059_v1  ;;  %v2061_v38 = vmul.f32 %v6903_v58, %v5844_v9 }
 0x378   :  { %2639 = vrot.lane.b32.xlu1 %v2560_v39, %s4076_s29  ;;  %2661 = vrot.lane.b32.xlu0 %v2571_v56, %s4076_s29  ;;  %v3135_v39 = vmul.f32 %v6875_v35, %v1658_v31 }
 0x379   :  { %v2504_v63 = vpop.permute.xlu1 %2503  ;;  %v6067_v43 = vpop.permute.xlu0 %2821 }
 0x37a   :  { %6902 = vst [vmem:[#allocation34_spill] sm:$0xff] %v6067_v43  ;;  %v2572_v49 = vadd.f32 %v2504_v63, %v2060_v33  ;;  %v6906_v33 = vld [vmem:[#allocation52_spill] sm:$0xff] }
 0x37b   :  { %v2385_v63 = vadd.f32 %v1873_v11, %v6906_v33  ;;  %v6909_v11 = vld [vmem:[#allocation3_spill] sm:$0xff] }
 0x37c   :  { %2663 = vrot.lane.b32.xlu1 %v2572_v49, %s4076_s29  ;;  %3206 = vrot.lane.b32.xlu0 %v3134_v2, %s4076_s29  ;;  %v2062_v49 = vmul.f32 %v6905_v51, %v5860_v46  ;;  %v6932_v46 = vld [vmem:[#allocation92_spill] sm:$0xff] }
 0x37d   :  { %v6075_v55 = vpop.permute.xlu1 %2823  ;;  %v2506_v1 = vpop.permute.xlu0 %2505 }
 0x37e   :  { %6904 = vst [vmem:[#allocation62_spill] sm:$0xff] %v6075_v55  ;;  %v2573_v56 = vadd.f32 %v2506_v1, %v2061_v38  ;;  %v6907_v55 = vld [vmem:[#allocation90_spill] sm:$0xff]  ;;  %v6908_v38 = vld [vmem:[#allocation48_spill] sm:$0xff] }
 0x37f   :  { %v2383_v43 = vmul.f32 %v6907_v55, %v5874_v45  ;;  %v2063_v1 = vmul.f32 %v6908_v38, %v5874_v45  ;;  %v6915_v38 = vld [vmem:[#allocation67_spill] sm:$0xff] }
 0x380   :  { %3208 = vrot.lane.b32.xlu1 %v3135_v39, %s4076_s29  ;;  %2665 = vrot.lane.b32.xlu0 %v2573_v56, %s4076_s29  ;;  %v1875_v39 = vmul.f32 %v6909_v11, %v5488_v53  ;;  %v6910_v56 = vld [vmem:[#allocation54_spill] sm:$0xff]  ;;  %v6119_v11 = vadd.f32 %v6869_v42, %v6915_v38  ;;  %v6920_v38 = vld [vmem:[#allocation84_spill] sm:$0xff] }
 0x381   :  { %v2508_v40 = vpop.permute.xlu1 %2507  ;;  %v2386_v51 = vadd.f32 %v1874_v60, %v6910_v56  ;;  %v6914_v60 = vld [vmem:[#allocation56_spill] sm:$0xff]  ;;  %v6916_v56 = vld [vmem:[#allocation58_spill] sm:$0xff] }
 0x382   :  { %v2574_v2 = vadd.f32 %v2508_v40, %v2062_v49  ;;  %v2610_v58 = vpop.permute.xlu0 %2609  ;;  %v6103_v49 = vadd.f32 %v6869_v42, %v6911_v26 }
 0x383   :  { %v2705_v16 = vadd.f32 %v2610_v58, %v2385_v63  ;;  %v6912_v63 = vld [vmem:[#allocation65_spill] sm:$0xff] }
 0x384   :  { %2667 = vrot.lane.b32.xlu1 %v2574_v2, %s4076_s29  ;;  %2829 = vrot.lane.b32.xlu0 %v2383_v43, %s4075_s22  ;;  %v6109_v53 = vadd.f32 %v6869_v42, %v6912_v63  ;;  %v6913_v2 = vld [vmem:[#allocation66_spill] sm:$0xff] }
 0x385   :  { %v6092_v31 = vadd.f32 %v5872_v12, %v2705_v16  ;;  %v6113_v58 = vadd.f32 %v6869_v42, %v6913_v2  ;;  %v2387_v16 = vadd.f32 %v1875_v39, %v6914_v60  ;;  %v6918_v39 = vld [vmem:[#allocation91_spill] sm:$0xff] }
 0x386   :  { %v2510_v55 = vpop.permute.xlu0 %2509  ;;  %v2367_v63 = vmul.f32 %v6918_v39, %v5644_v3  ;;  %v6919_v2 = vld [vmem:[#allocation83_spill] sm:$0xff]  ;;  %v1661_v39 = vmax.f32 %v6119_v11, 0.0 }
 0x387   :  { %v2929_v43 = vmin.f32 %v6092_v31, 0.0  ;;  %v2612_v12 = vpop.permute.xlu1 %2611  ;;  %v2575_v40 = vadd.f32 %v2510_v55, %v2063_v1  ;;  %v6133_v60 = vadd.f32 %v6869_v42, %v6919_v2  ;;  %v6922_v2 = vld [vmem:[#allocation68_spill] sm:$0xff]  ;;  %vm2897_vm2 = vcmp.gt.f32.partialorder %v6092_v31, 0.0 }
 0x388   :  { %v2706_v33 = vadd.f32 %v2612_v12, %v2386_v51  ;;  %2831 = vrot.lane.b32.xlu1 %v2384_v6, %s4075_s22  ;;  %v2064_v51 = vmul.f32 %v6916_v56, %v5888_v21  ;;  %v6917_v6 = vld [vmem:[#allocation4_spill] sm:$0xff]  ;;  %v6138_v56 = vadd.f32 %v6869_v42, %v6920_v38 }
 0x389   :  { %v2961_v28 = vmul.f32 1.442695, %v2929_v43  ;;  %2669 = vrot.lane.b32.xlu0 %v2575_v40, %s4076_s29  ;;  %v1876_v26 = vmul.f32 %v6917_v6, %v5502_v10  ;;  %v1675_v43 = vmax.f32 %v6103_v49, 0.0 }
 0x38a   :  { %v6122_v1 = vadd.f32 %v5879_v18, %v2706_v33  ;;  %v2614_v55 = vpop.permute.xlu0 %2613 }
 0x38b   :  { %4005 = vpow2.f32 %v2961_v28  ;;  %v2512_v12 = vpop.permute.xlu1 %2511  ;;  %v2707_v40 = vadd.f32 %v2614_v55, %v2387_v16  ;;  %v1877_v28 = vmul.f32 %v5479_v23, %v5513_v54  ;;  %v1659_v16 = vmax.f32 %v6109_v53, 0.0 }
 0x38c   :  { %v2930_v18 = vmin.f32 %v6122_v1, 0.0  ;;  %v2576_v33 = vadd.f32 %v2512_v12, %v2064_v51  ;;  %v1660_v55 = vmax.f32 %v6113_v58, 0.0  ;;  %v6921_v51 = vld [vmem:[#allocation57_spill] sm:$0xff]  ;;  %v1676_v54 = vmax.f32 %v6133_v60, 0.0 }
 0x38d   :  { %v6141_v10 = vadd.f32 %v5896_v4, %v2707_v40  ;;  %2797 = vrot.lane.b32.xlu0 %v2367_v63, %s4075_s22  ;;  %v2388_v12 = vadd.f32 %v1876_v26, %v6921_v51  ;;  %v6153_v4 = vadd.f32 %v6869_v42, %v6922_v2  ;;  %v3152_v40 = vmul.f32 %v6875_v35, %v1675_v43  ;;  %v6925_v43 = vld [vmem:[#allocation59_spill] sm:$0xff] }
 0x38e   :  { %v2963_v6 = vmul.f32 1.442695, %v2930_v18  ;;  %2671 = vrot.lane.b32.xlu1 %v2576_v33, %s4076_s29  ;;  %v2368_v18 = vmul.f32 %v5735_v37, %v5653_v20  ;;  %v1677_v26 = vmax.f32 %v6138_v56, 0.0  ;;  %v6923_v33 = vld [vmem:[#allocation85_spill] sm:$0xff]  ;;  %v2389_v21 = vadd.f32 %v1877_v28, %v6925_v43 }
 0x38f   :  { %v2931_v63 = vmin.f32 %v6141_v10, 0.0  ;;  %v2616_v23 = vpop.permute.xlu1 %2615  ;;  %v6163_v51 = vadd.f32 %v6869_v42, %v6923_v33  ;;  %v3136_v3 = vmul.f32 %v6875_v35, %v1659_v16  ;;  %v3137_v45 = vmul.f32 %v6875_v35, %v1660_v55  ;;  %v6929_v55 = vld [vmem:[#allocation69_spill] sm:$0xff] }
 0x390   :  { %4007 = vpow2.f32 %v2963_v6  ;;  %v2708_v38 = vadd.f32 %v2616_v23, %v2388_v12  ;;  %v6926_v12 = vld [vmem:[#allocation5_spill] sm:$0xff]  ;;  %v3138_v33 = vmul.f32 %v6875_v35, %v1661_v39  ;;  %v1662_v16 = vmax.f32 %v6153_v4, 0.0 }
 0x391   :  { %6924 = vst [vmem:[#allocation37_spill] sm:$0xff] %v6163_v51  ;;  %v2965_v2 = vmul.f32 1.442695, %v2931_v63  ;;  %3242 = vrot.lane.b32.xlu0 %v3152_v40, %s4076_s29  ;;  %v1878_v23 = vmul.f32 %v6926_v12, %v5527_v57  ;;  %v6927_v63 = vld [vmem:[#allocation86_spill] sm:$0xff]  ;;  %v3154_v12 = vmul.f32 %v6875_v35, %v1677_v26  ;;  %v1879_v20 = vmul.f32 %v5500_v5, %v5541_v36 }
 0x392   :  { %v6170_v6 = vadd.f32 %v5900_v17, %v2708_v38  ;;  %2799 = vrot.lane.b32.xlu1 %v2368_v18, %s4075_s22  ;;  %v2618_v37 = vpop.permute.xlu0 %2617  ;;  %v6178_v40 = vadd.f32 %v6869_v42, %v6927_v63  ;;  %v6183_v17 = vadd.f32 %v6869_v42, %v6929_v55  ;;  %v3153_v38 = vmul.f32 %v6875_v35, %v1676_v54  ;;  %v6930_v57 = vld [vmem:[#allocation70_spill] sm:$0xff]  ;;  %v6931_v54 = vld [vmem:[#allocation60_spill] sm:$0xff] }
 0x393   :  { %4009 = vpow2.f32 %v2965_v2  ;;  %v2709_v28 = vadd.f32 %v2618_v37, %v2389_v21  ;;  %v6189_v39 = vadd.f32 %v6869_v42, %v6930_v57  ;;  %v1678_v2 = vmax.f32 %v6163_v51, 0.0 }
 0x394   :  { %6928 = vst [vmem:[#allocation53_spill] sm:$0xff] %v6178_v40  ;;  %v2932_v18 = vmin.f32 %v6170_v6, 0.0  ;;  %v2390_v55 = vadd.f32 %v1878_v23, %v6931_v54  ;;  %v1679_v57 = vmax.f32 %v6178_v40, 0.0  ;;  %v1586_v26 = vand.u32 2147483647, %v6932_v46  ;;  %v6934_v46 = vld [vmem:[#allocation6_spill] sm:$0xff] }
 0x395   :  { %v4006_v43 = vpop.eup %4005  ;;  %v6194_v21 = vadd.f32 %v5907_v48, %v2709_v28  ;;  %3210 = vrot.lane.b32.xlu0 %v3136_v3, %s4076_s29  ;;  %v3139_v3 = vmul.f32 %v6875_v35, %v1662_v16  ;;  %v1880_v54 = vmul.f32 %v6934_v46, %v5551_v59  ;;  %v1663_v51 = vmax.f32 %v6183_v17, 0.0  ;;  %v6935_v59 = vld [vmem:[#allocation93_spill] sm:$0xff] }
 0x396   :  { %v3619_v37 = vadd.f32 -1.0, %v4006_v43  ;;  %v2967_v63 = vmul.f32 1.442695, %v2932_v18  ;;  %3244 = vrot.lane.b32.xlu1 %v3153_v38, %s4076_s29  ;;  %v6933_v43 = vld [vmem:[#allocation87_spill] sm:$0xff]  ;;  %v1664_v16 = vmax.f32 %v6189_v39, 0.0  ;;  %vm2898_vm3 = vcmp.gt.f32.partialorder %v6122_v1, 0.0 }
 0x397   :  { %v2933_v48 = vmin.f32 %v6194_v21, 0.0  ;;  %v2620_v28 = vpop.permute.xlu1 %2619  ;;  %v6209_v23 = vadd.f32 %v6869_v42, %v6933_v43  ;;  %v2391_v42 = vadd.f32 %v1879_v20, %v5957_v32  ;;  %v2392_v32 = vadd.f32 %v1880_v54, %v5966_v27  ;;  %v6937_v54 = vld [vmem:[#allocation20_spill] sm:$0xff] }
 0x398   :  { %v3057_v18 = vsel %vm2897_vm2, %v6092_v31, %v3619_v37  ;;  %4011 = vpow2.f32 %v2967_v63  ;;  %v2710_v38 = vadd.f32 %v2620_v28, %v2390_v55  ;;  %v3155_v37 = vmul.f32 %v6875_v35, %v1678_v2  ;;  %vm6425_vm2 = vmpackc.low %vm467_vm1, %vm467_vm1 }
 0x399   :  { %v3089_v5 = vmul.f32 %v3057_v18, %v1586_v26  ;;  %v2969_v36 = vmul.f32 1.442695, %v2933_v48  ;;  %3246 = vrot.lane.b32.xlu0 %v3154_v12, %s4076_s29  ;;  %v3156_v63 = vmul.f32 %v6875_v35, %v1679_v57  ;;  %v1588_v26 = vand.u32 2147483647, %v6935_v59 }
 0x39a   :  { %v4008_v40 = vpop.eup %4007  ;;  %v6217_v31 = vadd.f32 %v5912_v30, %v2710_v38  ;;  %3212 = vrot.lane.b32.xlu1 %v3137_v45, %s4076_s29  ;;  %v1680_v18 = vmax.f32 %v6209_v23, 0.0  ;;  %v1881_v20 = vmul.f32 %v5517_v19, %v5566_v13  ;;  %vm2899_vm4 = vcmp.gt.f32.partialorder %v6141_v10, 0.0 }
 0x39b   :  { %v3620_v12 = vadd.f32 -1.0, %v4008_v40  ;;  %4013 = vpow2.f32 %v2969_v36  ;;  %v2622_v55 = vpop.permute.xlu0 %2621  ;;  %v1590_v36 = vand.u32 2147483647, %v5486_v61  ;;  %v6938_v61 = vld [vmem:[#allocation104_spill] sm:$0xff]  ;;  %v6685_v59 = vmov 1.0  }
 0x39c   :  { %v2934_v48 = vmin.f32 %v6217_v31, 0.0  ;;  %v2711_v28 = vadd.f32 %v2622_v55, %v2391_v42  ;;  %v2393_v55 = vadd.f32 %v1881_v20, %v6046_v22  ;;  %3754 = vmatprep.mubr.msk.f32.mxu0 %vm467_vm1, %v6685_v59  ;;  %vm2900_vm5 = vcmp.gt.f32.partialorder %v6170_v6, 0.0  ;;  %v6994_v59 = vld [vmem:[#allocation31_spill] sm:$0xff] }
 0x39d   :  { %v4010_v30 = vpop.eup %4009  ;;  %v3058_v45 = vsel %vm2898_vm3, %v6122_v1, %v3620_v12  ;;  %3214 = vrot.lane.b32.xlu0 %v3138_v33, %s4076_s29  ;;  %v6238_v1 = vadd.f32 %v5762_v0, %v3089_v5  ;;  %v6936_v33 = vld [vmem:[#allocation132_spill] sm:$0xff]  ;;  %v6939_v0 = vld [vmem:[#allocation7_spill] sm:$0xff]  ;;  %v3141_v20 = vmul.f32 %v6875_v35, %v1664_v16  ;;  %v6943_v16 = vld [vmem:[#allocation98_spill] sm:$0xff]  ;;  %vm2901_vm6 = vcmp.gt.f32.partialorder %v6194_v21, 0.0 }
 0x39e   :  { %v3090_v40 = vmul.f32 %v3058_v45, %v1588_v26  ;;  %v3621_v2 = vadd.f32 -1.0, %v4010_v30  ;;  %v2971_v57 = vmul.f32 1.442695, %v2934_v48  ;;  %v6233_v38 = vadd.f32 %v5920_v8, %v2711_v28  ;;  %3248 = vrot.lane.b32.xlu1 %v3155_v37, %s4076_s29  ;;  %v2624_v43 = vpop.permute.xlu1 %2623  ;;  %v6940_v45 = vld [vmem:[#allocation94_spill] sm:$0xff] }
 0x39f   :  { %v2712_v27 = vadd.f32 %v2624_v43, %v2392_v32  ;;  %v1882_v5 = vmul.f32 %v6939_v0, %v6938_v61  ;;  %v3140_v26 = vmul.f32 %v6875_v35, %v1663_v51  ;;  %v1592_v32 = vand.u32 2147483647, %v6940_v45  ;;  %v6941_v43 = vld [vmem:[#allocation50_spill] sm:$0xff]  ;;  %v6946_v0 = vld [vmem:[#allocation135_spill] sm:$0xff] }
 0x3a0   :  { %v6242_v46 = vadd.f32 %v6936_v33, %v3090_v40  ;;  %v3059_v19 = vsel %vm2899_vm4, %v6141_v10, %v3621_v2  ;;  %4015 = vpow2.f32 %v2971_v57  ;;  %v2935_v13 = vmin.f32 %v6233_v38, 0.0  ;;  %v3318_v33 = vld [vmem:[%s6639_s6 + $0x3] ss:$0 sm:$0xff] }
 0x3a1   :  { %v3091_v8 = vmul.f32 %v3059_v19, %v1590_v36  ;;  %v6247_v42 = vadd.f32 %v6937_v54, %v2712_v27  ;;  %3250 = vrot.lane.b32.xlu0 %v3156_v63, %s4076_s29  ;;  %v3157_v63 = vmul.f32 %v6875_v35, %v1680_v18  ;;  %v2394_v51 = vadd.f32 %v1882_v5, %v6060_v24  ;;  %v6942_v35 = vld [vmem:[#allocation106_spill] sm:$0xff]  ;;  %v6944_v19 = vld [vmem:[#allocation95_spill] sm:$0xff]  ;;  %v6945_v54 = vld [vmem:[#allocation136_spill] sm:$0xff] }
 0x3a2   :  { %v4012_v37 = vpop.eup %4011  ;;  %v2973_v12 = vmul.f32 1.442695, %v2935_v13  ;;  %3216 = vrot.lane.b32.xlu1 %v3139_v3, %s4076_s29  ;;  %v3879_v10 = vpack.c.bf16 %v6242_v46, %v6238_v1  ;;  %v1594_v13 = vand.u32 2147483647, %v6944_v19  ;;  %vm2902_vm7 = vcmp.gt.f32.partialorder %v6217_v31, 0.0 }
 0x3a3   :  { %v3622_v48 = vadd.f32 -1.0, %v4012_v37  ;;  %v2936_v28 = vmin.f32 %v6247_v42, 0.0  ;;  %v2626_v30 = vpop.permute.xlu0 %2625  ;;  %v6279_v61 = vadd.f32 %v6945_v54, %v3091_v8  ;;  %v6953_v54 = vld [vmem:[#allocation139_spill] sm:$0xff]  ;;  %vm2903_vm8 = vcmp.gt.f32.partialorder %v6233_v38, 0.0 }
 0x3a4   :  { %4017 = vpow2.f32 %v2973_v12  ;;  %v2713_v22 = vadd.f32 %v2626_v30, %v2393_v55  ;;  %vm2904_vm9 = vcmp.gt.f32.partialorder %v6247_v42, 0.0 }
 0x3a5   :  { %v4014_v3 = vpop.eup %4013  ;;  %v3060_v40 = vsel %vm2900_vm5, %v6170_v6, %v3622_v48  ;;  %v2975_v2 = vmul.f32 1.442695, %v2936_v28  ;;  %3218 = vrot.lane.b32.xlu0 %v3140_v26, %s4076_s29  ;;  %v1883_v6 = vmul.f32 %v6943_v16, %v6942_v35  ;;  %v6947_v26 = vld [vmem:[#allocation23_spill] sm:$0xff]  ;;  %v6948_v48 = vld [vmem:[#allocation109_spill] sm:$0xff]  ;;  %v6949_v28 = vld [vmem:[#allocation8_spill] sm:$0xff] }
 0x3a6   :  { %v3092_v18 = vmul.f32 %v3060_v40, %v1592_v32  ;;  %v3623_v57 = vadd.f32 -1.0, %v4014_v3  ;;  %v6268_v36 = vadd.f32 %v6941_v43, %v2713_v22  ;;  %3252 = vrot.lane.b32.xlu1 %v3157_v63, %s4076_s29  ;;  %v2628_v27 = vpop.permute.xlu1 %2627  ;;  %v1884_v30 = vmul.f32 %v6949_v28, %v6948_v48 }
 0x3a7   :  { %4019 = vpow2.f32 %v2975_v2  ;;  %v2714_v24 = vadd.f32 %v2628_v27, %v2394_v51  ;;  %v2395_v8 = vadd.f32 %v1883_v6, %v6109_v53  ;;  %v6950_v2 = vld [vmem:[#allocation96_spill] sm:$0xff]  ;;  %v6951_v53 = vld [vmem:[#allocation22_spill] sm:$0xff]  ;;  %v6952_v6 = vld [vmem:[#allocation97_spill] sm:$0xff] }
 0x3a8   :  { %v6282_v5 = vadd.f32 %v6946_v0, %v3092_v18  ;;  %v3061_v37 = vsel %vm2901_vm6, %v6194_v21, %v3623_v57  ;;  %v2937_v12 = vmin.f32 %v6268_v36, 0.0  ;;  %v1596_v51 = vand.u32 2147483647, %v6950_v2 }
 0x3a9   :  { %v3093_v55 = vmul.f32 %v3061_v37, %v1594_v13  ;;  %v2874_v63 = vadd.f32 %v6947_v26, %v2714_v24  ;;  %3321 = vperm.xlu0 %4004, %v3318_v33   ;;  %v2396_v27 = vadd.f32 %v1884_v30, %v6113_v58  ;;  %v1598_v19 = vand.u32 2147483647, %v6952_v6  ;;  %v6954_v37 = vld [vmem:[#allocation138_spill] sm:$0xff]  ;;  %v6955_v26 = vld [vmem:[#allocation25_spill] sm:$0xff] }
 0x3aa   :  { %v4016_v45 = vpop.eup %4015  ;;  %v2977_v32 = vmul.f32 1.442695, %v2937_v12  ;;  %3220 = vrot.lane.b32.xlu1 %v3141_v20, %s4076_s29  ;;  %v3885_v22 = vpack.c.bf16 %v6282_v5, %v6279_v61  ;;  %vm2905_vm10 = vcmp.gt.f32.partialorder %v6268_v36, 0.0  ;;  %v7016_v61 = vld [vmem:[#allocation17_spill] sm:$0xff] }
 0x3ab   :  { %v3624_v3 = vadd.f32 -1.0, %v4016_v45  ;;  %v2938_v21 = vmin.f32 %v2874_v63, 0.0  ;;  %v2630_v40 = vpop.permute.xlu0 %2629  ;;  %v6300_v0 = vadd.f32 %v6953_v54, %v3093_v55  ;;  %vm2906_vm11 = vcmp.gt.f32.partialorder %v2874_v63, 0.0 }
 0x3ac   :  { %4021 = vpow2.f32 %v2977_v32  ;;  %v2715_v18 = vadd.f32 %v2630_v40, %v2395_v8 }
 0x3ad   :  { %v3062_v57 = vsel %vm2902_vm7, %v6217_v31, %v3624_v3  ;;  %v2979_v43 = vmul.f32 1.442695, %v2938_v21  ;;  %v6956_v3 = vld [vmem:[#allocation99_spill] sm:$0xff] }
 0x3ae   :  { %v4018_v20 = vpop.eup %4017  ;;  %v3094_v33 = vmul.f32 %v3062_v57, %v1596_v51  ;;  %v2875_v35 = vadd.f32 %v6951_v53, %v2715_v18  ;;  %v2632_v16 = vpop.permute.xlu1 %2631  ;;  %v1600_v55 = vand.u32 2147483647, %v6956_v3  ;;  %v6963_v3 = vld [vmem:[#allocation123_spill] sm:$0xff] }
 0x3af   :  { %4023 = vpow2.f32 %v2979_v43  ;;  %v2716_v13 = vadd.f32 %v2632_v16, %v2396_v27  ;;  %v3625_v24 = vadd.f32 -1.0, %v4018_v20  ;;  %v6958_v16 = vld [vmem:[#allocation102_spill] sm:$0xff] }
 0x3b0   :  { %v6303_v12 = vadd.f32 %v6954_v37, %v3094_v33  ;;  %v2939_v31 = vmin.f32 %v2875_v35, 0.0  ;;  %v1604_v6 = vand.u32 2147483647, %v6958_v16  ;;  %vm2907_vm12 = vcmp.gt.f32.partialorder %v2875_v35, 0.0 }
 0x3b1   :  { %v4020_v58 = vpop.eup %4019  ;;  %v2876_v48 = vadd.f32 %v6955_v26, %v2716_v13  ;;  %v3063_v28 = vsel %vm2903_vm8, %v6233_v38, %v3625_v24  ;;  %v6957_v38 = vld [vmem:[#allocation101_spill] sm:$0xff]  ;;  %v6960_v13 = vld [vmem:[#allocation107_spill] sm:$0xff] }
 0x3b2   :  { %v2981_v30 = vmul.f32 1.442695, %v2939_v31  ;;  %v3095_v45 = vmul.f32 %v3063_v28, %v1598_v19  ;;  %v3626_v32 = vadd.f32 -1.0, %v4020_v58  ;;  %v1602_v43 = vand.u32 2147483647, %v6957_v38  ;;  %v6961_v26 = vld [vmem:[#allocation105_spill] sm:$0xff] }
 0x3b3   :  { %v2940_v21 = vmin.f32 %v2876_v48, 0.0  ;;  %v6323_v31 = vpop.permute.xlu0 %2633  ;;  %v1606_v28 = vand.u32 2147483647, %v6961_v26  ;;  %v6965_v38 = vld [vmem:[#allocation108_spill] sm:$0xff]  ;;  %vm2908_vm13 = vcmp.gt.f32.partialorder %v2876_v48, 0.0 }
 0x3b4   :  { %4025 = vpow2.f32 %v2981_v30  ;;  %v3064_v40 = vsel %vm2904_vm9, %v6247_v42, %v3626_v32  ;;  %v6959_v42 = vld [vmem:[#allocation120_spill] sm:$0xff]  ;;  %v6962_v30 = vld [vmem:[#allocation71_spill] sm:$0xff] }
 0x3b5   :  { %v2983_v2 = vmul.f32 1.442695, %v2940_v21  ;;  %v3096_v51 = vmul.f32 %v3064_v40, %v1600_v55  ;;  %v1889_v24 = vmul.f32 %v6960_v13, %v6959_v42  ;;  %v6964_v55 = vld [vmem:[#allocation11_spill] sm:$0xff] }
 0x3b6   :  { %v4022_v18 = vpop.eup %4021  ;;  %v1890_v21 = vmul.f32 %v6964_v55, %v6963_v3  ;;  %v6971_v55 = vld [vmem:[#allocation73_spill] sm:$0xff] }
 0x3b7   :  { %4027 = vpow2.f32 %v2983_v2  ;;  %v3627_v57 = vadd.f32 -1.0, %v4022_v18  ;;  %v2401_v32 = vadd.f32 %v1889_v24, %v6962_v30 }
 0x3b9   :  { %v4024_v27 = vpop.eup %4023  ;;  %v3065_v20 = vsel %vm2905_vm10, %v6268_v36, %v3627_v57 }
 0x3ba   :  { %v6316_v33 = vmul.f32 %v3065_v20, %v1602_v43  ;;  %v3628_v53 = vadd.f32 -1.0, %v4024_v27  ;;  %v1608_v43 = vand.u32 2147483647, %v6965_v38 }
 0x3bc   :  { %v3066_v19 = vsel %vm2906_vm11, %v2874_v63, %v3628_v53  ;;  %v6329_v63 = vpop.permute.xlu1 %2635  ;;  %v6966_v53 = vld [vmem:[#allocation24_spill] sm:$0xff] }
 0x3bd   :  { %v6321_v54 = vmul.f32 %v3066_v19, %v1604_v6  ;;  %v6967_v6 = vld [vmem:[#allocation72_spill] sm:$0xff] }
 0x3be   :  { %v4026_v37 = vpop.eup %4025  ;;  %v2402_v19 = vadd.f32 %v1890_v21, %v6967_v6 }
 0x3bf   :  { %v3629_v58 = vadd.f32 -1.0, %v4026_v37 }
 0x3c1   :  { %v4028_v36 = vpop.eup %4027  ;;  %v3067_v40 = vsel %vm2907_vm12, %v2875_v35, %v3629_v58  ;;  %v6968_v35 = vld [vmem:[#allocation111_spill] sm:$0xff] }
 0x3c2   :  { %v2642_v2 = vpop.permute.xlu0 %2641  ;;  %v6331_v18 = vmul.f32 %v3067_v40, %v1606_v28  ;;  %v3630_v57 = vadd.f32 -1.0, %v4028_v36  ;;  %v1891_v37 = vmul.f32 %v6968_v35, %v5693_v29  ;;  %v6969_v36 = vld [vmem:[#allocation27_spill] sm:$0xff] }
 0x3c3   :  { %v2721_v27 = vadd.f32 %v2642_v2, %v2401_v32  ;;  %v6970_v32 = vld [vmem:[#allocation12_spill] sm:$0xff] }
 0x3c4   :  { %v3068_v20 = vsel %vm2908_vm13, %v2876_v48, %v3630_v57  ;;  %v1892_v48 = vmul.f32 %v6970_v32, %v5707_v25  ;;  %v2403_v40 = vadd.f32 %v1891_v37, %v6971_v55  ;;  %v6973_v25 = vld [vmem:[#allocation113_spill] sm:$0xff] }
 0x3c5   :  { %v2881_v16 = vadd.f32 %v6966_v53, %v2721_v27  ;;  %v6336_v42 = vmul.f32 %v3068_v20, %v1608_v43  ;;  %v6972_v20 = vld [vmem:[#allocation74_spill] sm:$0xff]  ;;  %v1893_v6 = vmul.f32 %v6973_v25, %v5723_v41  ;;  %v6977_v41 = vld [vmem:[#allocation75_spill] sm:$0xff]  ;;  %v6980_v25 = vld [vmem:[#allocation29_spill] sm:$0xff] }
 0x3c6   :  { %v2644_v13 = vpop.permute.xlu1 %2643  ;;  %v3203_v24 = vpop.permute.xlu0 %3202  ;;  %v2404_v53 = vadd.f32 %v1892_v48, %v6972_v20 }
 0x3c7   :  { %v2945_v58 = vmin.f32 %v2881_v16, 0.0  ;;  %v2722_v26 = vadd.f32 %v2644_v13, %v2402_v19  ;;  %v6347_v57 = vadd.f32 %v3203_v24, %v3095_v45  ;;  %v2405_v32 = vadd.f32 %v1893_v6, %v6977_v41 }
 0x3c8   :  { %vm2913_vm14 = vcmp.gt.f32.partialorder %v2881_v16, 0.0 }
 0x3c9   :  { %v2993_v28 = vmul.f32 1.442695, %v2945_v58  ;;  %v6341_v30 = vadd.f32 %v6969_v36, %v2722_v26  ;;  %v6975_v58 = vld [vmem:[#allocation9_spill] sm:$0xff] }
 0x3ca   :  { %v3205_v3 = vpop.permute.xlu1 %3204  ;;  %v2646_v21 = vpop.permute.xlu0 %2645  ;;  %v1886_v26 = vmul.f32 %v6975_v58, %v5632_v50 }
 0x3cb   :  { %4029 = vpow2.f32 %v2993_v28  ;;  %v2946_v2 = vmin.f32 %v6341_v30, 0.0  ;;  %v6349_v38 = vadd.f32 %v3205_v3, %v3096_v51  ;;  %v2723_v29 = vadd.f32 %v2646_v21, %v2403_v40  ;;  %v6974_v51 = vld [vmem:[#allocation100_spill] sm:$0xff]  ;;  %v6976_v28 = vld [vmem:[#allocation26_spill] sm:$0xff] }
 0x3cc   :  { %v1885_v24 = vmul.f32 %v6974_v51, %v5621_v15  ;;  %v2398_v20 = vadd.f32 %v1886_v26, %v6153_v4  ;;  %v6984_v26 = vld [vmem:[#allocation122_spill] sm:$0xff]  ;;  %vm2914_vm15 = vcmp.gt.f32.partialorder %v6341_v30, 0.0 }
 0x3cd   :  { %v2995_v43 = vmul.f32 1.442695, %v2946_v2  ;;  %v6357_v19 = vadd.f32 %v5979_v44, %v2723_v29  ;;  %v6978_v44 = vld [vmem:[#allocation13_spill] sm:$0xff]  ;;  %v6979_v2 = vld [vmem:[#allocation110_spill] sm:$0xff] }
 0x3ce   :  { %v2648_v13 = vpop.permute.xlu1 %2647  ;;  %v6359_v35 = vpop.permute.xlu0 %2825  ;;  %v1894_v48 = vmul.f32 %v6978_v44, %v5737_v62  ;;  %v1610_v29 = vand.u32 2147483647, %v6979_v2  ;;  %v6981_v62 = vld [vmem:[#allocation76_spill] sm:$0xff]  ;;  %v1620_v44 = vand.u32 2147483647, %v6984_v26 }
 0x3cf   :  { %4031 = vpow2.f32 %v2995_v43  ;;  %v2724_v45 = vadd.f32 %v2648_v13, %v2404_v53  ;;  %v2947_v37 = vmin.f32 %v6357_v19, 0.0  ;;  %v2397_v43 = vadd.f32 %v1885_v24, %v6119_v11 }
 0x3d0   :  { %v2406_v13 = vadd.f32 %v1894_v48, %v6981_v62  ;;  %v6985_v48 = vld [vmem:[#allocation134_spill] sm:$0xff]  ;;  %v6987_v62 = vld [vmem:[#allocation28_spill] sm:$0xff]  ;;  %vm2915_vm0 = vcmp.gt.f32.partialorder %v6357_v19, 0.0 }
 0x3d1   :  { %v6367_v36 = vadd.f32 %v6976_v28, %v2724_v45  ;;  %v2997_v3 = vmul.f32 1.442695, %v2947_v37  ;;  %v6982_v45 = vld [vmem:[#allocation119_spill] sm:$0xff]  ;;  %v2717_v37 = vadd.f32 %v6323_v31, %v2397_v43  ;;  %v2718_v43 = vadd.f32 %v6329_v63, %v2398_v20 }
 0x3d2   :  { %v6372_v55 = vpop.permute.xlu1 %2827  ;;  %v2650_v40 = vpop.permute.xlu0 %2649  ;;  %v1618_v51 = vand.u32 2147483647, %v6982_v45 }
 0x3d3   :  { %v2948_v21 = vmin.f32 %v6367_v36, 0.0  ;;  %v2725_v15 = vadd.f32 %v2650_v40, %v2405_v32  ;;  %4033 = vpow2.f32 %v2997_v3  ;;  %v6983_v32 = vld [vmem:[#allocation118_spill] sm:$0xff]  ;;  %vm2916_vm3 = vcmp.gt.f32.partialorder %v6367_v36, 0.0 }
 0x3d4   :  { %v1895_v11 = vmul.f32 %v6983_v32, %v5751_v7 }
 0x3d5   :  { %v4030_v50 = vpop.eup %4029  ;;  %v2999_v53 = vmul.f32 1.442695, %v2948_v21  ;;  %v6379_v6 = vadd.f32 %v6980_v25, %v2725_v15  ;;  %v6986_v21 = vld [vmem:[#allocation14_spill] sm:$0xff] }
 0x3d6   :  { %v3635_v58 = vadd.f32 -1.0, %v4030_v50  ;;  %v2652_v28 = vpop.permute.xlu1 %2651  ;;  %v2794_v41 = vpop.permute.xlu0 %2793  ;;  %v1896_v15 = vmul.f32 %v6986_v21, %v6985_v48  ;;  %v6991_v21 = vld [vmem:[#allocation78_spill] sm:$0xff] }
 0x3d7   :  { %4035 = vpow2.f32 %v2999_v53  ;;  %v2949_v4 = vmin.f32 %v6379_v6, 0.0  ;;  %v2726_v24 = vadd.f32 %v2652_v28, %v2406_v13  ;;  %v6388_v40 = vadd.f32 %v2794_v41, %v2717_v37  ;;  %v6988_v28 = vld [vmem:[#allocation77_spill] sm:$0xff] }
 0x3d8   :  { %v3073_v3 = vsel %vm2913_vm14, %v2881_v16, %v3635_v58  ;;  %v2407_v32 = vadd.f32 %v1895_v11, %v6988_v28  ;;  %v6989_v37 = vld [vmem:[#allocation121_spill] sm:$0xff]  ;;  %vm2917_vm4 = vcmp.gt.f32.partialorder %v6379_v6, 0.0 }
 0x3d9   :  { %v4032_v31 = vpop.eup %4031  ;;  %v3105_v50 = vmul.f32 %v3073_v3, %v1618_v51  ;;  %v3001_v25 = vmul.f32 1.442695, %v2949_v4  ;;  %v6394_v7 = vadd.f32 %v6987_v62, %v2726_v24  ;;  %v2941_v45 = vmin.f32 %v6388_v40, 0.0  ;;  %v6990_v51 = vld [vmem:[#allocation112_spill] sm:$0xff] }
 0x3da   :  { %v3636_v53 = vadd.f32 -1.0, %v4032_v31  ;;  %v2796_v13 = vpop.permute.xlu1 %2795  ;;  %v2654_v16 = vpop.permute.xlu0 %2653  ;;  %v1897_v58 = vmul.f32 %v6989_v37, %v5783_v34  ;;  %v1612_v41 = vand.u32 2147483647, %v6990_v51  ;;  %v2408_v31 = vadd.f32 %v1896_v15, %v6991_v21  ;;  %v6992_v62 = vld [vmem:[#allocation124_spill] sm:$0xff] }
 0x3db   :  { %4037 = vpow2.f32 %v3001_v25  ;;  %v2950_v63 = vmin.f32 %v6394_v7, 0.0  ;;  %v6402_v20 = vadd.f32 %v2796_v13, %v2718_v43  ;;  %v2985_v24 = vmul.f32 1.442695, %v2941_v45  ;;  %v6993_v25 = vld [vmem:[#allocation30_spill] sm:$0xff] }
 0x3dc   :  { %v3074_v4 = vsel %vm2914_vm15, %v6341_v30, %v3636_v53  ;;  %v2727_v26 = vadd.f32 %v2654_v16, %v2407_v32  ;;  %v1622_v28 = vand.u32 2147483647, %v6992_v62  ;;  %v2409_v30 = vadd.f32 %v1897_v58, %v6994_v59  ;;  %v6995_v32 = vld [vmem:[#allocation143_spill] sm:$0xff]  ;;  %v6999_v58 = vld [vmem:[#allocation141_spill] sm:$0xff] }
 0x3dd   :  { %v3106_v3 = vmul.f32 %v3074_v4, %v1620_v44  ;;  %v3003_v48 = vmul.f32 1.442695, %v2950_v63  ;;  %v2942_v11 = vmin.f32 %v6402_v20, 0.0  ;;  %v4034_v34 = vpop.eup %4033  ;;  %4039 = vpow2.f32 %v2985_v24  ;;  %v6996_v63 = vld [vmem:[#allocation142_spill] sm:$0xff] }
 0x3de   :  { %v6410_v37 = vadd.f32 %v6993_v25, %v2727_v26  ;;  %v2656_v43 = vpop.permute.xlu1 %2655  ;;  %v6412_v13 = vpop.permute.xlu0 %3238  ;;  %v3637_v53 = vadd.f32 -1.0, %v4034_v34  ;;  %v3302_v16 = vadd.f32 %v6995_v32, %v3105_v50  ;;  %v7001_v25 = vld [vmem:[#allocation126_spill] sm:$0xff]  ;;  %v7003_v32 = vld [vmem:[#allocation129_spill] sm:$0xff]  ;;  %vm2918_vm5 = vcmp.gt.f32.partialorder %v6394_v7, 0.0 }
 0x3df   :  { %4041 = vpow2.f32 %v3003_v48  ;;  %v2987_v44 = vmul.f32 1.442695, %v2942_v11  ;;  %v2728_v45 = vadd.f32 %v2656_v43, %v2408_v31  ;;  %v3303_v4 = vadd.f32 %v6996_v63, %v3106_v3  ;;  %v7000_v48 = vld [vmem:[#allocation15_spill] sm:$0xff] }
 0x3e0   :  { %v2951_v15 = vmin.f32 %v6410_v37, 0.0  ;;  %v3075_v26 = vsel %vm2915_vm0, %v6357_v19, %v3637_v53  ;;  %v1898_v11 = vmul.f32 %v7000_v48, %v6999_v58  ;;  %v1624_v43 = vand.u32 2147483647, %v7001_v25  ;;  %v7006_v48 = vld [vmem:[#allocation131_spill] sm:$0xff] }
 0x3e1   :  { %v4036_v24 = vpop.eup %4035  ;;  %4043 = vpow2.f32 %v2987_v44  ;;  %v6421_v21 = vadd.f32 %v6033_v52, %v2728_v45  ;;  %v3107_v31 = vmul.f32 %v3075_v26, %v1622_v28  ;;  %v3876_v19 = vpack.c.bf16 %v3303_v4, %v3302_v16  ;;  %v7002_v44 = vld [vmem:[#allocation128_spill] sm:$0xff]  ;;  %v7004_v4 = vld [vmem:[#allocation61_spill] sm:$0xff] }
 0x3e2   :  { %v3638_v50 = vadd.f32 -1.0, %v4036_v24  ;;  %v3005_v34 = vmul.f32 1.442695, %v2951_v15  ;;  %v6431_v3 = vpop.permute.xlu1 %3240  ;;  %v2658_v62 = vpop.permute.xlu0 %2657  ;;  %v1626_v45 = vand.u32 2147483647, %v7002_v44  ;;  %vm2909_vm6 = vcmp.gt.f32.partialorder %v6388_v40, 0.0 }
 0x3e3   :  { %v2952_v52 = vmin.f32 %v6421_v21, 0.0  ;;  %v2729_v53 = vadd.f32 %v2658_v62, %v2409_v30  ;;  %v1628_v63 = vand.u32 2147483647, %v7003_v32  ;;  %3878 = vmatprep.subr.msk.bf16.mxu0 %vm6425_vm2, %v3876_v19  ;;  %v7005_v30 = vld [vmem:[#allocation33_spill] sm:$0xff]  ;;  %vm2910_vm7 = vcmp.gt.f32.partialorder %v6402_v20, 0.0 }
 0x3e4   :  { %v3076_v58 = vsel %vm2916_vm3, %v6367_v36, %v3638_v50  ;;  %4045 = vpow2.f32 %v3005_v34  ;;  %3881 = vmatpush3.bf16.xpose.msk.msra.mxu0 %vm6425_vm2, %v3879_v10  ;;  %v2410_v26 = vadd.f32 %v1898_v11, %v7005_v30  ;;  %v1630_v36 = vand.u32 2147483647, %v7006_v48  ;;  %v7007_v50 = vld [vmem:[#allocation133_spill] sm:$0xff] }
 0x3e5   :  { %v4038_v28 = vpop.eup %4037  ;;  %v3108_v15 = vmul.f32 %v3076_v58, %v1624_v43  ;;  %v3007_v16 = vmul.f32 1.442695, %v2952_v52  ;;  %v6442_v24 = vadd.f32 %v7004_v4, %v2729_v53  ;;  %v7008_v43 = vld [vmem:[#allocation125_spill] sm:$0xff]  ;;  %v7009_v53 = vld [vmem:[#allocation146_spill] sm:$0xff]  ;;  %vm2919_vm8 = vcmp.gt.f32.partialorder %v6410_v37, 0.0 }
 0x3e6   :  { %v3639_v62 = vadd.f32 -1.0, %v4038_v28  ;;  %v2660_v19 = vpop.permute.xlu1 %2659  ;;  %v6452_v25 = vpop.permute.xlu0 %2637  ;;  %v1899_v52 = vmul.f32 %v7008_v43, %v5812_v14  ;;  %v3304_v44 = vadd.f32 %v7009_v53, %v3107_v31  ;;  %v7010_v32 = vld [vmem:[#allocation145_spill] sm:$0xff]  ;;  %v7011_v28 = vld [vmem:[#allocation16_spill] sm:$0xff]  ;;  %v7012_v14 = vld [vmem:[#allocation51_spill] sm:$0xff]  ;;  %vm2920_vm9 = vcmp.gt.f32.partialorder %v6421_v21, 0.0 }
 0x3e7   :  { %4047 = vpow2.f32 %v3007_v16  ;;  %v2953_v1 = vmin.f32 %v6442_v24, 0.0  ;;  %v2730_v46 = vadd.f32 %v2660_v19, %v2410_v26  ;;  %v4040_v10 = vpop.eup %4039  ;;  %v3305_v58 = vadd.f32 %v7010_v32, %v3108_v15  ;;  %v7013_v31 = vld [vmem:[#allocation127_spill] sm:$0xff]  ;;  %v7015_v53 = vld [vmem:[#allocation154_spill] sm:$0xff] }
 0x3e8   :  { %v3077_v11 = vsel %vm2917_vm4, %v6379_v6, %v3639_v62  ;;  %v1900_v4 = vmul.f32 %v7011_v28, %v5828_v47  ;;  %v3631_v16 = vadd.f32 -1.0, %v4040_v10  ;;  %v2411_v26 = vadd.f32 %v1899_v52, %v6103_v49  ;;  %v7014_v10 = vld [vmem:[#allocation34_spill] sm:$0xff] }
 0x3e9   :  { %v4042_v30 = vpop.eup %4041  ;;  %v3109_v48 = vmul.f32 %v3077_v11, %v1626_v45  ;;  %v3009_v27 = vmul.f32 1.442695, %v2953_v1  ;;  %v6464_v43 = vadd.f32 %v7012_v14, %v2730_v46  ;;  %v3882_v62 = vpack.c.bf16 %v3305_v58, %v3304_v44  ;;  %v7017_v44 = vld [vmem:[#allocation149_spill] sm:$0xff]  ;;  %v7018_v58 = vld [vmem:[#allocation148_spill] sm:$0xff] }
 0x3ea   :  { %v3640_v8 = vadd.f32 -1.0, %v4042_v30  ;;  %v6466_v34 = vpop.permute.xlu1 %2639  ;;  %v2662_v6 = vpop.permute.xlu0 %2661  ;;  %v1901_v15 = vmul.f32 %v7013_v31, %v5844_v9  ;;  %v2412_v49 = vadd.f32 %v1900_v4, %v6133_v60  ;;  %v3069_v52 = vsel %vm2909_vm6, %v6388_v40, %v3631_v16 }
 0x3eb   :  { %v4044_v19 = vpop.eup %4043  ;;  %4049 = vpow2.f32 %v3009_v27  ;;  %v2954_v47 = vmin.f32 %v6464_v43, 0.0  ;;  %v2731_v1 = vadd.f32 %v2662_v6, %v2411_v26  ;;  %3884 = vmatprep.subr.msk.bf16.mxu0 %vm6425_vm2, %v3882_v62  ;;  %v6486_v27 = vmul.f32 %v3069_v52, %v1610_v29 }
 0x3ec   :  { %v3078_v45 = vsel %vm2918_vm5, %v6394_v7, %v3640_v8  ;;  %3887 = vmatpush3.bf16.xpose.msk.msra.mxu0 %vm6425_vm2, %v3885_v22  ;;  %v3632_v8 = vadd.f32 -1.0, %v4044_v19  ;;  %v2413_v11 = vadd.f32 %v1901_v15, %v6138_v56  ;;  %v1902_v5 = vmul.f32 %v7016_v61, %v7015_v53  ;;  %v7019_v56 = vld [vmem:[#allocation62_spill] sm:$0xff] }
 0x3ed   :  { %v3110_v46 = vmul.f32 %v3078_v45, %v1628_v63  ;;  %v3011_v9 = vmul.f32 1.442695, %v2954_v47  ;;  %v6490_v60 = vadd.f32 %v7014_v10, %v2731_v1  ;;  %v3306_v32 = vadd.f32 %v7017_v44, %v3109_v48  ;;  %v7020_v1 = vld [vmem:[#allocation137_spill] sm:$0xff]  ;;  %v7026_v53 = vld [vmem:[#allocation130_spill] sm:$0xff] }
 0x3ee   :  { %v4046_v7 = vpop.eup %4045  ;;  %v2664_v40 = vpop.permute.xlu1 %2663  ;;  %v3070_v4 = vsel %vm2910_vm7, %v6402_v20, %v3632_v8  ;;  %vm2921_vm10 = vcmp.gt.f32.partialorder %v6442_v24, 0.0  ;;  %vm2922_vm11 = vcmp.gt.f32.partialorder %v6464_v43, 0.0 }
 0x3ef   :  { %v3207_v63 = vpop.permute.xlu0 %3206  ;;  %v3641_v22 = vadd.f32 -1.0, %v4046_v7  ;;  %4051 = vpow2.f32 %v3011_v9  ;;  %v2732_v2 = vadd.f32 %v2664_v40, %v2412_v49  ;;  %v2955_v29 = vmin.f32 %v6490_v60, 0.0 }
 0x3f0   :  { %v3307_v28 = vadd.f32 %v7018_v58, %v3110_v46  ;;  %v6507_v26 = vmul.f32 %v3070_v4, %v1612_v41  ;;  %v6511_v47 = vadd.f32 %v3207_v63, %v6316_v33  ;;  %v1634_v49 = vand.u32 2147483647, %v7020_v1  ;;  %v7021_v41 = vld [vmem:[#allocation37_spill] sm:$0xff] }
 0x3f1   :  { %v4048_v30 = vpop.eup %4047  ;;  %v3079_v14 = vsel %vm2919_vm8, %v6410_v37, %v3641_v22  ;;  %v6503_v16 = vadd.f32 %v7019_v56, %v2732_v2  ;;  %v3013_v31 = vmul.f32 1.442695, %v2955_v29  ;;  %v7022_v46 = vand.u32 2147483647, %v7007_v50  ;;  %v7024_v50 = vld [vmem:[#allocation152_spill] sm:$0xff]  ;;  %v7027_v22 = vld [vmem:[#allocation151_spill] sm:$0xff] }
 0x3f2   :  { %v3111_v6 = vmul.f32 %v3079_v14, %v1630_v36  ;;  %v3642_v62 = vadd.f32 -1.0, %v4048_v30  ;;  %v3209_v48 = vpop.permute.xlu1 %3208  ;;  %v3888_v19 = vpack.c.bf16 %v3307_v28, %v3306_v32  ;;  %v2414_v36 = vadd.f32 %v1902_v5, %v7021_v41  ;;  %v7029_v29 = vld [vmem:[#allocation103_spill] sm:$0xff]  ;;  %v7034_v41 = vld [vmem:[#allocation117_spill] sm:$0xff] }
 0x3f3   :  { %v2666_v15 = vpop.permute.xlu0 %2665  ;;  %v2956_v20 = vmin.f32 %v6503_v16, 0.0  ;;  %v6514_v37 = vadd.f32 %v3209_v48, %v6321_v54  ;;  %4053 = vpow2.f32 %v3013_v31  ;;  %v7031_v31 = vld [vmem:[#allocation81_spill] sm:$0xff]  ;;  %v7032_v48 = vld [vmem:[#allocation18_spill] sm:$0xff]  ;;  %vm2923_vm12 = vcmp.gt.f32.partialorder %v6490_v60, 0.0 }
 0x3f4   :  { %v2733_v45 = vadd.f32 %v2666_v15, %v2413_v11  ;;  %v3080_v51 = vsel %vm2920_vm9, %v6421_v21, %v3642_v62  ;;  %3890 = vmatprep.subr.msk.bf16.mxu0 %vm6425_vm2, %v3888_v19  ;;  %v7023_v21 = vpack.c.bf16 %v6303_v12, %v6300_v0  ;;  %v3308_v63 = vadd.f32 %v7024_v50, %v3111_v6  ;;  %v7025_v11 = vld [vmem:[#allocation49_spill] sm:$0xff]  ;;  %v7028_v12 = vld [vmem:[#allocation115_spill] sm:$0xff]  ;;  %v7033_v19 = vld [vmem:[#allocation140_spill] sm:$0xff] }
 0x3f5   :  { %v4050_v52 = vpop.eup %4049  ;;  %v3112_v9 = vmul.f32 %v3080_v51, %v7022_v46  ;;  %v3015_v33 = vmul.f32 1.442695, %v2956_v20  ;;  %v3903_v54 = vpack.c.bf16 %v6514_v37, %v6511_v47  ;;  %v1903_v61 = vmul.f32 %v7026_v53, %v7025_v11  ;;  %v7030_v6 = vld [vmem:[#allocation53_spill] sm:$0xff]  ;;  %v7037_v11 = vld [vmem:[#allocation144_spill] sm:$0xff] }
 0x3f6   :  { %v6526_v8 = vadd.f32 %v6359_v35, %v2733_v45  ;;  %3893 = vmatpush3.bf16.xpose.msk.msra.mxu0 %vm6425_vm2, %v7023_v21  ;;  %v3643_v7 = vadd.f32 -1.0, %v4050_v52  ;;  %v2668_v10 = vpop.permute.xlu1 %2667  ;;  %v1887_v44 = vmul.f32 %v7029_v29, %v7028_v12  ;;  %v1904_v15 = vmul.f32 %v7032_v48, %v7031_v31 }
 0x3f7   :  { %v2830_v40 = vpop.permute.xlu0 %2829  ;;  %4055 = vpow2.f32 %v3015_v33  ;;  %v2734_v5 = vadd.f32 %v2668_v10, %v2414_v36  ;;  %v3309_v2 = vadd.f32 %v7027_v22, %v3112_v9  ;;  %v2415_v62 = vadd.f32 %v1903_v61, %v7030_v6  ;;  %v7035_v36 = vld [vmem:[#allocation10_spill] sm:$0xff] }
 0x3f8   :  { %v2957_v35 = vmin.f32 %v6526_v8, 0.0  ;;  %v3081_v0 = vsel %vm2921_vm10, %v6442_v24, %v3643_v7  ;;  %v1636_v20 = vand.u32 2147483647, %v7033_v19  ;;  %v2399_v1 = vadd.f32 %v1887_v44, %v6183_v17  ;;  %v7038_v44 = vld [vmem:[#allocation147_spill] sm:$0xff]  ;;  %v7039_v6 = vld [vmem:[#allocation150_spill] sm:$0xff] }
 0x3f9   :  { %v4052_v32 = vpop.eup %4051  ;;  %v3113_v58 = vmul.f32 %v3081_v0, %v1634_v49  ;;  %v6543_v4 = vadd.f32 %v6372_v55, %v2734_v5  ;;  %v3894_v30 = vpack.c.bf16 %v3309_v2, %v3308_v63  ;;  %v1888_v52 = vmul.f32 %v7035_v36, %v7034_v41 }
 0x3fa   :  { %v3017_v28 = vmul.f32 1.442695, %v2957_v35  ;;  %v3644_v14 = vadd.f32 -1.0, %v4052_v32  ;;  %v2832_v56 = vpop.permute.xlu1 %2831  ;;  %v7036_v9 = vpack.c.bf16 %v6349_v38, %v6347_v57  ;;  %v2719_v21 = vadd.f32 %v6452_v25, %v2399_v1 }
 0x3fb   :  { %v2958_v24 = vmin.f32 %v6543_v4, 0.0  ;;  %3896 = vmatprep.subr.msk.bf16.mxu0 %vm6425_vm2, %v3894_v30  ;;  %v2670_v55 = vpop.permute.xlu0 %2669  ;;  %v3310_v10 = vadd.f32 %v6412_v13, %v3113_v58  ;;  %v1638_v53 = vand.u32 2147483647, %v7037_v11  ;;  %v1640_v32 = vand.u32 2147483647, %v7038_v44 }
 0x3fc   :  { %4057 = vpow2.f32 %v3017_v28  ;;  %v3082_v45 = vsel %vm2922_vm11, %v6464_v43, %v3644_v14  ;;  %v2735_v49 = vadd.f32 %v2670_v55, %v2415_v62  ;;  %v2416_v43 = vadd.f32 %v1904_v15, %v6209_v23 }
 0x3fd   :  { %v3114_v51 = vmul.f32 %v3082_v45, %v1636_v20  ;;  %v3019_v46 = vmul.f32 1.442695, %v2958_v24  ;;  %v4054_v33 = vpop.eup %4053  ;;  %vm2924_vm13 = vcmp.gt.f32.partialorder %v6503_v16, 0.0  ;;  %v1642_v62 = vand.u32 2147483647, %v7039_v6  ;;  %v7040_v45 = vld [vmem:[#allocation153_spill] sm:$0xff] }
 0x3fe   :  { %3899 = vmatpush3.bf16.xpose.msk.msra.mxu0 %vm6425_vm2, %v7036_v9  ;;  %v6563_v7 = vadd.f32 %v2830_v40, %v2735_v49  ;;  %v3645_v63 = vadd.f32 -1.0, %v4054_v33  ;;  %v2400_v40 = vadd.f32 %v1888_v52, %v6189_v39  ;;  %vm2925_vm14 = vcmp.gt.f32.partialorder %v6526_v8, 0.0 }
 0x3ff   :  { %4059 = vpow2.f32 %v3019_v46  ;;  %v2798_v17 = vpop.permute.xlu0 %2797  ;;  %v3311_v50 = vadd.f32 %v6431_v3, %v3114_v51  ;;  %v1644_v1 = vand.u32 2147483647, %v7040_v45  ;;  %vm2926_vm15 = vcmp.gt.f32.partialorder %v6543_v4, 0.0 }
 0x400   :  { %v2959_v57 = vmin.f32 %v6563_v7, 0.0  ;;  %v2672_v38 = vpop.permute.xlu1 %2671  ;;  %v6570_v61 = vadd.f32 %v2798_v17, %v2719_v21  ;;  %v3083_v5 = vsel %vm2923_vm12, %v6490_v60, %v3645_v63  ;;  %v2720_v2 = vadd.f32 %v6466_v34, %v2400_v40 }
 0x401   :  { %v4056_v25 = vpop.eup %4055  ;;  %v2736_v23 = vadd.f32 %v2672_v38, %v2416_v43  ;;  %v3900_v35 = vpack.c.bf16 %v3311_v50, %v3310_v10  ;;  %v3115_v22 = vmul.f32 %v3083_v5, %v1638_v53  ;;  %v7041_v10 = vld [vmem:[#allocation21_spill] sm:$0xff]  ;;  %vm2927_vm0 = vcmp.gt.f32.partialorder %v6563_v7, 0.0  ;;  %v7042_v53 = vld [vmem:[#allocation114_spill] sm:$0xff] }
 0x402   :  { %v3021_v13 = vmul.f32 1.442695, %v2959_v57  ;;  %v2943_v3 = vmin.f32 %v6570_v61, 0.0  ;;  %v3646_v29 = vadd.f32 -1.0, %v4056_v25  ;;  %v1646_v50 = vand.u32 2147483647, %v7041_v10 }
 0x403   :  { %v6577_v0 = vadd.f32 %v2832_v56, %v2736_v23  ;;  %3902 = vmatprep.subr.msk.bf16.mxu0 %vm6425_vm2, %v3900_v35  ;;  %v3243_v12 = vpop.permute.xlu0 %3242  ;;  %v1614_v57 = vand.u32 2147483647, %v7042_v53  ;;  %vm2911_vm3 = vcmp.gt.f32.partialorder %v6570_v61, 0.0 }
 0x404   :  { %4061 = vpow2.f32 %v3021_v13  ;;  %v2989_v39 = vmul.f32 1.442695, %v2943_v3  ;;  %v2800_v58 = vpop.permute.xlu1 %2799  ;;  %v3084_v34 = vsel %vm2924_vm13, %v6503_v16, %v3646_v29  ;;  %v3312_v19 = vadd.f32 %v3243_v12, %v3115_v22 }
 0x405   :  { %v2960_v28 = vmin.f32 %v6577_v0, 0.0  ;;  %v6584_v30 = vadd.f32 %v2800_v58, %v2720_v2  ;;  %v3116_v14 = vmul.f32 %v3084_v34, %v1640_v32  ;;  %v7043_v2 = vld [vmem:[#allocation19_spill] sm:$0xff]  ;;  %vm2928_vm4 = vcmp.gt.f32.partialorder %v6577_v0, 0.0 }
 0x406   :  { %v4058_v60 = vpop.eup %4057  ;;  %3905 = vmatpush3.bf16.xpose.msk.msra.mxu0 %vm6425_vm2, %v3903_v54  ;;  %4063 = vpow2.f32 %v2989_v39  ;;  %v1648_v12 = vand.u32 2147483647, %v7043_v2 }
 0x407   :  { %v3647_v56 = vadd.f32 -1.0, %v4058_v60  ;;  %v3023_v31 = vmul.f32 1.442695, %v2960_v28  ;;  %v2944_v48 = vmin.f32 %v6584_v30, 0.0  ;;  %v3211_v15 = vpop.permute.xlu0 %3210  ;;  %vm2912_vm5 = vcmp.gt.f32.partialorder %v6584_v30, 0.0 }
 0x408   :  { %v3245_v20 = vpop.permute.xlu1 %3244  ;;  %v3296_v52 = vadd.f32 %v3211_v15, %v6331_v18  ;;  %v7045_v15 = vmov 1.0  }
 0x409   :  { %v3085_v47 = vsel %vm2925_vm14, %v6526_v8, %v3647_v56  ;;  %v4060_v37 = vpop.eup %4059  ;;  %4065 = vpow2.f32 %v3023_v31  ;;  %v2991_v54 = vmul.f32 1.442695, %v2944_v48  ;;  %v3313_v24 = vadd.f32 %v3245_v20, %v3116_v14 }
 0x40a   :  { %v3117_v16 = vmul.f32 %v3085_v47, %v1642_v62  ;;  %v3648_v55 = vadd.f32 -1.0, %v4060_v37 }
 0x40b   :  { %4067 = vpow2.f32 %v2991_v54  ;;  %v3906_v49 = vpack.c.bf16 %v3313_v24, %v3312_v19  ;;  %v3247_v51 = vpop.permute.xlu0 %3246 }
 0x40c   :  { %v3213_v41 = vpop.permute.xlu1 %3212  ;;  %v3086_v36 = vsel %vm2926_vm15, %v6543_v4, %v3648_v55  ;;  %v3314_v11 = vadd.f32 %v3247_v51, %v3117_v16  ;;  %v7046_v55 = vld [vmem:[#allocation2_spill] sm:$0xff]  ;;  %v7047_v51 = vlaneseq }
 0x40d   :  { %v3297_v8 = vadd.f32 %v3213_v41, %v6336_v42  ;;  %3908 = vmatprep.subr.msk.bf16.mxu0 %vm6425_vm2, %v3906_v49  ;;  %v3118_v46 = vmul.f32 %v3086_v36, %v1644_v1 }
 0x40e   :  { %v4062_v9 = vpop.eup %4061  ;;  %vm3514_vm6 = vcmp.lt.s32.totalorder %v7047_v51, 256 }
 0x40f   :  { %v3909_v33 = vpack.c.bf16 %v3297_v8, %v3296_v52  ;;  %v3215_v21 = vpop.permute.xlu0 %3214  ;;  %v3649_v43 = vadd.f32 -1.0, %v4062_v9 }
 0x410   :  { %v4064_v17 = vpop.eup %4063  ;;  %v3249_v63 = vpop.permute.xlu1 %3248  ;;  %v3298_v29 = vadd.f32 %v3215_v21, %v6486_v27 }
 0x411   :  { %v3315_v4 = vadd.f32 %v3249_v63, %v3118_v46  ;;  %3911 = vmatpush3.bf16.xpose.msk.msra.mxu0 %vm6425_vm2, %v3909_v33  ;;  %v3087_v18 = vsel %vm2927_vm0, %v6563_v7, %v3649_v43  ;;  %v3633_v42 = vadd.f32 -1.0, %v4064_v17 }
 0x412   :  { %v3119_v38 = vmul.f32 %v3087_v18, %v1646_v50 }
 0x413   :  { %v4066_v25 = vpop.eup %4065  ;;  %v3912_v40 = vpack.c.bf16 %v3315_v4, %v3314_v11  ;;  %v3071_v23 = vsel %vm2911_vm3, %v6570_v61, %v3633_v42  ;;  %v3251_v5 = vpop.permute.xlu0 %3250  ;;  %v7044_v61 = vld [vmem:[#allocation116_spill] sm:$0xff] }
 0x414   :  { %v3217_v35 = vpop.permute.xlu1 %3216  ;;  %v3650_v13 = vadd.f32 -1.0, %v4066_v25  ;;  %v3103_v3 = vmul.f32 %v3071_v23, %v1614_v57  ;;  %v1616_v39 = vand.u32 2147483647, %v7044_v61  ;;  %v3316_v27 = vadd.f32 %v3251_v5, %v3119_v38 }
 0x415   :  { %v4068_v22 = vpop.eup %4067  ;;  %v3299_v7 = vadd.f32 %v3217_v35, %v6507_v26  ;;  %3914 = vmatprep.subr.msk.bf16.mxu0 %vm6425_vm2, %v3912_v40 }
 0x416   :  { %v3088_v44 = vsel %vm2928_vm4, %v6577_v0, %v3650_v13  ;;  %v3634_v32 = vadd.f32 -1.0, %v4068_v22 }
 0x417   :  { %v3915_v58 = vpack.c.bf16 %v3299_v7, %v3298_v29  ;;  %v3120_v60 = vmul.f32 %v3088_v44, %v1648_v12  ;;  %v3219_v56 = vpop.permute.xlu0 %3218 }
 0x418   :  { %v3253_v28 = vpop.permute.xlu1 %3252  ;;  %v3072_v34 = vsel %vm2912_vm5, %v6584_v30, %v3634_v32  ;;  %v3300_v0 = vadd.f32 %v3219_v56, %v3103_v3  ;;  %v4078_v30 = vmov 1966171168  }
 0x419   :  { %v3317_v14 = vadd.f32 %v3253_v28, %v3120_v60  ;;  %3917 = vmatpush3.bf16.xpose.msk.msra.mxu0 %vm6425_vm2, %v3915_v58  ;;  %v3104_v26 = vmul.f32 %v3072_v34, %v1616_v39  ;;  %v3498_v19 = vunpack.c.l.s4 %v4078_v30 }
 0x41b   :  { %v3918_v6 = vpack.c.bf16 %v3317_v14, %v3316_v27  ;;  %v3499_v20 = vunpack.c.0.s8 %v3498_v19 }
 0x41c   :  { %v3221_v62 = vpop.permute.xlu1 %3220 }
 0x41d   :  { %v3301_v31 = vadd.f32 %v3221_v62, %v3104_v26  ;;  %3920 = vmatprep.subr.msk.bf16.mxu0 %vm6425_vm2, %v3918_v6  ;;  %v3502_v45 = vsub.s32 %v3499_v20, %v7046_v55 }
 0x41f   :  { %v3921_v48 = vpack.c.bf16 %v3301_v31, %v3300_v0 }
 0x421   :  { %3923 = vmatpush3.bf16.xpose.msk.msra.mxu0 %vm6425_vm2, %v3921_v48 }
 0x428   :  { %3755 = vmatmul.mubr.msk.f32.vlgmr.msra.gmra.mrb[96].mxu0 %vm467_vm1, %v7045_v15  ;;  %v3322_v47 = vpop.permute.xlu0 %3321 }
 0x4fb   :  { %v3489_v37 = vpop.f32.mrb[96].mxu0 }
 0x4fc   :  { %v3490_v54 = vadd.f32 %v3489_v37, %v3322_v47  ;;  %v3491_v24 = vpop.f32.mrb[97].mxu0 }
 0x4fd   :  { %v3492_v16 = vadd.f32 %v3491_v24, %v3322_v47 }
 0x4ff   :  { %v3496_v1 = vcombine.low %v3490_v54, %v3492_v16 }
 0x501   :  { %v3503_v49 = vrot.slane %v3496_v1, %v3502_v45 }
 0x503   :  { %v3510_v41 = vrot.slane %v3503_v49, %v3502_v45 }
 0x505   :  { %3516 = vst.msk [vmem:[%s6641_s7] sm:$0x3] %vm3514_vm6, %v3510_v41 }

</bundles_post_ra>
